<compile_context>
chip_gen: v7x
topology: tpu7x:2x2x1
jax: 0.10.0
libtpu: 0.0.40
codegen_flags: <defaults>
</compile_context>

<pallas_src>
import functools

import jax
import jax.numpy as jnp
import numpy as np
from jax.experimental import pallas as pl
from jax.experimental.pallas import tpu as pltpu


# --------------------------------- fused kernel ---------------------------------

def _fused_lstm_kernel(x_ref,
                       wih1f_ref, whh1f_ref, b1f_ref,
                       wih1b_ref, whh1b_ref, b1b_ref,
                       wih2f_ref, whh2f_ref, b2f_ref,
                       wih2b_ref, whh2b_ref, b2b_ref,
                       wlin_ref, blin_ref,
                       o_ref,
                       l1f_sc, l1b_sc, l2f_sc, l2b_sc,
                       *, seq_len, rows_per_step, hidden):
    """Fused 2-layer bidirectional LSTM + linear head.

    x_ref     : (S*R, E)   row r = t*R + b  (rows b >= true batch are zero padding)
    w*_ref    : weight / bias tiles, all fully VMEM-resident
    o_ref     : (S*R, OP)  lane-padded logits
    l*_sc     : (S*R, H)   VMEM scratch for per-layer, per-direction hidden states
    """
    S, R, H = seq_len, rows_per_step, hidden

    def lstm_cell(gates, c_prev):
        # PyTorch gate order: [i, f, g, o]
        i = jax.nn.sigmoid(gates[:, 0 * H:1 * H])
        f = jax.nn.sigmoid(gates[:, 1 * H:2 * H])
        g = jnp.tanh(gates[:, 2 * H:3 * H])
        o = jax.nn.sigmoid(gates[:, 3 * H:4 * H])
        c = f * c_prev + i * g
        h = o * jnp.tanh(c)
        return h, c

    def run_layer(xproj_f, xproj_b, whh_f, whh_b, out_f_sc, out_b_sc):
        # xproj_* already contain x @ W_ih + (b_ih + b_hh) for every time step.
        zeros = jnp.zeros((R, H), jnp.float32)
        hf, cf = zeros, zeros
        hb, cb = zeros, zeros
        # Fully unrolled time loop (static S); fwd processes t, bwd processes S-1-t,
        # so the two independent recurrences interleave and hide MXU/EUP latency.
        for t in range(S):
            tb = S - 1 - t
            gf = xproj_f[t * R:(t + 1) * R, :] + jnp.dot(
                hf, whh_f, preferred_element_type=jnp.float32)
            gb = xproj_b[tb * R:(tb + 1) * R, :] + jnp.dot(
                hb, whh_b, preferred_element_type=jnp.float32)
            hf, cf = lstm_cell(gf, cf)
            hb, cb = lstm_cell(gb, cb)
            out_f_sc[pl.ds(t * R, R), :] = hf
            out_b_sc[pl.ds(tb * R, R), :] = hb

    # ----- layer 1: batched input projections (2 big MXU matmuls, bias folded in) -----
    x = x_ref[...]                                               # (S*R, E)
    xp1f = jnp.dot(x, wih1f_ref[...],
                   preferred_element_type=jnp.float32) + b1f_ref[...]
    xp1b = jnp.dot(x, wih1b_ref[...],
                   preferred_element_type=jnp.float32) + b1b_ref[...]
    run_layer(xp1f, xp1b, whh1f_ref[...], whh1b_ref[...], l1f_sc, l1b_sc)

    # ----- layer 2: input = concat(fwd1, bwd1) expressed as split matmuls (no concat) --
    f1 = l1f_sc[...]                                             # (S*R, H)
    r1 = l1b_sc[...]                                             # (S*R, H)
    w2f = wih2f_ref[...]                                         # (2H, 4H)
    w2b = wih2b_ref[...]
    xp2f = (jnp.dot(f1, w2f[:H], preferred_element_type=jnp.float32)
            + jnp.dot(r1, w2f[H:], preferred_element_type=jnp.float32)
            + b2f_ref[...])
    xp2b = (jnp.dot(f1, w2b[:H], preferred_element_type=jnp.float32)
            + jnp.dot(r1, w2b[H:], preferred_element_type=jnp.float32)
            + b2b_ref[...])
    run_layer(xp2f, xp2b, whh2f_ref[...], whh2b_ref[...], l2f_sc, l2b_sc)

    # ----- final linear head over the whole sequence, lane-dense padded output -----
    wl = wlin_ref[...]                                           # (2H, OP)
    o_ref[...] = (jnp.dot(l2f_sc[...], wl[:H], preferred_element_type=jnp.float32)
                  + jnp.dot(l2b_sc[...], wl[H:], preferred_element_type=jnp.float32)
                  + blin_ref[...])


def _full(shape):
    """Whole-array block (no grid)."""
    return pl.BlockSpec(shape, lambda: (0,) * len(shape))


# --------------------------------- full forward ---------------------------------

def extract_lstm_forward(inpt, params):
    """inpt: (S, B) int32 token ids  ->  (S, B, 5) float32 logits."""
    x = params["embed"][inpt]                                   # (S, B, E) — plain-JAX gather
    S, B, E = x.shape
    l1, l2 = params["lstm"]
    H = l1["whh_f"].shape[0]
    out_dim = params["lin_w"].shape[1]

    R = 8 * pl.cdiv(B, 8)          # batch rows padded to a sublane multiple (aligned stores)
    OP = 128 * pl.cdiv(out_dim, 128)  # head output padded to a lane multiple (unmasked vst)

    # Pad batch rows with zeros; padded rows flow through the LSTM harmlessly (bounded,
    # row-independent math) and are sliced off at the end.
    xp = jnp.zeros((S, R, E), jnp.float32).at[:, :B, :].set(x).reshape(S * R, E)
    wlin = jnp.zeros((2 * H, OP), jnp.float32).at[:, :out_dim].set(params["lin_w"])
    blin = jnp.zeros((1, OP), jnp.float32).at[:, :out_dim].set(params["lin_b"])

    out = pl.pallas_call(
        functools.partial(_fused_lstm_kernel,
                          seq_len=S, rows_per_step=R, hidden=H),
        out_shape=jax.ShapeDtypeStruct((S * R, OP), jnp.float32),
        in_specs=[
            _full((S * R, E)),                                            # x (padded)
            _full((E, 4 * H)), _full((H, 4 * H)), _full((1, 4 * H)),      # layer1 fwd
            _full((E, 4 * H)), _full((H, 4 * H)), _full((1, 4 * H)),      # layer1 bwd
            _full((2 * H, 4 * H)), _full((H, 4 * H)), _full((1, 4 * H)),  # layer2 fwd
            _full((2 * H, 4 * H)), _full((H, 4 * H)), _full((1, 4 * H)),  # layer2 bwd
            _full((2 * H, OP)), _full((1, OP)),                           # linear head
        ],
        out_specs=_full((S * R, OP)),
        scratch_shapes=[pltpu.VMEM((S * R, H), jnp.float32) for _ in range(4)],
    )(xp,
      l1["wih_f"], l1["whh_f"], l1["b_f"], l1["wih_r"], l1["whh_r"], l1["b_r"],
      l2["wih_f"], l2["whh_f"], l2["b_f"], l2["wih_r"], l2["whh_r"], l2["b_r"],
      wlin, blin)

    return out.reshape(S, R, OP)[:, :B, :out_dim]


# ------------------------------ pure-JAX reference ------------------------------

def _lstm_dir_ref(x, w_ih_t, w_hh_t, b):
    S, B, E = x.shape
    H = w_hh_t.shape[0]
    hi = jax.lax.Precision.HIGHEST

    def step(carry, x_t):
        h, c = carry
        gates = (jnp.dot(x_t, w_ih_t, precision=hi)
                 + jnp.dot(h, w_hh_t, precision=hi) + b)
        i = jax.nn.sigmoid(gates[:, 0 * H:1 * H])
        f = jax.nn.sigmoid(gates[:, 1 * H:2 * H])
        g = jnp.tanh(gates[:, 2 * H:3 * H])
        o = jax.nn.sigmoid(gates[:, 3 * H:4 * H])
        c = f * c + i * g
        h = o * jnp.tanh(c)
        return (h, c), h

    init = (jnp.zeros((B, H), jnp.float32), jnp.zeros((B, H), jnp.float32))
    _, hs = jax.lax.scan(step, init, x)
    return hs


def extract_lstm_ref(inpt, params):
    x = params["embed"][inpt]
    for p in params["lstm"]:
        fwd = _lstm_dir_ref(x, p["wih_f"], p["whh_f"], p["b_f"])
        bwd = _lstm_dir_ref(x[::-1], p["wih_r"], p["whh_r"], p["b_r"])[::-1]
        x = jnp.concatenate([fwd, bwd], axis=-1)
    S, B, F = x.shape
    y = (jnp.dot(x.reshape(S * B, F), params["lin_w"],
                 precision=jax.lax.Precision.HIGHEST) + params["lin_b"])
    return y.reshape(S, B, -1)


# ------------------------------ parameter creation ------------------------------

def init_params(key, vocab_size, embed_size, hidden_size, num_layers=2, out_dim=5):
    keys = iter(jax.random.split(key, 64))
    scale = 1.0 / np.sqrt(hidden_size)

    def unif(shape):
        return jax.random.uniform(next(keys), shape, jnp.float32,
                                  minval=-scale, maxval=scale)

    params = {"embed": 0.1 * jax.random.normal(
        next(keys), (vocab_size, embed_size), jnp.float32)}

    lstm_layers = []
    in_size = embed_size
    for _ in range(num_layers):
        layer = {}
        for suffix in ("f", "r"):  # forward / reverse directions
            layer[f"wih_{suffix}"] = unif((in_size, 4 * hidden_size))      # x @ W
            layer[f"whh_{suffix}"] = unif((hidden_size, 4 * hidden_size))  # h @ W
            # combined bias (b_ih + b_hh in PyTorch)
            layer[f"b_{suffix}"] = unif((1, 4 * hidden_size)) + unif((1, 4 * hidden_size))
        lstm_layers.append(layer)
        in_size = 2 * hidden_size  # bidirectional output feeds next layer
    params["lstm"] = lstm_layers

    lin_scale = 1.0 / np.sqrt(2 * hidden_size)
    params["lin_w"] = jax.random.uniform(
        next(keys), (2 * hidden_size, out_dim), jnp.float32,
        minval=-lin_scale, maxval=lin_scale)
    params["lin_b"] = jax.random.uniform(
        next(keys), (1, out_dim), jnp.float32, minval=-lin_scale, maxval=lin_scale)
    return params


# --------------------------------------- main ---------------------------------------

if __name__ == "__main__":
    # Small shapes consistent with the module's forward.
    VOCAB, EMBED, HIDDEN = 50, 32, 32
    SEQ, BATCH = 8, 2

    key = jax.random.PRNGKey(0)
    k_tok, k_par = jax.random.split(key)

    inpt = jax.random.randint(k_tok, (SEQ, BATCH), 0, VOCAB, dtype=jnp.int32)
    params = init_params(k_par, VOCAB, EMBED, HIDDEN)

    fwd = jax.jit(extract_lstm_forward)
    out = jax.block_until_ready(fwd(inpt, params))
    assert out.shape == (SEQ, BATCH, 5), out.shape

    ref = jax.block_until_ready(jax.jit(extract_lstm_ref)(inpt, params))
    np.testing.assert_allclose(np.asarray(out), np.asarray(ref), rtol=2e-3, atol=2e-3)

    print("KERNEL_OK")
</pallas_src>

<mosaic_0001>
module attributes {stable_mosaic.version = 11 : i64} {
  func.func @_fused_lstm_kernel(%arg0: memref<64x32xf32, #tpu.memory_space<vmem>>, %arg1: memref<32x128xf32, #tpu.memory_space<vmem>>, %arg2: memref<32x128xf32, #tpu.memory_space<vmem>>, %arg3: memref<1x128xf32, #tpu.memory_space<vmem>>, %arg4: memref<32x128xf32, #tpu.memory_space<vmem>>, %arg5: memref<32x128xf32, #tpu.memory_space<vmem>>, %arg6: memref<1x128xf32, #tpu.memory_space<vmem>>, %arg7: memref<64x128xf32, #tpu.memory_space<vmem>>, %arg8: memref<32x128xf32, #tpu.memory_space<vmem>>, %arg9: memref<1x128xf32, #tpu.memory_space<vmem>>, %arg10: memref<64x128xf32, #tpu.memory_space<vmem>>, %arg11: memref<32x128xf32, #tpu.memory_space<vmem>>, %arg12: memref<1x128xf32, #tpu.memory_space<vmem>>, %arg13: memref<64x128xf32, #tpu.memory_space<vmem>>, %arg14: memref<1x128xf32, #tpu.memory_space<vmem>>, %arg15: memref<64x128xf32, #tpu.memory_space<vmem>>, %arg16: memref<64x32xf32, #tpu.memory_space<vmem>>, %arg17: memref<64x32xf32, #tpu.memory_space<vmem>>, %arg18: memref<64x32xf32, #tpu.memory_space<vmem>>, %arg19: memref<64x32xf32, #tpu.memory_space<vmem>>) attributes {dimension_semantics = [], scalar_prefetch = 0 : i64, scratch_operands = 4 : i64, tpu.core_type = #tpu.core_type<tc>} {
    %c0 = arith.constant 0 : index
    %c0_0 = arith.constant 0 : index
    %0 = vector.load %arg0[%c0, %c0_0] : memref<64x32xf32, #tpu.memory_space<vmem>>, vector<64x32xf32>
    %c0_1 = arith.constant 0 : index
    %c0_2 = arith.constant 0 : index
    %1 = vector.load %arg1[%c0_1, %c0_2] : memref<32x128xf32, #tpu.memory_space<vmem>>, vector<32x128xf32>
    %cst = arith.constant dense<0.000000e+00> : vector<64x128xf32>
    %2 = tpu.matmul %0, %1, %cst {dimension_numbers = #tpu.dot_dimension_numbers<[1], [0], [0], [1], [0, 0, 1, 1], [], []>} : vector<64x32xf32>, vector<32x128xf32>, vector<64x128xf32> -> vector<64x128xf32>
    %c0_3 = arith.constant 0 : index
    %c0_4 = arith.constant 0 : index
    %3 = vector.load %arg3[%c0_3, %c0_4] : memref<1x128xf32, #tpu.memory_space<vmem>>, vector<1x128xf32>
    %4 = vector.broadcast %3 : vector<1x128xf32> to vector<64x128xf32>
    %5 = arith.addf %2, %4 : vector<64x128xf32>
    %c0_5 = arith.constant 0 : index
    %c0_6 = arith.constant 0 : index
    %6 = vector.load %arg4[%c0_5, %c0_6] : memref<32x128xf32, #tpu.memory_space<vmem>>, vector<32x128xf32>
    %cst_7 = arith.constant dense<0.000000e+00> : vector<64x128xf32>
    %7 = tpu.matmul %0, %6, %cst_7 {dimension_numbers = #tpu.dot_dimension_numbers<[1], [0], [0], [1], [0, 0, 1, 1], [], []>} : vector<64x32xf32>, vector<32x128xf32>, vector<64x128xf32> -> vector<64x128xf32>
    %c0_8 = arith.constant 0 : index
    %c0_9 = arith.constant 0 : index
    %8 = vector.load %arg6[%c0_8, %c0_9] : memref<1x128xf32, #tpu.memory_space<vmem>>, vector<1x128xf32>
    %9 = vector.broadcast %8 : vector<1x128xf32> to vector<64x128xf32>
    %10 = arith.addf %7, %9 : vector<64x128xf32>
    %c0_10 = arith.constant 0 : index
    %c0_11 = arith.constant 0 : index
    %11 = vector.load %arg2[%c0_10, %c0_11] : memref<32x128xf32, #tpu.memory_space<vmem>>, vector<32x128xf32>
    %c0_12 = arith.constant 0 : index
    %c0_13 = arith.constant 0 : index
    %12 = vector.load %arg5[%c0_12, %c0_13] : memref<32x128xf32, #tpu.memory_space<vmem>>, vector<32x128xf32>
    %cst_14 = arith.constant 0.000000e+00 : f32
    %13 = vector.broadcast %cst_14 : f32 to vector<8x32xf32>
    %14 = vector.extract_strided_slice %5 {offsets = [0, 0], sizes = [8, 128], strides = [1, 1]} : vector<64x128xf32> to vector<8x128xf32>
    %cst_15 = arith.constant dense<0.000000e+00> : vector<8x128xf32>
    %15 = tpu.matmul %13, %11, %cst_15 {dimension_numbers = #tpu.dot_dimension_numbers<[1], [0], [0], [1], [0, 0, 1, 1], [], []>} : vector<8x32xf32>, vector<32x128xf32>, vector<8x128xf32> -> vector<8x128xf32>
    %16 = arith.addf %14, %15 : vector<8x128xf32>
    %17 = vector.extract_strided_slice %10 {offsets = [56, 0], sizes = [8, 128], strides = [1, 1]} : vector<64x128xf32> to vector<8x128xf32>
    %cst_16 = arith.constant dense<0.000000e+00> : vector<8x128xf32>
    %18 = tpu.matmul %13, %12, %cst_16 {dimension_numbers = #tpu.dot_dimension_numbers<[1], [0], [0], [1], [0, 0, 1, 1], [], []>} : vector<8x32xf32>, vector<32x128xf32>, vector<8x128xf32> -> vector<8x128xf32>
    %19 = arith.addf %17, %18 : vector<8x128xf32>
    %20 = vector.extract_strided_slice %16 {offsets = [0, 0], sizes = [8, 32], strides = [1, 1]} : vector<8x128xf32> to vector<8x32xf32>
    %21 = arith.negf %20 : vector<8x32xf32>
    %22 = math.exp %21 : vector<8x32xf32>
    %cst_17 = arith.constant 1.000000e+00 : f32
    %23 = vector.broadcast %cst_17 : f32 to vector<8x32xf32>
    %24 = arith.addf %23, %22 : vector<8x32xf32>
    %25 = arith.divf %23, %24 : vector<8x32xf32>
    %26 = vector.extract_strided_slice %16 {offsets = [0, 32], sizes = [8, 32], strides = [1, 1]} : vector<8x128xf32> to vector<8x32xf32>
    %27 = arith.negf %26 : vector<8x32xf32>
    %28 = math.exp %27 : vector<8x32xf32>
    %cst_18 = arith.constant 1.000000e+00 : f32
    %29 = vector.broadcast %cst_18 : f32 to vector<8x32xf32>
    %30 = arith.addf %29, %28 : vector<8x32xf32>
    %31 = arith.divf %29, %30 : vector<8x32xf32>
    %32 = vector.extract_strided_slice %16 {offsets = [0, 64], sizes = [8, 32], strides = [1, 1]} : vector<8x128xf32> to vector<8x32xf32>
    %33 = math.tanh %32 : vector<8x32xf32>
    %34 = vector.extract_strided_slice %16 {offsets = [0, 96], sizes = [8, 32], strides = [1, 1]} : vector<8x128xf32> to vector<8x32xf32>
    %35 = arith.negf %34 : vector<8x32xf32>
    %36 = math.exp %35 : vector<8x32xf32>
    %cst_19 = arith.constant 1.000000e+00 : f32
    %37 = vector.broadcast %cst_19 : f32 to vector<8x32xf32>
    %38 = arith.addf %37, %36 : vector<8x32xf32>
    %39 = arith.divf %37, %38 : vector<8x32xf32>
    %40 = arith.mulf %31, %13 : vector<8x32xf32>
    %41 = arith.mulf %25, %33 : vector<8x32xf32>
    %42 = arith.addf %40, %41 : vector<8x32xf32>
    %43 = math.tanh %42 : vector<8x32xf32>
    %44 = arith.mulf %39, %43 : vector<8x32xf32>
    %45 = vector.extract_strided_slice %19 {offsets = [0, 0], sizes = [8, 32], strides = [1, 1]} : vector<8x128xf32> to vector<8x32xf32>
    %46 = arith.negf %45 : vector<8x32xf32>
    %47 = math.exp %46 : vector<8x32xf32>
    %cst_20 = arith.constant 1.000000e+00 : f32
    %48 = vector.broadcast %cst_20 : f32 to vector<8x32xf32>
    %49 = arith.addf %48, %47 : vector<8x32xf32>
    %50 = arith.divf %48, %49 : vector<8x32xf32>
    %51 = vector.extract_strided_slice %19 {offsets = [0, 32], sizes = [8, 32], strides = [1, 1]} : vector<8x128xf32> to vector<8x32xf32>
    %52 = arith.negf %51 : vector<8x32xf32>
    %53 = math.exp %52 : vector<8x32xf32>
    %cst_21 = arith.constant 1.000000e+00 : f32
    %54 = vector.broadcast %cst_21 : f32 to vector<8x32xf32>
    %55 = arith.addf %54, %53 : vector<8x32xf32>
    %56 = arith.divf %54, %55 : vector<8x32xf32>
    %57 = vector.extract_strided_slice %19 {offsets = [0, 64], sizes = [8, 32], strides = [1, 1]} : vector<8x128xf32> to vector<8x32xf32>
    %58 = math.tanh %57 : vector<8x32xf32>
    %59 = vector.extract_strided_slice %19 {offsets = [0, 96], sizes = [8, 32], strides = [1, 1]} : vector<8x128xf32> to vector<8x32xf32>
    %60 = arith.negf %59 : vector<8x32xf32>
    %61 = math.exp %60 : vector<8x32xf32>
    %cst_22 = arith.constant 1.000000e+00 : f32
    %62 = vector.broadcast %cst_22 : f32 to vector<8x32xf32>
    %63 = arith.addf %62, %61 : vector<8x32xf32>
    %64 = arith.divf %62, %63 : vector<8x32xf32>
    %65 = arith.mulf %56, %13 : vector<8x32xf32>
    %66 = arith.mulf %50, %58 : vector<8x32xf32>
    %67 = arith.addf %65, %66 : vector<8x32xf32>
    %68 = math.tanh %67 : vector<8x32xf32>
    %69 = arith.mulf %64, %68 : vector<8x32xf32>
    %c0_23 = arith.constant 0 : index
    %c0_24 = arith.constant 0 : index
    %70 = vector.load %arg16[%c0_23, %c0_24] : memref<64x32xf32, #tpu.memory_space<vmem>>, vector<8x32xf32>
    tpu.vector_store %arg16[%c0_23, %c0_24], %44 {strides = array<i32>} : memref<64x32xf32, #tpu.memory_space<vmem>>, vector<8x32xf32>,
    %c56 = arith.constant 56 : index
    %c0_25 = arith.constant 0 : index
    %71 = vector.load %arg17[%c56, %c0_25] : memref<64x32xf32, #tpu.memory_space<vmem>>, vector<8x32xf32>
    tpu.vector_store %arg17[%c56, %c0_25], %69 {strides = array<i32>} : memref<64x32xf32, #tpu.memory_space<vmem>>, vector<8x32xf32>,
    %72 = vector.extract_strided_slice %5 {offsets = [8, 0], sizes = [8, 128], strides = [1, 1]} : vector<64x128xf32> to vector<8x128xf32>
    %cst_26 = arith.constant dense<0.000000e+00> : vector<8x128xf32>
    %73 = tpu.matmul %44, %11, %cst_26 {dimension_numbers = #tpu.dot_dimension_numbers<[1], [0], [0], [1], [0, 0, 1, 1], [], []>} : vector<8x32xf32>, vector<32x128xf32>, vector<8x128xf32> -> vector<8x128xf32>
    %74 = arith.addf %72, %73 : vector<8x128xf32>
    %75 = vector.extract_strided_slice %10 {offsets = [48, 0], sizes = [8, 128], strides = [1, 1]} : vector<64x128xf32> to vector<8x128xf32>
    %cst_27 = arith.constant dense<0.000000e+00> : vector<8x128xf32>
    %76 = tpu.matmul %69, %12, %cst_27 {dimension_numbers = #tpu.dot_dimension_numbers<[1], [0], [0], [1], [0, 0, 1, 1], [], []>} : vector<8x32xf32>, vector<32x128xf32>, vector<8x128xf32> -> vector<8x128xf32>
    %77 = arith.addf %75, %76 : vector<8x128xf32>
    %78 = vector.extract_strided_slice %74 {offsets = [0, 0], sizes = [8, 32], strides = [1, 1]} : vector<8x128xf32> to vector<8x32xf32>
    %79 = arith.negf %78 : vector<8x32xf32>
    %80 = math.exp %79 : vector<8x32xf32>
    %cst_28 = arith.constant 1.000000e+00 : f32
    %81 = vector.broadcast %cst_28 : f32 to vector<8x32xf32>
    %82 = arith.addf %81, %80 : vector<8x32xf32>
    %83 = arith.divf %81, %82 : vector<8x32xf32>
    %84 = vector.extract_strided_slice %74 {offsets = [0, 32], sizes = [8, 32], strides = [1, 1]} : vector<8x128xf32> to vector<8x32xf32>
    %85 = arith.negf %84 : vector<8x32xf32>
    %86 = math.exp %85 : vector<8x32xf32>
    %cst_29 = arith.constant 1.000000e+00 : f32
    %87 = vector.broadcast %cst_29 : f32 to vector<8x32xf32>
    %88 = arith.addf %87, %86 : vector<8x32xf32>
    %89 = arith.divf %87, %88 : vector<8x32xf32>
    %90 = vector.extract_strided_slice %74 {offsets = [0, 64], sizes = [8, 32], strides = [1, 1]} : vector<8x128xf32> to vector<8x32xf32>
    %91 = math.tanh %90 : vector<8x32xf32>
    %92 = vector.extract_strided_slice %74 {offsets = [0, 96], sizes = [8, 32], strides = [1, 1]} : vector<8x128xf32> to vector<8x32xf32>
    %93 = arith.negf %92 : vector<8x32xf32>
    %94 = math.exp %93 : vector<8x32xf32>
    %cst_30 = arith.constant 1.000000e+00 : f32
    %95 = vector.broadcast %cst_30 : f32 to vector<8x32xf32>
    %96 = arith.addf %95, %94 : vector<8x32xf32>
    %97 = arith.divf %95, %96 : vector<8x32xf32>
    %98 = arith.mulf %89, %42 : vector<8x32xf32>
    %99 = arith.mulf %83, %91 : vector<8x32xf32>
    %100 = arith.addf %98, %99 : vector<8x32xf32>
    %101 = math.tanh %100 : vector<8x32xf32>
    %102 = arith.mulf %97, %101 : vector<8x32xf32>
    %103 = vector.extract_strided_slice %77 {offsets = [0, 0], sizes = [8, 32], strides = [1, 1]} : vector<8x128xf32> to vector<8x32xf32>
    %104 = arith.negf %103 : vector<8x32xf32>
    %105 = math.exp %104 : vector<8x32xf32>
    %cst_31 = arith.constant 1.000000e+00 : f32
    %106 = vector.broadcast %cst_31 : f32 to vector<8x32xf32>
    %107 = arith.addf %106, %105 : vector<8x32xf32>
    %108 = arith.divf %106, %107 : vector<8x32xf32>
    %109 = vector.extract_strided_slice %77 {offsets = [0, 32], sizes = [8, 32], strides = [1, 1]} : vector<8x128xf32> to vector<8x32xf32>
    %110 = arith.negf %109 : vector<8x32xf32>
    %111 = math.exp %110 : vector<8x32xf32>
    %cst_32 = arith.constant 1.000000e+00 : f32
    %112 = vector.broadcast %cst_32 : f32 to vector<8x32xf32>
    %113 = arith.addf %112, %111 : vector<8x32xf32>
    %114 = arith.divf %112, %113 : vector<8x32xf32>
    %115 = vector.extract_strided_slice %77 {offsets = [0, 64], sizes = [8, 32], strides = [1, 1]} : vector<8x128xf32> to vector<8x32xf32>
    %116 = math.tanh %115 : vector<8x32xf32>
    %117 = vector.extract_strided_slice %77 {offsets = [0, 96], sizes = [8, 32], strides = [1, 1]} : vector<8x128xf32> to vector<8x32xf32>
    %118 = arith.negf %117 : vector<8x32xf32>
    %119 = math.exp %118 : vector<8x32xf32>
    %cst_33 = arith.constant 1.000000e+00 : f32
    %120 = vector.broadcast %cst_33 : f32 to vector<8x32xf32>
    %121 = arith.addf %120, %119 : vector<8x32xf32>
    %122 = arith.divf %120, %121 : vector<8x32xf32>
    %123 = arith.mulf %114, %67 : vector<8x32xf32>
    %124 = arith.mulf %108, %116 : vector<8x32xf32>
    %125 = arith.addf %123, %124 : vector<8x32xf32>
    %126 = math.tanh %125 : vector<8x32xf32>
    %127 = arith.mulf %122, %126 : vector<8x32xf32>
    %c8 = arith.constant 8 : index
    %c0_34 = arith.constant 0 : index
    %128 = vector.load %arg16[%c8, %c0_34] : memref<64x32xf32, #tpu.memory_space<vmem>>, vector<8x32xf32>
    tpu.vector_store %arg16[%c8, %c0_34], %102 {strides = array<i32>} : memref<64x32xf32, #tpu.memory_space<vmem>>, vector<8x32xf32>,
    %c48 = arith.constant 48 : index
    %c0_35 = arith.constant 0 : index
    %129 = vector.load %arg17[%c48, %c0_35] : memref<64x32xf32, #tpu.memory_space<vmem>>, vector<8x32xf32>
    tpu.vector_store %arg17[%c48, %c0_35], %127 {strides = array<i32>} : memref<64x32xf32, #tpu.memory_space<vmem>>, vector<8x32xf32>,
    %130 = vector.extract_strided_slice %5 {offsets = [16, 0], sizes = [8, 128], strides = [1, 1]} : vector<64x128xf32> to vector<8x128xf32>
    %cst_36 = arith.constant dense<0.000000e+00> : vector<8x128xf32>
    %131 = tpu.matmul %102, %11, %cst_36 {dimension_numbers = #tpu.dot_dimension_numbers<[1], [0], [0], [1], [0, 0, 1, 1], [], []>} : vector<8x32xf32>, vector<32x128xf32>, vector<8x128xf32> -> vector<8x128xf32>
    %132 = arith.addf %130, %131 : vector<8x128xf32>
    %133 = vector.extract_strided_slice %10 {offsets = [40, 0], sizes = [8, 128], strides = [1, 1]} : vector<64x128xf32> to vector<8x128xf32>
    %cst_37 = arith.constant dense<0.000000e+00> : vector<8x128xf32>
    %134 = tpu.matmul %127, %12, %cst_37 {dimension_numbers = #tpu.dot_dimension_numbers<[1], [0], [0], [1], [0, 0, 1, 1], [], []>} : vector<8x32xf32>, vector<32x128xf32>, vector<8x128xf32> -> vector<8x128xf32>
    %135 = arith.addf %133, %134 : vector<8x128xf32>
    %136 = vector.extract_strided_slice %132 {offsets = [0, 0], sizes = [8, 32], strides = [1, 1]} : vector<8x128xf32> to vector<8x32xf32>
    %137 = arith.negf %136 : vector<8x32xf32>
    %138 = math.exp %137 : vector<8x32xf32>
    %cst_38 = arith.constant 1.000000e+00 : f32
    %139 = vector.broadcast %cst_38 : f32 to vector<8x32xf32>
    %140 = arith.addf %139, %138 : vector<8x32xf32>
    %141 = arith.divf %139, %140 : vector<8x32xf32>
    %142 = vector.extract_strided_slice %132 {offsets = [0, 32], sizes = [8, 32], strides = [1, 1]} : vector<8x128xf32> to vector<8x32xf32>
    %143 = arith.negf %142 : vector<8x32xf32>
    %144 = math.exp %143 : vector<8x32xf32>
    %cst_39 = arith.constant 1.000000e+00 : f32
    %145 = vector.broadcast %cst_39 : f32 to vector<8x32xf32>
    %146 = arith.addf %145, %144 : vector<8x32xf32>
    %147 = arith.divf %145, %146 : vector<8x32xf32>
    %148 = vector.extract_strided_slice %132 {offsets = [0, 64], sizes = [8, 32], strides = [1, 1]} : vector<8x128xf32> to vector<8x32xf32>
    %149 = math.tanh %148 : vector<8x32xf32>
    %150 = vector.extract_strided_slice %132 {offsets = [0, 96], sizes = [8, 32], strides = [1, 1]} : vector<8x128xf32> to vector<8x32xf32>
    %151 = arith.negf %150 : vector<8x32xf32>
    %152 = math.exp %151 : vector<8x32xf32>
    %cst_40 = arith.constant 1.000000e+00 : f32
    %153 = vector.broadcast %cst_40 : f32 to vector<8x32xf32>
    %154 = arith.addf %153, %152 : vector<8x32xf32>
    %155 = arith.divf %153, %154 : vector<8x32xf32>
    %156 = arith.mulf %147, %100 : vector<8x32xf32>
    %157 = arith.mulf %141, %149 : vector<8x32xf32>
    %158 = arith.addf %156, %157 : vector<8x32xf32>
    %159 = math.tanh %158 : vector<8x32xf32>
    %160 = arith.mulf %155, %159 : vector<8x32xf32>
    %161 = vector.extract_strided_slice %135 {offsets = [0, 0], sizes = [8, 32], strides = [1, 1]} : vector<8x128xf32> to vector<8x32xf32>
    %162 = arith.negf %161 : vector<8x32xf32>
    %163 = math.exp %162 : vector<8x32xf32>
    %cst_41 = arith.constant 1.000000e+00 : f32
    %164 = vector.broadcast %cst_41 : f32 to vector<8x32xf32>
    %165 = arith.addf %164, %163 : vector<8x32xf32>
    %166 = arith.divf %164, %165 : vector<8x32xf32>
    %167 = vector.extract_strided_slice %135 {offsets = [0, 32], sizes = [8, 32], strides = [1, 1]} : vector<8x128xf32> to vector<8x32xf32>
    %168 = arith.negf %167 : vector<8x32xf32>
    %169 = math.exp %168 : vector<8x32xf32>
    %cst_42 = arith.constant 1.000000e+00 : f32
    %170 = vector.broadcast %cst_42 : f32 to vector<8x32xf32>
    %171 = arith.addf %170, %169 : vector<8x32xf32>
    %172 = arith.divf %170, %171 : vector<8x32xf32>
    %173 = vector.extract_strided_slice %135 {offsets = [0, 64], sizes = [8, 32], strides = [1, 1]} : vector<8x128xf32> to vector<8x32xf32>
    %174 = math.tanh %173 : vector<8x32xf32>
    %175 = vector.extract_strided_slice %135 {offsets = [0, 96], sizes = [8, 32], strides = [1, 1]} : vector<8x128xf32> to vector<8x32xf32>
    %176 = arith.negf %175 : vector<8x32xf32>
    %177 = math.exp %176 : vector<8x32xf32>
    %cst_43 = arith.constant 1.000000e+00 : f32
    %178 = vector.broadcast %cst_43 : f32 to vector<8x32xf32>
    %179 = arith.addf %178, %177 : vector<8x32xf32>
    %180 = arith.divf %178, %179 : vector<8x32xf32>
    %181 = arith.mulf %172, %125 : vector<8x32xf32>
    %182 = arith.mulf %166, %174 : vector<8x32xf32>
    %183 = arith.addf %181, %182 : vector<8x32xf32>
    %184 = math.tanh %183 : vector<8x32xf32>
    %185 = arith.mulf %180, %184 : vector<8x32xf32>
    %c16 = arith.constant 16 : index
    %c0_44 = arith.constant 0 : index
    %186 = vector.load %arg16[%c16, %c0_44] : memref<64x32xf32, #tpu.memory_space<vmem>>, vector<8x32xf32>
    tpu.vector_store %arg16[%c16, %c0_44], %160 {strides = array<i32>} : memref<64x32xf32, #tpu.memory_space<vmem>>, vector<8x32xf32>,
    %c40 = arith.constant 40 : index
    %c0_45 = arith.constant 0 : index
    %187 = vector.load %arg17[%c40, %c0_45] : memref<64x32xf32, #tpu.memory_space<vmem>>, vector<8x32xf32>
    tpu.vector_store %arg17[%c40, %c0_45], %185 {strides = array<i32>} : memref<64x32xf32, #tpu.memory_space<vmem>>, vector<8x32xf32>,
    %188 = vector.extract_strided_slice %5 {offsets = [24, 0], sizes = [8, 128], strides = [1, 1]} : vector<64x128xf32> to vector<8x128xf32>
    %cst_46 = arith.constant dense<0.000000e+00> : vector<8x128xf32>
    %189 = tpu.matmul %160, %11, %cst_46 {dimension_numbers = #tpu.dot_dimension_numbers<[1], [0], [0], [1], [0, 0, 1, 1], [], []>} : vector<8x32xf32>, vector<32x128xf32>, vector<8x128xf32> -> vector<8x128xf32>
    %190 = arith.addf %188, %189 : vector<8x128xf32>
    %191 = vector.extract_strided_slice %10 {offsets = [32, 0], sizes = [8, 128], strides = [1, 1]} : vector<64x128xf32> to vector<8x128xf32>
    %cst_47 = arith.constant dense<0.000000e+00> : vector<8x128xf32>
    %192 = tpu.matmul %185, %12, %cst_47 {dimension_numbers = #tpu.dot_dimension_numbers<[1], [0], [0], [1], [0, 0, 1, 1], [], []>} : vector<8x32xf32>, vector<32x128xf32>, vector<8x128xf32> -> vector<8x128xf32>
    %193 = arith.addf %191, %192 : vector<8x128xf32>
    %194 = vector.extract_strided_slice %190 {offsets = [0, 0], sizes = [8, 32], strides = [1, 1]} : vector<8x128xf32> to vector<8x32xf32>
    %195 = arith.negf %194 : vector<8x32xf32>
    %196 = math.exp %195 : vector<8x32xf32>
    %cst_48 = arith.constant 1.000000e+00 : f32
    %197 = vector.broadcast %cst_48 : f32 to vector<8x32xf32>
    %198 = arith.addf %197, %196 : vector<8x32xf32>
    %199 = arith.divf %197, %198 : vector<8x32xf32>
    %200 = vector.extract_strided_slice %190 {offsets = [0, 32], sizes = [8, 32], strides = [1, 1]} : vector<8x128xf32> to vector<8x32xf32>
    %201 = arith.negf %200 : vector<8x32xf32>
    %202 = math.exp %201 : vector<8x32xf32>
    %cst_49 = arith.constant 1.000000e+00 : f32
    %203 = vector.broadcast %cst_49 : f32 to vector<8x32xf32>
    %204 = arith.addf %203, %202 : vector<8x32xf32>
    %205 = arith.divf %203, %204 : vector<8x32xf32>
    %206 = vector.extract_strided_slice %190 {offsets = [0, 64], sizes = [8, 32], strides = [1, 1]} : vector<8x128xf32> to vector<8x32xf32>
    %207 = math.tanh %206 : vector<8x32xf32>
    %208 = vector.extract_strided_slice %190 {offsets = [0, 96], sizes = [8, 32], strides = [1, 1]} : vector<8x128xf32> to vector<8x32xf32>
    %209 = arith.negf %208 : vector<8x32xf32>
    %210 = math.exp %209 : vector<8x32xf32>
    %cst_50 = arith.constant 1.000000e+00 : f32
    %211 = vector.broadcast %cst_50 : f32 to vector<8x32xf32>
    %212 = arith.addf %211, %210 : vector<8x32xf32>
    %213 = arith.divf %211, %212 : vector<8x32xf32>
    %214 = arith.mulf %205, %158 : vector<8x32xf32>
    %215 = arith.mulf %199, %207 : vector<8x32xf32>
    %216 = arith.addf %214, %215 : vector<8x32xf32>
    %217 = math.tanh %216 : vector<8x32xf32>
    %218 = arith.mulf %213, %217 : vector<8x32xf32>
    %219 = vector.extract_strided_slice %193 {offsets = [0, 0], sizes = [8, 32], strides = [1, 1]} : vector<8x128xf32> to vector<8x32xf32>
    %220 = arith.negf %219 : vector<8x32xf32>
    %221 = math.exp %220 : vector<8x32xf32>
    %cst_51 = arith.constant 1.000000e+00 : f32
    %222 = vector.broadcast %cst_51 : f32 to vector<8x32xf32>
    %223 = arith.addf %222, %221 : vector<8x32xf32>
    %224 = arith.divf %222, %223 : vector<8x32xf32>
    %225 = vector.extract_strided_slice %193 {offsets = [0, 32], sizes = [8, 32], strides = [1, 1]} : vector<8x128xf32> to vector<8x32xf32>
    %226 = arith.negf %225 : vector<8x32xf32>
    %227 = math.exp %226 : vector<8x32xf32>
    %cst_52 = arith.constant 1.000000e+00 : f32
    %228 = vector.broadcast %cst_52 : f32 to vector<8x32xf32>
    %229 = arith.addf %228, %227 : vector<8x32xf32>
    %230 = arith.divf %228, %229 : vector<8x32xf32>
    %231 = vector.extract_strided_slice %193 {offsets = [0, 64], sizes = [8, 32], strides = [1, 1]} : vector<8x128xf32> to vector<8x32xf32>
    %232 = math.tanh %231 : vector<8x32xf32>
    %233 = vector.extract_strided_slice %193 {offsets = [0, 96], sizes = [8, 32], strides = [1, 1]} : vector<8x128xf32> to vector<8x32xf32>
    %234 = arith.negf %233 : vector<8x32xf32>
    %235 = math.exp %234 : vector<8x32xf32>
    %cst_53 = arith.constant 1.000000e+00 : f32
    %236 = vector.broadcast %cst_53 : f32 to vector<8x32xf32>
    %237 = arith.addf %236, %235 : vector<8x32xf32>
    %238 = arith.divf %236, %237 : vector<8x32xf32>
    %239 = arith.mulf %230, %183 : vector<8x32xf32>
    %240 = arith.mulf %224, %232 : vector<8x32xf32>
    %241 = arith.addf %239, %240 : vector<8x32xf32>
    %242 = math.tanh %241 : vector<8x32xf32>
    %243 = arith.mulf %238, %242 : vector<8x32xf32>
    %c24 = arith.constant 24 : index
    %c0_54 = arith.constant 0 : index
    %244 = vector.load %arg16[%c24, %c0_54] : memref<64x32xf32, #tpu.memory_space<vmem>>, vector<8x32xf32>
    tpu.vector_store %arg16[%c24, %c0_54], %218 {strides = array<i32>} : memref<64x32xf32, #tpu.memory_space<vmem>>, vector<8x32xf32>,
    %c32 = arith.constant 32 : index
    %c0_55 = arith.constant 0 : index
    %245 = vector.load %arg17[%c32, %c0_55] : memref<64x32xf32, #tpu.memory_space<vmem>>, vector<8x32xf32>
    tpu.vector_store %arg17[%c32, %c0_55], %243 {strides = array<i32>} : memref<64x32xf32, #tpu.memory_space<vmem>>, vector<8x32xf32>,
    %246 = vector.extract_strided_slice %5 {offsets = [32, 0], sizes = [8, 128], strides = [1, 1]} : vector<64x128xf32> to vector<8x128xf32>
    %cst_56 = arith.constant dense<0.000000e+00> : vector<8x128xf32>
    %247 = tpu.matmul %218, %11, %cst_56 {dimension_numbers = #tpu.dot_dimension_numbers<[1], [0], [0], [1], [0, 0, 1, 1], [], []>} : vector<8x32xf32>, vector<32x128xf32>, vector<8x128xf32> -> vector<8x128xf32>
    %248 = arith.addf %246, %247 : vector<8x128xf32>
    %249 = vector.extract_strided_slice %10 {offsets = [24, 0], sizes = [8, 128], strides = [1, 1]} : vector<64x128xf32> to vector<8x128xf32>
    %cst_57 = arith.constant dense<0.000000e+00> : vector<8x128xf32>
    %250 = tpu.matmul %243, %12, %cst_57 {dimension_numbers = #tpu.dot_dimension_numbers<[1], [0], [0], [1], [0, 0, 1, 1], [], []>} : vector<8x32xf32>, vector<32x128xf32>, vector<8x128xf32> -> vector<8x128xf32>
    %251 = arith.addf %249, %250 : vector<8x128xf32>
    %252 = vector.extract_strided_slice %248 {offsets = [0, 0], sizes = [8, 32], strides = [1, 1]} : vector<8x128xf32> to vector<8x32xf32>
    %253 = arith.negf %252 : vector<8x32xf32>
    %254 = math.exp %253 : vector<8x32xf32>
    %cst_58 = arith.constant 1.000000e+00 : f32
    %255 = vector.broadcast %cst_58 : f32 to vector<8x32xf32>
    %256 = arith.addf %255, %254 : vector<8x32xf32>
    %257 = arith.divf %255, %256 : vector<8x32xf32>
    %258 = vector.extract_strided_slice %248 {offsets = [0, 32], sizes = [8, 32], strides = [1, 1]} : vector<8x128xf32> to vector<8x32xf32>
    %259 = arith.negf %258 : vector<8x32xf32>
    %260 = math.exp %259 : vector<8x32xf32>
    %cst_59 = arith.constant 1.000000e+00 : f32
    %261 = vector.broadcast %cst_59 : f32 to vector<8x32xf32>
    %262 = arith.addf %261, %260 : vector<8x32xf32>
    %263 = arith.divf %261, %262 : vector<8x32xf32>
    %264 = vector.extract_strided_slice %248 {offsets = [0, 64], sizes = [8, 32], strides = [1, 1]} : vector<8x128xf32> to vector<8x32xf32>
    %265 = math.tanh %264 : vector<8x32xf32>
    %266 = vector.extract_strided_slice %248 {offsets = [0, 96], sizes = [8, 32], strides = [1, 1]} : vector<8x128xf32> to vector<8x32xf32>
    %267 = arith.negf %266 : vector<8x32xf32>
    %268 = math.exp %267 : vector<8x32xf32>
    %cst_60 = arith.constant 1.000000e+00 : f32
    %269 = vector.broadcast %cst_60 : f32 to vector<8x32xf32>
    %270 = arith.addf %269, %268 : vector<8x32xf32>
    %271 = arith.divf %269, %270 : vector<8x32xf32>
    %272 = arith.mulf %263, %216 : vector<8x32xf32>
    %273 = arith.mulf %257, %265 : vector<8x32xf32>
    %274 = arith.addf %272, %273 : vector<8x32xf32>
    %275 = math.tanh %274 : vector<8x32xf32>
    %276 = arith.mulf %271, %275 : vector<8x32xf32>
    %277 = vector.extract_strided_slice %251 {offsets = [0, 0], sizes = [8, 32], strides = [1, 1]} : vector<8x128xf32> to vector<8x32xf32>
    %278 = arith.negf %277 : vector<8x32xf32>
    %279 = math.exp %278 : vector<8x32xf32>
    %cst_61 = arith.constant 1.000000e+00 : f32
    %280 = vector.broadcast %cst_61 : f32 to vector<8x32xf32>
    %281 = arith.addf %280, %279 : vector<8x32xf32>
    %282 = arith.divf %280, %281 : vector<8x32xf32>
    %283 = vector.extract_strided_slice %251 {offsets = [0, 32], sizes = [8, 32], strides = [1, 1]} : vector<8x128xf32> to vector<8x32xf32>
    %284 = arith.negf %283 : vector<8x32xf32>
    %285 = math.exp %284 : vector<8x32xf32>
    %cst_62 = arith.constant 1.000000e+00 : f32
    %286 = vector.broadcast %cst_62 : f32 to vector<8x32xf32>
    %287 = arith.addf %286, %285 : vector<8x32xf32>
    %288 = arith.divf %286, %287 : vector<8x32xf32>
    %289 = vector.extract_strided_slice %251 {offsets = [0, 64], sizes = [8, 32], strides = [1, 1]} : vector<8x128xf32> to vector<8x32xf32>
    %290 = math.tanh %289 : vector<8x32xf32>
    %291 = vector.extract_strided_slice %251 {offsets = [0, 96], sizes = [8, 32], strides = [1, 1]} : vector<8x128xf32> to vector<8x32xf32>
    %292 = arith.negf %291 : vector<8x32xf32>
    %293 = math.exp %292 : vector<8x32xf32>
    %cst_63 = arith.constant 1.000000e+00 : f32
    %294 = vector.broadcast %cst_63 : f32 to vector<8x32xf32>
    %295 = arith.addf %294, %293 : vector<8x32xf32>
    %296 = arith.divf %294, %295 : vector<8x32xf32>
    %297 = arith.mulf %288, %241 : vector<8x32xf32>
    %298 = arith.mulf %282, %290 : vector<8x32xf32>
    %299 = arith.addf %297, %298 : vector<8x32xf32>
    %300 = math.tanh %299 : vector<8x32xf32>
    %301 = arith.mulf %296, %300 : vector<8x32xf32>
    %c32_64 = arith.constant 32 : index
    %c0_65 = arith.constant 0 : index
    %302 = vector.load %arg16[%c32_64, %c0_65] : memref<64x32xf32, #tpu.memory_space<vmem>>, vector<8x32xf32>
    tpu.vector_store %arg16[%c32_64, %c0_65], %276 {strides = array<i32>} : memref<64x32xf32, #tpu.memory_space<vmem>>, vector<8x32xf32>,
    %c24_66 = arith.constant 24 : index
    %c0_67 = arith.constant 0 : index
    %303 = vector.load %arg17[%c24_66, %c0_67] : memref<64x32xf32, #tpu.memory_space<vmem>>, vector<8x32xf32>
    tpu.vector_store %arg17[%c24_66, %c0_67], %301 {strides = array<i32>} : memref<64x32xf32, #tpu.memory_space<vmem>>, vector<8x32xf32>,
    %304 = vector.extract_strided_slice %5 {offsets = [40, 0], sizes = [8, 128], strides = [1, 1]} : vector<64x128xf32> to vector<8x128xf32>
    %cst_68 = arith.constant dense<0.000000e+00> : vector<8x128xf32>
    %305 = tpu.matmul %276, %11, %cst_68 {dimension_numbers = #tpu.dot_dimension_numbers<[1], [0], [0], [1], [0, 0, 1, 1], [], []>} : vector<8x32xf32>, vector<32x128xf32>, vector<8x128xf32> -> vector<8x128xf32>
    %306 = arith.addf %304, %305 : vector<8x128xf32>
    %307 = vector.extract_strided_slice %10 {offsets = [16, 0], sizes = [8, 128], strides = [1, 1]} : vector<64x128xf32> to vector<8x128xf32>
    %cst_69 = arith.constant dense<0.000000e+00> : vector<8x128xf32>
    %308 = tpu.matmul %301, %12, %cst_69 {dimension_numbers = #tpu.dot_dimension_numbers<[1], [0], [0], [1], [0, 0, 1, 1], [], []>} : vector<8x32xf32>, vector<32x128xf32>, vector<8x128xf32> -> vector<8x128xf32>
    %309 = arith.addf %307, %308 : vector<8x128xf32>
    %310 = vector.extract_strided_slice %306 {offsets = [0, 0], sizes = [8, 32], strides = [1, 1]} : vector<8x128xf32> to vector<8x32xf32>
    %311 = arith.negf %310 : vector<8x32xf32>
    %312 = math.exp %311 : vector<8x32xf32>
    %cst_70 = arith.constant 1.000000e+00 : f32
    %313 = vector.broadcast %cst_70 : f32 to vector<8x32xf32>
    %314 = arith.addf %313, %312 : vector<8x32xf32>
    %315 = arith.divf %313, %314 : vector<8x32xf32>
    %316 = vector.extract_strided_slice %306 {offsets = [0, 32], sizes = [8, 32], strides = [1, 1]} : vector<8x128xf32> to vector<8x32xf32>
    %317 = arith.negf %316 : vector<8x32xf32>
    %318 = math.exp %317 : vector<8x32xf32>
    %cst_71 = arith.constant 1.000000e+00 : f32
    %319 = vector.broadcast %cst_71 : f32 to vector<8x32xf32>
    %320 = arith.addf %319, %318 : vector<8x32xf32>
    %321 = arith.divf %319, %320 : vector<8x32xf32>
    %322 = vector.extract_strided_slice %306 {offsets = [0, 64], sizes = [8, 32], strides = [1, 1]} : vector<8x128xf32> to vector<8x32xf32>
    %323 = math.tanh %322 : vector<8x32xf32>
    %324 = vector.extract_strided_slice %306 {offsets = [0, 96], sizes = [8, 32], strides = [1, 1]} : vector<8x128xf32> to vector<8x32xf32>
    %325 = arith.negf %324 : vector<8x32xf32>
    %326 = math.exp %325 : vector<8x32xf32>
    %cst_72 = arith.constant 1.000000e+00 : f32
    %327 = vector.broadcast %cst_72 : f32 to vector<8x32xf32>
    %328 = arith.addf %327, %326 : vector<8x32xf32>
    %329 = arith.divf %327, %328 : vector<8x32xf32>
    %330 = arith.mulf %321, %274 : vector<8x32xf32>
    %331 = arith.mulf %315, %323 : vector<8x32xf32>
    %332 = arith.addf %330, %331 : vector<8x32xf32>
    %333 = math.tanh %332 : vector<8x32xf32>
    %334 = arith.mulf %329, %333 : vector<8x32xf32>
    %335 = vector.extract_strided_slice %309 {offsets = [0, 0], sizes = [8, 32], strides = [1, 1]} : vector<8x128xf32> to vector<8x32xf32>
    %336 = arith.negf %335 : vector<8x32xf32>
    %337 = math.exp %336 : vector<8x32xf32>
    %cst_73 = arith.constant 1.000000e+00 : f32
    %338 = vector.broadcast %cst_73 : f32 to vector<8x32xf32>
    %339 = arith.addf %338, %337 : vector<8x32xf32>
    %340 = arith.divf %338, %339 : vector<8x32xf32>
    %341 = vector.extract_strided_slice %309 {offsets = [0, 32], sizes = [8, 32], strides = [1, 1]} : vector<8x128xf32> to vector<8x32xf32>
    %342 = arith.negf %341 : vector<8x32xf32>
    %343 = math.exp %342 : vector<8x32xf32>
    %cst_74 = arith.constant 1.000000e+00 : f32
    %344 = vector.broadcast %cst_74 : f32 to vector<8x32xf32>
    %345 = arith.addf %344, %343 : vector<8x32xf32>
    %346 = arith.divf %344, %345 : vector<8x32xf32>
    %347 = vector.extract_strided_slice %309 {offsets = [0, 64], sizes = [8, 32], strides = [1, 1]} : vector<8x128xf32> to vector<8x32xf32>
    %348 = math.tanh %347 : vector<8x32xf32>
    %349 = vector.extract_strided_slice %309 {offsets = [0, 96], sizes = [8, 32], strides = [1, 1]} : vector<8x128xf32> to vector<8x32xf32>
    %350 = arith.negf %349 : vector<8x32xf32>
    %351 = math.exp %350 : vector<8x32xf32>
    %cst_75 = arith.constant 1.000000e+00 : f32
    %352 = vector.broadcast %cst_75 : f32 to vector<8x32xf32>
    %353 = arith.addf %352, %351 : vector<8x32xf32>
    %354 = arith.divf %352, %353 : vector<8x32xf32>
    %355 = arith.mulf %346, %299 : vector<8x32xf32>
    %356 = arith.mulf %340, %348 : vector<8x32xf32>
    %357 = arith.addf %355, %356 : vector<8x32xf32>
    %358 = math.tanh %357 : vector<8x32xf32>
    %359 = arith.mulf %354, %358 : vector<8x32xf32>
    %c40_76 = arith.constant 40 : index
    %c0_77 = arith.constant 0 : index
    %360 = vector.load %arg16[%c40_76, %c0_77] : memref<64x32xf32, #tpu.memory_space<vmem>>, vector<8x32xf32>
    tpu.vector_store %arg16[%c40_76, %c0_77], %334 {strides = array<i32>} : memref<64x32xf32, #tpu.memory_space<vmem>>, vector<8x32xf32>,
    %c16_78 = arith.constant 16 : index
    %c0_79 = arith.constant 0 : index
    %361 = vector.load %arg17[%c16_78, %c0_79] : memref<64x32xf32, #tpu.memory_space<vmem>>, vector<8x32xf32>
    tpu.vector_store %arg17[%c16_78, %c0_79], %359 {strides = array<i32>} : memref<64x32xf32, #tpu.memory_space<vmem>>, vector<8x32xf32>,
    %362 = vector.extract_strided_slice %5 {offsets = [48, 0], sizes = [8, 128], strides = [1, 1]} : vector<64x128xf32> to vector<8x128xf32>
    %cst_80 = arith.constant dense<0.000000e+00> : vector<8x128xf32>
    %363 = tpu.matmul %334, %11, %cst_80 {dimension_numbers = #tpu.dot_dimension_numbers<[1], [0], [0], [1], [0, 0, 1, 1], [], []>} : vector<8x32xf32>, vector<32x128xf32>, vector<8x128xf32> -> vector<8x128xf32>
    %364 = arith.addf %362, %363 : vector<8x128xf32>
    %365 = vector.extract_strided_slice %10 {offsets = [8, 0], sizes = [8, 128], strides = [1, 1]} : vector<64x128xf32> to vector<8x128xf32>
    %cst_81 = arith.constant dense<0.000000e+00> : vector<8x128xf32>
    %366 = tpu.matmul %359, %12, %cst_81 {dimension_numbers = #tpu.dot_dimension_numbers<[1], [0], [0], [1], [0, 0, 1, 1], [], []>} : vector<8x32xf32>, vector<32x128xf32>, vector<8x128xf32> -> vector<8x128xf32>
    %367 = arith.addf %365, %366 : vector<8x128xf32>
    %368 = vector.extract_strided_slice %364 {offsets = [0, 0], sizes = [8, 32], strides = [1, 1]} : vector<8x128xf32> to vector<8x32xf32>
    %369 = arith.negf %368 : vector<8x32xf32>
    %370 = math.exp %369 : vector<8x32xf32>
    %cst_82 = arith.constant 1.000000e+00 : f32
    %371 = vector.broadcast %cst_82 : f32 to vector<8x32xf32>
    %372 = arith.addf %371, %370 : vector<8x32xf32>
    %373 = arith.divf %371, %372 : vector<8x32xf32>
    %374 = vector.extract_strided_slice %364 {offsets = [0, 32], sizes = [8, 32], strides = [1, 1]} : vector<8x128xf32> to vector<8x32xf32>
    %375 = arith.negf %374 : vector<8x32xf32>
    %376 = math.exp %375 : vector<8x32xf32>
    %cst_83 = arith.constant 1.000000e+00 : f32
    %377 = vector.broadcast %cst_83 : f32 to vector<8x32xf32>
    %378 = arith.addf %377, %376 : vector<8x32xf32>
    %379 = arith.divf %377, %378 : vector<8x32xf32>
    %380 = vector.extract_strided_slice %364 {offsets = [0, 64], sizes = [8, 32], strides = [1, 1]} : vector<8x128xf32> to vector<8x32xf32>
    %381 = math.tanh %380 : vector<8x32xf32>
    %382 = vector.extract_strided_slice %364 {offsets = [0, 96], sizes = [8, 32], strides = [1, 1]} : vector<8x128xf32> to vector<8x32xf32>
    %383 = arith.negf %382 : vector<8x32xf32>
    %384 = math.exp %383 : vector<8x32xf32>
    %cst_84 = arith.constant 1.000000e+00 : f32
    %385 = vector.broadcast %cst_84 : f32 to vector<8x32xf32>
    %386 = arith.addf %385, %384 : vector<8x32xf32>
    %387 = arith.divf %385, %386 : vector<8x32xf32>
    %388 = arith.mulf %379, %332 : vector<8x32xf32>
    %389 = arith.mulf %373, %381 : vector<8x32xf32>
    %390 = arith.addf %388, %389 : vector<8x32xf32>
    %391 = math.tanh %390 : vector<8x32xf32>
    %392 = arith.mulf %387, %391 : vector<8x32xf32>
    %393 = vector.extract_strided_slice %367 {offsets = [0, 0], sizes = [8, 32], strides = [1, 1]} : vector<8x128xf32> to vector<8x32xf32>
    %394 = arith.negf %393 : vector<8x32xf32>
    %395 = math.exp %394 : vector<8x32xf32>
    %cst_85 = arith.constant 1.000000e+00 : f32
    %396 = vector.broadcast %cst_85 : f32 to vector<8x32xf32>
    %397 = arith.addf %396, %395 : vector<8x32xf32>
    %398 = arith.divf %396, %397 : vector<8x32xf32>
    %399 = vector.extract_strided_slice %367 {offsets = [0, 32], sizes = [8, 32], strides = [1, 1]} : vector<8x128xf32> to vector<8x32xf32>
    %400 = arith.negf %399 : vector<8x32xf32>
    %401 = math.exp %400 : vector<8x32xf32>
    %cst_86 = arith.constant 1.000000e+00 : f32
    %402 = vector.broadcast %cst_86 : f32 to vector<8x32xf32>
    %403 = arith.addf %402, %401 : vector<8x32xf32>
    %404 = arith.divf %402, %403 : vector<8x32xf32>
    %405 = vector.extract_strided_slice %367 {offsets = [0, 64], sizes = [8, 32], strides = [1, 1]} : vector<8x128xf32> to vector<8x32xf32>
    %406 = math.tanh %405 : vector<8x32xf32>
    %407 = vector.extract_strided_slice %367 {offsets = [0, 96], sizes = [8, 32], strides = [1, 1]} : vector<8x128xf32> to vector<8x32xf32>
    %408 = arith.negf %407 : vector<8x32xf32>
    %409 = math.exp %408 : vector<8x32xf32>
    %cst_87 = arith.constant 1.000000e+00 : f32
    %410 = vector.broadcast %cst_87 : f32 to vector<8x32xf32>
    %411 = arith.addf %410, %409 : vector<8x32xf32>
    %412 = arith.divf %410, %411 : vector<8x32xf32>
    %413 = arith.mulf %404, %357 : vector<8x32xf32>
    %414 = arith.mulf %398, %406 : vector<8x32xf32>
    %415 = arith.addf %413, %414 : vector<8x32xf32>
    %416 = math.tanh %415 : vector<8x32xf32>
    %417 = arith.mulf %412, %416 : vector<8x32xf32>
    %c48_88 = arith.constant 48 : index
    %c0_89 = arith.constant 0 : index
    %418 = vector.load %arg16[%c48_88, %c0_89] : memref<64x32xf32, #tpu.memory_space<vmem>>, vector<8x32xf32>
    tpu.vector_store %arg16[%c48_88, %c0_89], %392 {strides = array<i32>} : memref<64x32xf32, #tpu.memory_space<vmem>>, vector<8x32xf32>,
    %c8_90 = arith.constant 8 : index
    %c0_91 = arith.constant 0 : index
    %419 = vector.load %arg17[%c8_90, %c0_91] : memref<64x32xf32, #tpu.memory_space<vmem>>, vector<8x32xf32>
    tpu.vector_store %arg17[%c8_90, %c0_91], %417 {strides = array<i32>} : memref<64x32xf32, #tpu.memory_space<vmem>>, vector<8x32xf32>,
    %420 = vector.extract_strided_slice %5 {offsets = [56, 0], sizes = [8, 128], strides = [1, 1]} : vector<64x128xf32> to vector<8x128xf32>
    %cst_92 = arith.constant dense<0.000000e+00> : vector<8x128xf32>
    %421 = tpu.matmul %392, %11, %cst_92 {dimension_numbers = #tpu.dot_dimension_numbers<[1], [0], [0], [1], [0, 0, 1, 1], [], []>} : vector<8x32xf32>, vector<32x128xf32>, vector<8x128xf32> -> vector<8x128xf32>
    %422 = arith.addf %420, %421 : vector<8x128xf32>
    %423 = vector.extract_strided_slice %10 {offsets = [0, 0], sizes = [8, 128], strides = [1, 1]} : vector<64x128xf32> to vector<8x128xf32>
    %cst_93 = arith.constant dense<0.000000e+00> : vector<8x128xf32>
    %424 = tpu.matmul %417, %12, %cst_93 {dimension_numbers = #tpu.dot_dimension_numbers<[1], [0], [0], [1], [0, 0, 1, 1], [], []>} : vector<8x32xf32>, vector<32x128xf32>, vector<8x128xf32> -> vector<8x128xf32>
    %425 = arith.addf %423, %424 : vector<8x128xf32>
    %426 = vector.extract_strided_slice %422 {offsets = [0, 0], sizes = [8, 32], strides = [1, 1]} : vector<8x128xf32> to vector<8x32xf32>
    %427 = arith.negf %426 : vector<8x32xf32>
    %428 = math.exp %427 : vector<8x32xf32>
    %cst_94 = arith.constant 1.000000e+00 : f32
    %429 = vector.broadcast %cst_94 : f32 to vector<8x32xf32>
    %430 = arith.addf %429, %428 : vector<8x32xf32>
    %431 = arith.divf %429, %430 : vector<8x32xf32>
    %432 = vector.extract_strided_slice %422 {offsets = [0, 32], sizes = [8, 32], strides = [1, 1]} : vector<8x128xf32> to vector<8x32xf32>
    %433 = arith.negf %432 : vector<8x32xf32>
    %434 = math.exp %433 : vector<8x32xf32>
    %cst_95 = arith.constant 1.000000e+00 : f32
    %435 = vector.broadcast %cst_95 : f32 to vector<8x32xf32>
    %436 = arith.addf %435, %434 : vector<8x32xf32>
    %437 = arith.divf %435, %436 : vector<8x32xf32>
    %438 = vector.extract_strided_slice %422 {offsets = [0, 64], sizes = [8, 32], strides = [1, 1]} : vector<8x128xf32> to vector<8x32xf32>
    %439 = math.tanh %438 : vector<8x32xf32>
    %440 = vector.extract_strided_slice %422 {offsets = [0, 96], sizes = [8, 32], strides = [1, 1]} : vector<8x128xf32> to vector<8x32xf32>
    %441 = arith.negf %440 : vector<8x32xf32>
    %442 = math.exp %441 : vector<8x32xf32>
    %cst_96 = arith.constant 1.000000e+00 : f32
    %443 = vector.broadcast %cst_96 : f32 to vector<8x32xf32>
    %444 = arith.addf %443, %442 : vector<8x32xf32>
    %445 = arith.divf %443, %444 : vector<8x32xf32>
    %446 = arith.mulf %437, %390 : vector<8x32xf32>
    %447 = arith.mulf %431, %439 : vector<8x32xf32>
    %448 = arith.addf %446, %447 : vector<8x32xf32>
    %449 = math.tanh %448 : vector<8x32xf32>
    %450 = arith.mulf %445, %449 : vector<8x32xf32>
    %451 = vector.extract_strided_slice %425 {offsets = [0, 0], sizes = [8, 32], strides = [1, 1]} : vector<8x128xf32> to vector<8x32xf32>
    %452 = arith.negf %451 : vector<8x32xf32>
    %453 = math.exp %452 : vector<8x32xf32>
    %cst_97 = arith.constant 1.000000e+00 : f32
    %454 = vector.broadcast %cst_97 : f32 to vector<8x32xf32>
    %455 = arith.addf %454, %453 : vector<8x32xf32>
    %456 = arith.divf %454, %455 : vector<8x32xf32>
    %457 = vector.extract_strided_slice %425 {offsets = [0, 32], sizes = [8, 32], strides = [1, 1]} : vector<8x128xf32> to vector<8x32xf32>
    %458 = arith.negf %457 : vector<8x32xf32>
    %459 = math.exp %458 : vector<8x32xf32>
    %cst_98 = arith.constant 1.000000e+00 : f32
    %460 = vector.broadcast %cst_98 : f32 to vector<8x32xf32>
    %461 = arith.addf %460, %459 : vector<8x32xf32>
    %462 = arith.divf %460, %461 : vector<8x32xf32>
    %463 = vector.extract_strided_slice %425 {offsets = [0, 64], sizes = [8, 32], strides = [1, 1]} : vector<8x128xf32> to vector<8x32xf32>
    %464 = math.tanh %463 : vector<8x32xf32>
    %465 = vector.extract_strided_slice %425 {offsets = [0, 96], sizes = [8, 32], strides = [1, 1]} : vector<8x128xf32> to vector<8x32xf32>
    %466 = arith.negf %465 : vector<8x32xf32>
    %467 = math.exp %466 : vector<8x32xf32>
    %cst_99 = arith.constant 1.000000e+00 : f32
    %468 = vector.broadcast %cst_99 : f32 to vector<8x32xf32>
    %469 = arith.addf %468, %467 : vector<8x32xf32>
    %470 = arith.divf %468, %469 : vector<8x32xf32>
    %471 = arith.mulf %462, %415 : vector<8x32xf32>
    %472 = arith.mulf %456, %464 : vector<8x32xf32>
    %473 = arith.addf %471, %472 : vector<8x32xf32>
    %474 = math.tanh %473 : vector<8x32xf32>
    %475 = arith.mulf %470, %474 : vector<8x32xf32>
    %c56_100 = arith.constant 56 : index
    %c0_101 = arith.constant 0 : index
    %476 = vector.load %arg16[%c56_100, %c0_101] : memref<64x32xf32, #tpu.memory_space<vmem>>, vector<8x32xf32>
    tpu.vector_store %arg16[%c56_100, %c0_101], %450 {strides = array<i32>} : memref<64x32xf32, #tpu.memory_space<vmem>>, vector<8x32xf32>,
    %c0_102 = arith.constant 0 : index
    %c0_103 = arith.constant 0 : index
    %477 = vector.load %arg17[%c0_102, %c0_103] : memref<64x32xf32, #tpu.memory_space<vmem>>, vector<8x32xf32>
    tpu.vector_store %arg17[%c0_102, %c0_103], %475 {strides = array<i32>} : memref<64x32xf32, #tpu.memory_space<vmem>>, vector<8x32xf32>,
    %c0_104 = arith.constant 0 : index
    %c0_105 = arith.constant 0 : index
    %478 = vector.load %arg16[%c0_104, %c0_105] : memref<64x32xf32, #tpu.memory_space<vmem>>, vector<64x32xf32>
    %c0_106 = arith.constant 0 : index
    %c0_107 = arith.constant 0 : index
    %479 = vector.load %arg17[%c0_106, %c0_107] : memref<64x32xf32, #tpu.memory_space<vmem>>, vector<64x32xf32>
    %c0_108 = arith.constant 0 : index
    %c0_109 = arith.constant 0 : index
    %480 = vector.load %arg7[%c0_108, %c0_109] : memref<64x128xf32, #tpu.memory_space<vmem>>, vector<64x128xf32>
    %c0_110 = arith.constant 0 : index
    %c0_111 = arith.constant 0 : index
    %481 = vector.load %arg10[%c0_110, %c0_111] : memref<64x128xf32, #tpu.memory_space<vmem>>, vector<64x128xf32>
    %482 = vector.extract_strided_slice %480 {offsets = [0, 0], sizes = [32, 128], strides = [1, 1]} : vector<64x128xf32> to vector<32x128xf32>
    %cst_112 = arith.constant dense<0.000000e+00> : vector<64x128xf32>
    %483 = tpu.matmul %478, %482, %cst_112 {dimension_numbers = #tpu.dot_dimension_numbers<[1], [0], [0], [1], [0, 0, 1, 1], [], []>} : vector<64x32xf32>, vector<32x128xf32>, vector<64x128xf32> -> vector<64x128xf32>
    %484 = vector.extract_strided_slice %480 {offsets = [32, 0], sizes = [32, 128], strides = [1, 1]} : vector<64x128xf32> to vector<32x128xf32>
    %cst_113 = arith.constant dense<0.000000e+00> : vector<64x128xf32>
    %485 = tpu.matmul %479, %484, %cst_113 {dimension_numbers = #tpu.dot_dimension_numbers<[1], [0], [0], [1], [0, 0, 1, 1], [], []>} : vector<64x32xf32>, vector<32x128xf32>, vector<64x128xf32> -> vector<64x128xf32>
    %486 = arith.addf %483, %485 : vector<64x128xf32>
    %c0_114 = arith.constant 0 : index
    %c0_115 = arith.constant 0 : index
    %487 = vector.load %arg9[%c0_114, %c0_115] : memref<1x128xf32, #tpu.memory_space<vmem>>, vector<1x128xf32>
    %488 = vector.broadcast %487 : vector<1x128xf32> to vector<64x128xf32>
    %489 = arith.addf %486, %488 : vector<64x128xf32>
    %490 = vector.extract_strided_slice %481 {offsets = [0, 0], sizes = [32, 128], strides = [1, 1]} : vector<64x128xf32> to vector<32x128xf32>
    %cst_116 = arith.constant dense<0.000000e+00> : vector<64x128xf32>
    %491 = tpu.matmul %478, %490, %cst_116 {dimension_numbers = #tpu.dot_dimension_numbers<[1], [0], [0], [1], [0, 0, 1, 1], [], []>} : vector<64x32xf32>, vector<32x128xf32>, vector<64x128xf32> -> vector<64x128xf32>
    %492 = vector.extract_strided_slice %481 {offsets = [32, 0], sizes = [32, 128], strides = [1, 1]} : vector<64x128xf32> to vector<32x128xf32>
    %cst_117 = arith.constant dense<0.000000e+00> : vector<64x128xf32>
    %493 = tpu.matmul %479, %492, %cst_117 {dimension_numbers = #tpu.dot_dimension_numbers<[1], [0], [0], [1], [0, 0, 1, 1], [], []>} : vector<64x32xf32>, vector<32x128xf32>, vector<64x128xf32> -> vector<64x128xf32>
    %494 = arith.addf %491, %493 : vector<64x128xf32>
    %c0_118 = arith.constant 0 : index
    %c0_119 = arith.constant 0 : index
    %495 = vector.load %arg12[%c0_118, %c0_119] : memref<1x128xf32, #tpu.memory_space<vmem>>, vector<1x128xf32>
    %496 = vector.broadcast %495 : vector<1x128xf32> to vector<64x128xf32>
    %497 = arith.addf %494, %496 : vector<64x128xf32>
    %c0_120 = arith.constant 0 : index
    %c0_121 = arith.constant 0 : index
    %498 = vector.load %arg8[%c0_120, %c0_121] : memref<32x128xf32, #tpu.memory_space<vmem>>, vector<32x128xf32>
    %c0_122 = arith.constant 0 : index
    %c0_123 = arith.constant 0 : index
    %499 = vector.load %arg11[%c0_122, %c0_123] : memref<32x128xf32, #tpu.memory_space<vmem>>, vector<32x128xf32>
    %cst_124 = arith.constant 0.000000e+00 : f32
    %500 = vector.broadcast %cst_124 : f32 to vector<8x32xf32>
    %501 = vector.extract_strided_slice %489 {offsets = [0, 0], sizes = [8, 128], strides = [1, 1]} : vector<64x128xf32> to vector<8x128xf32>
    %cst_125 = arith.constant dense<0.000000e+00> : vector<8x128xf32>
    %502 = tpu.matmul %500, %498, %cst_125 {dimension_numbers = #tpu.dot_dimension_numbers<[1], [0], [0], [1], [0, 0, 1, 1], [], []>} : vector<8x32xf32>, vector<32x128xf32>, vector<8x128xf32> -> vector<8x128xf32>
    %503 = arith.addf %501, %502 : vector<8x128xf32>
    %504 = vector.extract_strided_slice %497 {offsets = [56, 0], sizes = [8, 128], strides = [1, 1]} : vector<64x128xf32> to vector<8x128xf32>
    %cst_126 = arith.constant dense<0.000000e+00> : vector<8x128xf32>
    %505 = tpu.matmul %500, %499, %cst_126 {dimension_numbers = #tpu.dot_dimension_numbers<[1], [0], [0], [1], [0, 0, 1, 1], [], []>} : vector<8x32xf32>, vector<32x128xf32>, vector<8x128xf32> -> vector<8x128xf32>
    %506 = arith.addf %504, %505 : vector<8x128xf32>
    %507 = vector.extract_strided_slice %503 {offsets = [0, 0], sizes = [8, 32], strides = [1, 1]} : vector<8x128xf32> to vector<8x32xf32>
    %508 = arith.negf %507 : vector<8x32xf32>
    %509 = math.exp %508 : vector<8x32xf32>
    %cst_127 = arith.constant 1.000000e+00 : f32
    %510 = vector.broadcast %cst_127 : f32 to vector<8x32xf32>
    %511 = arith.addf %510, %509 : vector<8x32xf32>
    %512 = arith.divf %510, %511 : vector<8x32xf32>
    %513 = vector.extract_strided_slice %503 {offsets = [0, 32], sizes = [8, 32], strides = [1, 1]} : vector<8x128xf32> to vector<8x32xf32>
    %514 = arith.negf %513 : vector<8x32xf32>
    %515 = math.exp %514 : vector<8x32xf32>
    %cst_128 = arith.constant 1.000000e+00 : f32
    %516 = vector.broadcast %cst_128 : f32 to vector<8x32xf32>
    %517 = arith.addf %516, %515 : vector<8x32xf32>
    %518 = arith.divf %516, %517 : vector<8x32xf32>
    %519 = vector.extract_strided_slice %503 {offsets = [0, 64], sizes = [8, 32], strides = [1, 1]} : vector<8x128xf32> to vector<8x32xf32>
    %520 = math.tanh %519 : vector<8x32xf32>
    %521 = vector.extract_strided_slice %503 {offsets = [0, 96], sizes = [8, 32], strides = [1, 1]} : vector<8x128xf32> to vector<8x32xf32>
    %522 = arith.negf %521 : vector<8x32xf32>
    %523 = math.exp %522 : vector<8x32xf32>
    %cst_129 = arith.constant 1.000000e+00 : f32
    %524 = vector.broadcast %cst_129 : f32 to vector<8x32xf32>
    %525 = arith.addf %524, %523 : vector<8x32xf32>
    %526 = arith.divf %524, %525 : vector<8x32xf32>
    %527 = arith.mulf %518, %500 : vector<8x32xf32>
    %528 = arith.mulf %512, %520 : vector<8x32xf32>
    %529 = arith.addf %527, %528 : vector<8x32xf32>
    %530 = math.tanh %529 : vector<8x32xf32>
    %531 = arith.mulf %526, %530 : vector<8x32xf32>
    %532 = vector.extract_strided_slice %506 {offsets = [0, 0], sizes = [8, 32], strides = [1, 1]} : vector<8x128xf32> to vector<8x32xf32>
    %533 = arith.negf %532 : vector<8x32xf32>
    %534 = math.exp %533 : vector<8x32xf32>
    %cst_130 = arith.constant 1.000000e+00 : f32
    %535 = vector.broadcast %cst_130 : f32 to vector<8x32xf32>
    %536 = arith.addf %535, %534 : vector<8x32xf32>
    %537 = arith.divf %535, %536 : vector<8x32xf32>
    %538 = vector.extract_strided_slice %506 {offsets = [0, 32], sizes = [8, 32], strides = [1, 1]} : vector<8x128xf32> to vector<8x32xf32>
    %539 = arith.negf %538 : vector<8x32xf32>
    %540 = math.exp %539 : vector<8x32xf32>
    %cst_131 = arith.constant 1.000000e+00 : f32
    %541 = vector.broadcast %cst_131 : f32 to vector<8x32xf32>
    %542 = arith.addf %541, %540 : vector<8x32xf32>
    %543 = arith.divf %541, %542 : vector<8x32xf32>
    %544 = vector.extract_strided_slice %506 {offsets = [0, 64], sizes = [8, 32], strides = [1, 1]} : vector<8x128xf32> to vector<8x32xf32>
    %545 = math.tanh %544 : vector<8x32xf32>
    %546 = vector.extract_strided_slice %506 {offsets = [0, 96], sizes = [8, 32], strides = [1, 1]} : vector<8x128xf32> to vector<8x32xf32>
    %547 = arith.negf %546 : vector<8x32xf32>
    %548 = math.exp %547 : vector<8x32xf32>
    %cst_132 = arith.constant 1.000000e+00 : f32
    %549 = vector.broadcast %cst_132 : f32 to vector<8x32xf32>
    %550 = arith.addf %549, %548 : vector<8x32xf32>
    %551 = arith.divf %549, %550 : vector<8x32xf32>
    %552 = arith.mulf %543, %500 : vector<8x32xf32>
    %553 = arith.mulf %537, %545 : vector<8x32xf32>
    %554 = arith.addf %552, %553 : vector<8x32xf32>
    %555 = math.tanh %554 : vector<8x32xf32>
    %556 = arith.mulf %551, %555 : vector<8x32xf32>
    %c0_133 = arith.constant 0 : index
    %c0_134 = arith.constant 0 : index
    %557 = vector.load %arg18[%c0_133, %c0_134] : memref<64x32xf32, #tpu.memory_space<vmem>>, vector<8x32xf32>
    tpu.vector_store %arg18[%c0_133, %c0_134], %531 {strides = array<i32>} : memref<64x32xf32, #tpu.memory_space<vmem>>, vector<8x32xf32>,
    %c56_135 = arith.constant 56 : index
    %c0_136 = arith.constant 0 : index
    %558 = vector.load %arg19[%c56_135, %c0_136] : memref<64x32xf32, #tpu.memory_space<vmem>>, vector<8x32xf32>
    tpu.vector_store %arg19[%c56_135, %c0_136], %556 {strides = array<i32>} : memref<64x32xf32, #tpu.memory_space<vmem>>, vector<8x32xf32>,
    %559 = vector.extract_strided_slice %489 {offsets = [8, 0], sizes = [8, 128], strides = [1, 1]} : vector<64x128xf32> to vector<8x128xf32>
    %cst_137 = arith.constant dense<0.000000e+00> : vector<8x128xf32>
    %560 = tpu.matmul %531, %498, %cst_137 {dimension_numbers = #tpu.dot_dimension_numbers<[1], [0], [0], [1], [0, 0, 1, 1], [], []>} : vector<8x32xf32>, vector<32x128xf32>, vector<8x128xf32> -> vector<8x128xf32>
    %561 = arith.addf %559, %560 : vector<8x128xf32>
    %562 = vector.extract_strided_slice %497 {offsets = [48, 0], sizes = [8, 128], strides = [1, 1]} : vector<64x128xf32> to vector<8x128xf32>
    %cst_138 = arith.constant dense<0.000000e+00> : vector<8x128xf32>
    %563 = tpu.matmul %556, %499, %cst_138 {dimension_numbers = #tpu.dot_dimension_numbers<[1], [0], [0], [1], [0, 0, 1, 1], [], []>} : vector<8x32xf32>, vector<32x128xf32>, vector<8x128xf32> -> vector<8x128xf32>
    %564 = arith.addf %562, %563 : vector<8x128xf32>
    %565 = vector.extract_strided_slice %561 {offsets = [0, 0], sizes = [8, 32], strides = [1, 1]} : vector<8x128xf32> to vector<8x32xf32>
    %566 = arith.negf %565 : vector<8x32xf32>
    %567 = math.exp %566 : vector<8x32xf32>
    %cst_139 = arith.constant 1.000000e+00 : f32
    %568 = vector.broadcast %cst_139 : f32 to vector<8x32xf32>
    %569 = arith.addf %568, %567 : vector<8x32xf32>
    %570 = arith.divf %568, %569 : vector<8x32xf32>
    %571 = vector.extract_strided_slice %561 {offsets = [0, 32], sizes = [8, 32], strides = [1, 1]} : vector<8x128xf32> to vector<8x32xf32>
    %572 = arith.negf %571 : vector<8x32xf32>
    %573 = math.exp %572 : vector<8x32xf32>
    %cst_140 = arith.constant 1.000000e+00 : f32
    %574 = vector.broadcast %cst_140 : f32 to vector<8x32xf32>
    %575 = arith.addf %574, %573 : vector<8x32xf32>
    %576 = arith.divf %574, %575 : vector<8x32xf32>
    %577 = vector.extract_strided_slice %561 {offsets = [0, 64], sizes = [8, 32], strides = [1, 1]} : vector<8x128xf32> to vector<8x32xf32>
    %578 = math.tanh %577 : vector<8x32xf32>
    %579 = vector.extract_strided_slice %561 {offsets = [0, 96], sizes = [8, 32], strides = [1, 1]} : vector<8x128xf32> to vector<8x32xf32>
    %580 = arith.negf %579 : vector<8x32xf32>
    %581 = math.exp %580 : vector<8x32xf32>
    %cst_141 = arith.constant 1.000000e+00 : f32
    %582 = vector.broadcast %cst_141 : f32 to vector<8x32xf32>
    %583 = arith.addf %582, %581 : vector<8x32xf32>
    %584 = arith.divf %582, %583 : vector<8x32xf32>
    %585 = arith.mulf %576, %529 : vector<8x32xf32>
    %586 = arith.mulf %570, %578 : vector<8x32xf32>
    %587 = arith.addf %585, %586 : vector<8x32xf32>
    %588 = math.tanh %587 : vector<8x32xf32>
    %589 = arith.mulf %584, %588 : vector<8x32xf32>
    %590 = vector.extract_strided_slice %564 {offsets = [0, 0], sizes = [8, 32], strides = [1, 1]} : vector<8x128xf32> to vector<8x32xf32>
    %591 = arith.negf %590 : vector<8x32xf32>
    %592 = math.exp %591 : vector<8x32xf32>
    %cst_142 = arith.constant 1.000000e+00 : f32
    %593 = vector.broadcast %cst_142 : f32 to vector<8x32xf32>
    %594 = arith.addf %593, %592 : vector<8x32xf32>
    %595 = arith.divf %593, %594 : vector<8x32xf32>
    %596 = vector.extract_strided_slice %564 {offsets = [0, 32], sizes = [8, 32], strides = [1, 1]} : vector<8x128xf32> to vector<8x32xf32>
    %597 = arith.negf %596 : vector<8x32xf32>
    %598 = math.exp %597 : vector<8x32xf32>
    %cst_143 = arith.constant 1.000000e+00 : f32
    %599 = vector.broadcast %cst_143 : f32 to vector<8x32xf32>
    %600 = arith.addf %599, %598 : vector<8x32xf32>
    %601 = arith.divf %599, %600 : vector<8x32xf32>
    %602 = vector.extract_strided_slice %564 {offsets = [0, 64], sizes = [8, 32], strides = [1, 1]} : vector<8x128xf32> to vector<8x32xf32>
    %603 = math.tanh %602 : vector<8x32xf32>
    %604 = vector.extract_strided_slice %564 {offsets = [0, 96], sizes = [8, 32], strides = [1, 1]} : vector<8x128xf32> to vector<8x32xf32>
    %605 = arith.negf %604 : vector<8x32xf32>
    %606 = math.exp %605 : vector<8x32xf32>
    %cst_144 = arith.constant 1.000000e+00 : f32
    %607 = vector.broadcast %cst_144 : f32 to vector<8x32xf32>
    %608 = arith.addf %607, %606 : vector<8x32xf32>
    %609 = arith.divf %607, %608 : vector<8x32xf32>
    %610 = arith.mulf %601, %554 : vector<8x32xf32>
    %611 = arith.mulf %595, %603 : vector<8x32xf32>
    %612 = arith.addf %610, %611 : vector<8x32xf32>
    %613 = math.tanh %612 : vector<8x32xf32>
    %614 = arith.mulf %609, %613 : vector<8x32xf32>
    %c8_145 = arith.constant 8 : index
    %c0_146 = arith.constant 0 : index
    %615 = vector.load %arg18[%c8_145, %c0_146] : memref<64x32xf32, #tpu.memory_space<vmem>>, vector<8x32xf32>
    tpu.vector_store %arg18[%c8_145, %c0_146], %589 {strides = array<i32>} : memref<64x32xf32, #tpu.memory_space<vmem>>, vector<8x32xf32>,
    %c48_147 = arith.constant 48 : index
    %c0_148 = arith.constant 0 : index
    %616 = vector.load %arg19[%c48_147, %c0_148] : memref<64x32xf32, #tpu.memory_space<vmem>>, vector<8x32xf32>
    tpu.vector_store %arg19[%c48_147, %c0_148], %614 {strides = array<i32>} : memref<64x32xf32, #tpu.memory_space<vmem>>, vector<8x32xf32>,
    %617 = vector.extract_strided_slice %489 {offsets = [16, 0], sizes = [8, 128], strides = [1, 1]} : vector<64x128xf32> to vector<8x128xf32>
    %cst_149 = arith.constant dense<0.000000e+00> : vector<8x128xf32>
    %618 = tpu.matmul %589, %498, %cst_149 {dimension_numbers = #tpu.dot_dimension_numbers<[1], [0], [0], [1], [0, 0, 1, 1], [], []>} : vector<8x32xf32>, vector<32x128xf32>, vector<8x128xf32> -> vector<8x128xf32>
    %619 = arith.addf %617, %618 : vector<8x128xf32>
    %620 = vector.extract_strided_slice %497 {offsets = [40, 0], sizes = [8, 128], strides = [1, 1]} : vector<64x128xf32> to vector<8x128xf32>
    %cst_150 = arith.constant dense<0.000000e+00> : vector<8x128xf32>
    %621 = tpu.matmul %614, %499, %cst_150 {dimension_numbers = #tpu.dot_dimension_numbers<[1], [0], [0], [1], [0, 0, 1, 1], [], []>} : vector<8x32xf32>, vector<32x128xf32>, vector<8x128xf32> -> vector<8x128xf32>
    %622 = arith.addf %620, %621 : vector<8x128xf32>
    %623 = vector.extract_strided_slice %619 {offsets = [0, 0], sizes = [8, 32], strides = [1, 1]} : vector<8x128xf32> to vector<8x32xf32>
    %624 = arith.negf %623 : vector<8x32xf32>
    %625 = math.exp %624 : vector<8x32xf32>
    %cst_151 = arith.constant 1.000000e+00 : f32
    %626 = vector.broadcast %cst_151 : f32 to vector<8x32xf32>
    %627 = arith.addf %626, %625 : vector<8x32xf32>
    %628 = arith.divf %626, %627 : vector<8x32xf32>
    %629 = vector.extract_strided_slice %619 {offsets = [0, 32], sizes = [8, 32], strides = [1, 1]} : vector<8x128xf32> to vector<8x32xf32>
    %630 = arith.negf %629 : vector<8x32xf32>
    %631 = math.exp %630 : vector<8x32xf32>
    %cst_152 = arith.constant 1.000000e+00 : f32
    %632 = vector.broadcast %cst_152 : f32 to vector<8x32xf32>
    %633 = arith.addf %632, %631 : vector<8x32xf32>
    %634 = arith.divf %632, %633 : vector<8x32xf32>
    %635 = vector.extract_strided_slice %619 {offsets = [0, 64], sizes = [8, 32], strides = [1, 1]} : vector<8x128xf32> to vector<8x32xf32>
    %636 = math.tanh %635 : vector<8x32xf32>
    %637 = vector.extract_strided_slice %619 {offsets = [0, 96], sizes = [8, 32], strides = [1, 1]} : vector<8x128xf32> to vector<8x32xf32>
    %638 = arith.negf %637 : vector<8x32xf32>
    %639 = math.exp %638 : vector<8x32xf32>
    %cst_153 = arith.constant 1.000000e+00 : f32
    %640 = vector.broadcast %cst_153 : f32 to vector<8x32xf32>
    %641 = arith.addf %640, %639 : vector<8x32xf32>
    %642 = arith.divf %640, %641 : vector<8x32xf32>
    %643 = arith.mulf %634, %587 : vector<8x32xf32>
    %644 = arith.mulf %628, %636 : vector<8x32xf32>
    %645 = arith.addf %643, %644 : vector<8x32xf32>
    %646 = math.tanh %645 : vector<8x32xf32>
    %647 = arith.mulf %642, %646 : vector<8x32xf32>
    %648 = vector.extract_strided_slice %622 {offsets = [0, 0], sizes = [8, 32], strides = [1, 1]} : vector<8x128xf32> to vector<8x32xf32>
    %649 = arith.negf %648 : vector<8x32xf32>
    %650 = math.exp %649 : vector<8x32xf32>
    %cst_154 = arith.constant 1.000000e+00 : f32
    %651 = vector.broadcast %cst_154 : f32 to vector<8x32xf32>
    %652 = arith.addf %651, %650 : vector<8x32xf32>
    %653 = arith.divf %651, %652 : vector<8x32xf32>
    %654 = vector.extract_strided_slice %622 {offsets = [0, 32], sizes = [8, 32], strides = [1, 1]} : vector<8x128xf32> to vector<8x32xf32>
    %655 = arith.negf %654 : vector<8x32xf32>
    %656 = math.exp %655 : vector<8x32xf32>
    %cst_155 = arith.constant 1.000000e+00 : f32
    %657 = vector.broadcast %cst_155 : f32 to vector<8x32xf32>
    %658 = arith.addf %657, %656 : vector<8x32xf32>
    %659 = arith.divf %657, %658 : vector<8x32xf32>
    %660 = vector.extract_strided_slice %622 {offsets = [0, 64], sizes = [8, 32], strides = [1, 1]} : vector<8x128xf32> to vector<8x32xf32>
    %661 = math.tanh %660 : vector<8x32xf32>
    %662 = vector.extract_strided_slice %622 {offsets = [0, 96], sizes = [8, 32], strides = [1, 1]} : vector<8x128xf32> to vector<8x32xf32>
    %663 = arith.negf %662 : vector<8x32xf32>
    %664 = math.exp %663 : vector<8x32xf32>
    %cst_156 = arith.constant 1.000000e+00 : f32
    %665 = vector.broadcast %cst_156 : f32 to vector<8x32xf32>
    %666 = arith.addf %665, %664 : vector<8x32xf32>
    %667 = arith.divf %665, %666 : vector<8x32xf32>
    %668 = arith.mulf %659, %612 : vector<8x32xf32>
    %669 = arith.mulf %653, %661 : vector<8x32xf32>
    %670 = arith.addf %668, %669 : vector<8x32xf32>
    %671 = math.tanh %670 : vector<8x32xf32>
    %672 = arith.mulf %667, %671 : vector<8x32xf32>
    %c16_157 = arith.constant 16 : index
    %c0_158 = arith.constant 0 : index
    %673 = vector.load %arg18[%c16_157, %c0_158] : memref<64x32xf32, #tpu.memory_space<vmem>>, vector<8x32xf32>
    tpu.vector_store %arg18[%c16_157, %c0_158], %647 {strides = array<i32>} : memref<64x32xf32, #tpu.memory_space<vmem>>, vector<8x32xf32>,
    %c40_159 = arith.constant 40 : index
    %c0_160 = arith.constant 0 : index
    %674 = vector.load %arg19[%c40_159, %c0_160] : memref<64x32xf32, #tpu.memory_space<vmem>>, vector<8x32xf32>
    tpu.vector_store %arg19[%c40_159, %c0_160], %672 {strides = array<i32>} : memref<64x32xf32, #tpu.memory_space<vmem>>, vector<8x32xf32>,
    %675 = vector.extract_strided_slice %489 {offsets = [24, 0], sizes = [8, 128], strides = [1, 1]} : vector<64x128xf32> to vector<8x128xf32>
    %cst_161 = arith.constant dense<0.000000e+00> : vector<8x128xf32>
    %676 = tpu.matmul %647, %498, %cst_161 {dimension_numbers = #tpu.dot_dimension_numbers<[1], [0], [0], [1], [0, 0, 1, 1], [], []>} : vector<8x32xf32>, vector<32x128xf32>, vector<8x128xf32> -> vector<8x128xf32>
    %677 = arith.addf %675, %676 : vector<8x128xf32>
    %678 = vector.extract_strided_slice %497 {offsets = [32, 0], sizes = [8, 128], strides = [1, 1]} : vector<64x128xf32> to vector<8x128xf32>
    %cst_162 = arith.constant dense<0.000000e+00> : vector<8x128xf32>
    %679 = tpu.matmul %672, %499, %cst_162 {dimension_numbers = #tpu.dot_dimension_numbers<[1], [0], [0], [1], [0, 0, 1, 1], [], []>} : vector<8x32xf32>, vector<32x128xf32>, vector<8x128xf32> -> vector<8x128xf32>
    %680 = arith.addf %678, %679 : vector<8x128xf32>
    %681 = vector.extract_strided_slice %677 {offsets = [0, 0], sizes = [8, 32], strides = [1, 1]} : vector<8x128xf32> to vector<8x32xf32>
    %682 = arith.negf %681 : vector<8x32xf32>
    %683 = math.exp %682 : vector<8x32xf32>
    %cst_163 = arith.constant 1.000000e+00 : f32
    %684 = vector.broadcast %cst_163 : f32 to vector<8x32xf32>
    %685 = arith.addf %684, %683 : vector<8x32xf32>
    %686 = arith.divf %684, %685 : vector<8x32xf32>
    %687 = vector.extract_strided_slice %677 {offsets = [0, 32], sizes = [8, 32], strides = [1, 1]} : vector<8x128xf32> to vector<8x32xf32>
    %688 = arith.negf %687 : vector<8x32xf32>
    %689 = math.exp %688 : vector<8x32xf32>
    %cst_164 = arith.constant 1.000000e+00 : f32
    %690 = vector.broadcast %cst_164 : f32 to vector<8x32xf32>
    %691 = arith.addf %690, %689 : vector<8x32xf32>
    %692 = arith.divf %690, %691 : vector<8x32xf32>
    %693 = vector.extract_strided_slice %677 {offsets = [0, 64], sizes = [8, 32], strides = [1, 1]} : vector<8x128xf32> to vector<8x32xf32>
    %694 = math.tanh %693 : vector<8x32xf32>
    %695 = vector.extract_strided_slice %677 {offsets = [0, 96], sizes = [8, 32], strides = [1, 1]} : vector<8x128xf32> to vector<8x32xf32>
    %696 = arith.negf %695 : vector<8x32xf32>
    %697 = math.exp %696 : vector<8x32xf32>
    %cst_165 = arith.constant 1.000000e+00 : f32
    %698 = vector.broadcast %cst_165 : f32 to vector<8x32xf32>
    %699 = arith.addf %698, %697 : vector<8x32xf32>
    %700 = arith.divf %698, %699 : vector<8x32xf32>
    %701 = arith.mulf %692, %645 : vector<8x32xf32>
    %702 = arith.mulf %686, %694 : vector<8x32xf32>
    %703 = arith.addf %701, %702 : vector<8x32xf32>
    %704 = math.tanh %703 : vector<8x32xf32>
    %705 = arith.mulf %700, %704 : vector<8x32xf32>
    %706 = vector.extract_strided_slice %680 {offsets = [0, 0], sizes = [8, 32], strides = [1, 1]} : vector<8x128xf32> to vector<8x32xf32>
    %707 = arith.negf %706 : vector<8x32xf32>
    %708 = math.exp %707 : vector<8x32xf32>
    %cst_166 = arith.constant 1.000000e+00 : f32
    %709 = vector.broadcast %cst_166 : f32 to vector<8x32xf32>
    %710 = arith.addf %709, %708 : vector<8x32xf32>
    %711 = arith.divf %709, %710 : vector<8x32xf32>
    %712 = vector.extract_strided_slice %680 {offsets = [0, 32], sizes = [8, 32], strides = [1, 1]} : vector<8x128xf32> to vector<8x32xf32>
    %713 = arith.negf %712 : vector<8x32xf32>
    %714 = math.exp %713 : vector<8x32xf32>
    %cst_167 = arith.constant 1.000000e+00 : f32
    %715 = vector.broadcast %cst_167 : f32 to vector<8x32xf32>
    %716 = arith.addf %715, %714 : vector<8x32xf32>
    %717 = arith.divf %715, %716 : vector<8x32xf32>
    %718 = vector.extract_strided_slice %680 {offsets = [0, 64], sizes = [8, 32], strides = [1, 1]} : vector<8x128xf32> to vector<8x32xf32>
    %719 = math.tanh %718 : vector<8x32xf32>
    %720 = vector.extract_strided_slice %680 {offsets = [0, 96], sizes = [8, 32], strides = [1, 1]} : vector<8x128xf32> to vector<8x32xf32>
    %721 = arith.negf %720 : vector<8x32xf32>
    %722 = math.exp %721 : vector<8x32xf32>
    %cst_168 = arith.constant 1.000000e+00 : f32
    %723 = vector.broadcast %cst_168 : f32 to vector<8x32xf32>
    %724 = arith.addf %723, %722 : vector<8x32xf32>
    %725 = arith.divf %723, %724 : vector<8x32xf32>
    %726 = arith.mulf %717, %670 : vector<8x32xf32>
    %727 = arith.mulf %711, %719 : vector<8x32xf32>
    %728 = arith.addf %726, %727 : vector<8x32xf32>
    %729 = math.tanh %728 : vector<8x32xf32>
    %730 = arith.mulf %725, %729 : vector<8x32xf32>
    %c24_169 = arith.constant 24 : index
    %c0_170 = arith.constant 0 : index
    %731 = vector.load %arg18[%c24_169, %c0_170] : memref<64x32xf32, #tpu.memory_space<vmem>>, vector<8x32xf32>
    tpu.vector_store %arg18[%c24_169, %c0_170], %705 {strides = array<i32>} : memref<64x32xf32, #tpu.memory_space<vmem>>, vector<8x32xf32>,
    %c32_171 = arith.constant 32 : index
    %c0_172 = arith.constant 0 : index
    %732 = vector.load %arg19[%c32_171, %c0_172] : memref<64x32xf32, #tpu.memory_space<vmem>>, vector<8x32xf32>
    tpu.vector_store %arg19[%c32_171, %c0_172], %730 {strides = array<i32>} : memref<64x32xf32, #tpu.memory_space<vmem>>, vector<8x32xf32>,
    %733 = vector.extract_strided_slice %489 {offsets = [32, 0], sizes = [8, 128], strides = [1, 1]} : vector<64x128xf32> to vector<8x128xf32>
    %cst_173 = arith.constant dense<0.000000e+00> : vector<8x128xf32>
    %734 = tpu.matmul %705, %498, %cst_173 {dimension_numbers = #tpu.dot_dimension_numbers<[1], [0], [0], [1], [0, 0, 1, 1], [], []>} : vector<8x32xf32>, vector<32x128xf32>, vector<8x128xf32> -> vector<8x128xf32>
    %735 = arith.addf %733, %734 : vector<8x128xf32>
    %736 = vector.extract_strided_slice %497 {offsets = [24, 0], sizes = [8, 128], strides = [1, 1]} : vector<64x128xf32> to vector<8x128xf32>
    %cst_174 = arith.constant dense<0.000000e+00> : vector<8x128xf32>
    %737 = tpu.matmul %730, %499, %cst_174 {dimension_numbers = #tpu.dot_dimension_numbers<[1], [0], [0], [1], [0, 0, 1, 1], [], []>} : vector<8x32xf32>, vector<32x128xf32>, vector<8x128xf32> -> vector<8x128xf32>
    %738 = arith.addf %736, %737 : vector<8x128xf32>
    %739 = vector.extract_strided_slice %735 {offsets = [0, 0], sizes = [8, 32], strides = [1, 1]} : vector<8x128xf32> to vector<8x32xf32>
    %740 = arith.negf %739 : vector<8x32xf32>
    %741 = math.exp %740 : vector<8x32xf32>
    %cst_175 = arith.constant 1.000000e+00 : f32
    %742 = vector.broadcast %cst_175 : f32 to vector<8x32xf32>
    %743 = arith.addf %742, %741 : vector<8x32xf32>
    %744 = arith.divf %742, %743 : vector<8x32xf32>
    %745 = vector.extract_strided_slice %735 {offsets = [0, 32], sizes = [8, 32], strides = [1, 1]} : vector<8x128xf32> to vector<8x32xf32>
    %746 = arith.negf %745 : vector<8x32xf32>
    %747 = math.exp %746 : vector<8x32xf32>
    %cst_176 = arith.constant 1.000000e+00 : f32
    %748 = vector.broadcast %cst_176 : f32 to vector<8x32xf32>
    %749 = arith.addf %748, %747 : vector<8x32xf32>
    %750 = arith.divf %748, %749 : vector<8x32xf32>
    %751 = vector.extract_strided_slice %735 {offsets = [0, 64], sizes = [8, 32], strides = [1, 1]} : vector<8x128xf32> to vector<8x32xf32>
    %752 = math.tanh %751 : vector<8x32xf32>
    %753 = vector.extract_strided_slice %735 {offsets = [0, 96], sizes = [8, 32], strides = [1, 1]} : vector<8x128xf32> to vector<8x32xf32>
    %754 = arith.negf %753 : vector<8x32xf32>
    %755 = math.exp %754 : vector<8x32xf32>
    %cst_177 = arith.constant 1.000000e+00 : f32
    %756 = vector.broadcast %cst_177 : f32 to vector<8x32xf32>
    %757 = arith.addf %756, %755 : vector<8x32xf32>
    %758 = arith.divf %756, %757 : vector<8x32xf32>
    %759 = arith.mulf %750, %703 : vector<8x32xf32>
    %760 = arith.mulf %744, %752 : vector<8x32xf32>
    %761 = arith.addf %759, %760 : vector<8x32xf32>
    %762 = math.tanh %761 : vector<8x32xf32>
    %763 = arith.mulf %758, %762 : vector<8x32xf32>
    %764 = vector.extract_strided_slice %738 {offsets = [0, 0], sizes = [8, 32], strides = [1, 1]} : vector<8x128xf32> to vector<8x32xf32>
    %765 = arith.negf %764 : vector<8x32xf32>
    %766 = math.exp %765 : vector<8x32xf32>
    %cst_178 = arith.constant 1.000000e+00 : f32
    %767 = vector.broadcast %cst_178 : f32 to vector<8x32xf32>
    %768 = arith.addf %767, %766 : vector<8x32xf32>
    %769 = arith.divf %767, %768 : vector<8x32xf32>
    %770 = vector.extract_strided_slice %738 {offsets = [0, 32], sizes = [8, 32], strides = [1, 1]} : vector<8x128xf32> to vector<8x32xf32>
    %771 = arith.negf %770 : vector<8x32xf32>
    %772 = math.exp %771 : vector<8x32xf32>
    %cst_179 = arith.constant 1.000000e+00 : f32
    %773 = vector.broadcast %cst_179 : f32 to vector<8x32xf32>
    %774 = arith.addf %773, %772 : vector<8x32xf32>
    %775 = arith.divf %773, %774 : vector<8x32xf32>
    %776 = vector.extract_strided_slice %738 {offsets = [0, 64], sizes = [8, 32], strides = [1, 1]} : vector<8x128xf32> to vector<8x32xf32>
    %777 = math.tanh %776 : vector<8x32xf32>
    %778 = vector.extract_strided_slice %738 {offsets = [0, 96], sizes = [8, 32], strides = [1, 1]} : vector<8x128xf32> to vector<8x32xf32>
    %779 = arith.negf %778 : vector<8x32xf32>
    %780 = math.exp %779 : vector<8x32xf32>
    %cst_180 = arith.constant 1.000000e+00 : f32
    %781 = vector.broadcast %cst_180 : f32 to vector<8x32xf32>
    %782 = arith.addf %781, %780 : vector<8x32xf32>
    %783 = arith.divf %781, %782 : vector<8x32xf32>
    %784 = arith.mulf %775, %728 : vector<8x32xf32>
    %785 = arith.mulf %769, %777 : vector<8x32xf32>
    %786 = arith.addf %784, %785 : vector<8x32xf32>
    %787 = math.tanh %786 : vector<8x32xf32>
    %788 = arith.mulf %783, %787 : vector<8x32xf32>
    %c32_181 = arith.constant 32 : index
    %c0_182 = arith.constant 0 : index
    %789 = vector.load %arg18[%c32_181, %c0_182] : memref<64x32xf32, #tpu.memory_space<vmem>>, vector<8x32xf32>
    tpu.vector_store %arg18[%c32_181, %c0_182], %763 {strides = array<i32>} : memref<64x32xf32, #tpu.memory_space<vmem>>, vector<8x32xf32>,
    %c24_183 = arith.constant 24 : index
    %c0_184 = arith.constant 0 : index
    %790 = vector.load %arg19[%c24_183, %c0_184] : memref<64x32xf32, #tpu.memory_space<vmem>>, vector<8x32xf32>
    tpu.vector_store %arg19[%c24_183, %c0_184], %788 {strides = array<i32>} : memref<64x32xf32, #tpu.memory_space<vmem>>, vector<8x32xf32>,
    %791 = vector.extract_strided_slice %489 {offsets = [40, 0], sizes = [8, 128], strides = [1, 1]} : vector<64x128xf32> to vector<8x128xf32>
    %cst_185 = arith.constant dense<0.000000e+00> : vector<8x128xf32>
    %792 = tpu.matmul %763, %498, %cst_185 {dimension_numbers = #tpu.dot_dimension_numbers<[1], [0], [0], [1], [0, 0, 1, 1], [], []>} : vector<8x32xf32>, vector<32x128xf32>, vector<8x128xf32> -> vector<8x128xf32>
    %793 = arith.addf %791, %792 : vector<8x128xf32>
    %794 = vector.extract_strided_slice %497 {offsets = [16, 0], sizes = [8, 128], strides = [1, 1]} : vector<64x128xf32> to vector<8x128xf32>
    %cst_186 = arith.constant dense<0.000000e+00> : vector<8x128xf32>
    %795 = tpu.matmul %788, %499, %cst_186 {dimension_numbers = #tpu.dot_dimension_numbers<[1], [0], [0], [1], [0, 0, 1, 1], [], []>} : vector<8x32xf32>, vector<32x128xf32>, vector<8x128xf32> -> vector<8x128xf32>
    %796 = arith.addf %794, %795 : vector<8x128xf32>
    %797 = vector.extract_strided_slice %793 {offsets = [0, 0], sizes = [8, 32], strides = [1, 1]} : vector<8x128xf32> to vector<8x32xf32>
    %798 = arith.negf %797 : vector<8x32xf32>
    %799 = math.exp %798 : vector<8x32xf32>
    %cst_187 = arith.constant 1.000000e+00 : f32
    %800 = vector.broadcast %cst_187 : f32 to vector<8x32xf32>
    %801 = arith.addf %800, %799 : vector<8x32xf32>
    %802 = arith.divf %800, %801 : vector<8x32xf32>
    %803 = vector.extract_strided_slice %793 {offsets = [0, 32], sizes = [8, 32], strides = [1, 1]} : vector<8x128xf32> to vector<8x32xf32>
    %804 = arith.negf %803 : vector<8x32xf32>
    %805 = math.exp %804 : vector<8x32xf32>
    %cst_188 = arith.constant 1.000000e+00 : f32
    %806 = vector.broadcast %cst_188 : f32 to vector<8x32xf32>
    %807 = arith.addf %806, %805 : vector<8x32xf32>
    %808 = arith.divf %806, %807 : vector<8x32xf32>
    %809 = vector.extract_strided_slice %793 {offsets = [0, 64], sizes = [8, 32], strides = [1, 1]} : vector<8x128xf32> to vector<8x32xf32>
    %810 = math.tanh %809 : vector<8x32xf32>
    %811 = vector.extract_strided_slice %793 {offsets = [0, 96], sizes = [8, 32], strides = [1, 1]} : vector<8x128xf32> to vector<8x32xf32>
    %812 = arith.negf %811 : vector<8x32xf32>
    %813 = math.exp %812 : vector<8x32xf32>
    %cst_189 = arith.constant 1.000000e+00 : f32
    %814 = vector.broadcast %cst_189 : f32 to vector<8x32xf32>
    %815 = arith.addf %814, %813 : vector<8x32xf32>
    %816 = arith.divf %814, %815 : vector<8x32xf32>
    %817 = arith.mulf %808, %761 : vector<8x32xf32>
    %818 = arith.mulf %802, %810 : vector<8x32xf32>
    %819 = arith.addf %817, %818 : vector<8x32xf32>
    %820 = math.tanh %819 : vector<8x32xf32>
    %821 = arith.mulf %816, %820 : vector<8x32xf32>
    %822 = vector.extract_strided_slice %796 {offsets = [0, 0], sizes = [8, 32], strides = [1, 1]} : vector<8x128xf32> to vector<8x32xf32>
    %823 = arith.negf %822 : vector<8x32xf32>
    %824 = math.exp %823 : vector<8x32xf32>
    %cst_190 = arith.constant 1.000000e+00 : f32
    %825 = vector.broadcast %cst_190 : f32 to vector<8x32xf32>
    %826 = arith.addf %825, %824 : vector<8x32xf32>
    %827 = arith.divf %825, %826 : vector<8x32xf32>
    %828 = vector.extract_strided_slice %796 {offsets = [0, 32], sizes = [8, 32], strides = [1, 1]} : vector<8x128xf32> to vector<8x32xf32>
    %829 = arith.negf %828 : vector<8x32xf32>
    %830 = math.exp %829 : vector<8x32xf32>
    %cst_191 = arith.constant 1.000000e+00 : f32
    %831 = vector.broadcast %cst_191 : f32 to vector<8x32xf32>
    %832 = arith.addf %831, %830 : vector<8x32xf32>
    %833 = arith.divf %831, %832 : vector<8x32xf32>
    %834 = vector.extract_strided_slice %796 {offsets = [0, 64], sizes = [8, 32], strides = [1, 1]} : vector<8x128xf32> to vector<8x32xf32>
    %835 = math.tanh %834 : vector<8x32xf32>
    %836 = vector.extract_strided_slice %796 {offsets = [0, 96], sizes = [8, 32], strides = [1, 1]} : vector<8x128xf32> to vector<8x32xf32>
    %837 = arith.negf %836 : vector<8x32xf32>
    %838 = math.exp %837 : vector<8x32xf32>
    %cst_192 = arith.constant 1.000000e+00 : f32
    %839 = vector.broadcast %cst_192 : f32 to vector<8x32xf32>
    %840 = arith.addf %839, %838 : vector<8x32xf32>
    %841 = arith.divf %839, %840 : vector<8x32xf32>
    %842 = arith.mulf %833, %786 : vector<8x32xf32>
    %843 = arith.mulf %827, %835 : vector<8x32xf32>
    %844 = arith.addf %842, %843 : vector<8x32xf32>
    %845 = math.tanh %844 : vector<8x32xf32>
    %846 = arith.mulf %841, %845 : vector<8x32xf32>
    %c40_193 = arith.constant 40 : index
    %c0_194 = arith.constant 0 : index
    %847 = vector.load %arg18[%c40_193, %c0_194] : memref<64x32xf32, #tpu.memory_space<vmem>>, vector<8x32xf32>
    tpu.vector_store %arg18[%c40_193, %c0_194], %821 {strides = array<i32>} : memref<64x32xf32, #tpu.memory_space<vmem>>, vector<8x32xf32>,
    %c16_195 = arith.constant 16 : index
    %c0_196 = arith.constant 0 : index
    %848 = vector.load %arg19[%c16_195, %c0_196] : memref<64x32xf32, #tpu.memory_space<vmem>>, vector<8x32xf32>
    tpu.vector_store %arg19[%c16_195, %c0_196], %846 {strides = array<i32>} : memref<64x32xf32, #tpu.memory_space<vmem>>, vector<8x32xf32>,
    %849 = vector.extract_strided_slice %489 {offsets = [48, 0], sizes = [8, 128], strides = [1, 1]} : vector<64x128xf32> to vector<8x128xf32>
    %cst_197 = arith.constant dense<0.000000e+00> : vector<8x128xf32>
    %850 = tpu.matmul %821, %498, %cst_197 {dimension_numbers = #tpu.dot_dimension_numbers<[1], [0], [0], [1], [0, 0, 1, 1], [], []>} : vector<8x32xf32>, vector<32x128xf32>, vector<8x128xf32> -> vector<8x128xf32>
    %851 = arith.addf %849, %850 : vector<8x128xf32>
    %852 = vector.extract_strided_slice %497 {offsets = [8, 0], sizes = [8, 128], strides = [1, 1]} : vector<64x128xf32> to vector<8x128xf32>
    %cst_198 = arith.constant dense<0.000000e+00> : vector<8x128xf32>
    %853 = tpu.matmul %846, %499, %cst_198 {dimension_numbers = #tpu.dot_dimension_numbers<[1], [0], [0], [1], [0, 0, 1, 1], [], []>} : vector<8x32xf32>, vector<32x128xf32>, vector<8x128xf32> -> vector<8x128xf32>
    %854 = arith.addf %852, %853 : vector<8x128xf32>
    %855 = vector.extract_strided_slice %851 {offsets = [0, 0], sizes = [8, 32], strides = [1, 1]} : vector<8x128xf32> to vector<8x32xf32>
    %856 = arith.negf %855 : vector<8x32xf32>
    %857 = math.exp %856 : vector<8x32xf32>
    %cst_199 = arith.constant 1.000000e+00 : f32
    %858 = vector.broadcast %cst_199 : f32 to vector<8x32xf32>
    %859 = arith.addf %858, %857 : vector<8x32xf32>
    %860 = arith.divf %858, %859 : vector<8x32xf32>
    %861 = vector.extract_strided_slice %851 {offsets = [0, 32], sizes = [8, 32], strides = [1, 1]} : vector<8x128xf32> to vector<8x32xf32>
    %862 = arith.negf %861 : vector<8x32xf32>
    %863 = math.exp %862 : vector<8x32xf32>
    %cst_200 = arith.constant 1.000000e+00 : f32
    %864 = vector.broadcast %cst_200 : f32 to vector<8x32xf32>
    %865 = arith.addf %864, %863 : vector<8x32xf32>
    %866 = arith.divf %864, %865 : vector<8x32xf32>
    %867 = vector.extract_strided_slice %851 {offsets = [0, 64], sizes = [8, 32], strides = [1, 1]} : vector<8x128xf32> to vector<8x32xf32>
    %868 = math.tanh %867 : vector<8x32xf32>
    %869 = vector.extract_strided_slice %851 {offsets = [0, 96], sizes = [8, 32], strides = [1, 1]} : vector<8x128xf32> to vector<8x32xf32>
    %870 = arith.negf %869 : vector<8x32xf32>
    %871 = math.exp %870 : vector<8x32xf32>
    %cst_201 = arith.constant 1.000000e+00 : f32
    %872 = vector.broadcast %cst_201 : f32 to vector<8x32xf32>
    %873 = arith.addf %872, %871 : vector<8x32xf32>
    %874 = arith.divf %872, %873 : vector<8x32xf32>
    %875 = arith.mulf %866, %819 : vector<8x32xf32>
    %876 = arith.mulf %860, %868 : vector<8x32xf32>
    %877 = arith.addf %875, %876 : vector<8x32xf32>
    %878 = math.tanh %877 : vector<8x32xf32>
    %879 = arith.mulf %874, %878 : vector<8x32xf32>
    %880 = vector.extract_strided_slice %854 {offsets = [0, 0], sizes = [8, 32], strides = [1, 1]} : vector<8x128xf32> to vector<8x32xf32>
    %881 = arith.negf %880 : vector<8x32xf32>
    %882 = math.exp %881 : vector<8x32xf32>
    %cst_202 = arith.constant 1.000000e+00 : f32
    %883 = vector.broadcast %cst_202 : f32 to vector<8x32xf32>
    %884 = arith.addf %883, %882 : vector<8x32xf32>
    %885 = arith.divf %883, %884 : vector<8x32xf32>
    %886 = vector.extract_strided_slice %854 {offsets = [0, 32], sizes = [8, 32], strides = [1, 1]} : vector<8x128xf32> to vector<8x32xf32>
    %887 = arith.negf %886 : vector<8x32xf32>
    %888 = math.exp %887 : vector<8x32xf32>
    %cst_203 = arith.constant 1.000000e+00 : f32
    %889 = vector.broadcast %cst_203 : f32 to vector<8x32xf32>
    %890 = arith.addf %889, %888 : vector<8x32xf32>
    %891 = arith.divf %889, %890 : vector<8x32xf32>
    %892 = vector.extract_strided_slice %854 {offsets = [0, 64], sizes = [8, 32], strides = [1, 1]} : vector<8x128xf32> to vector<8x32xf32>
    %893 = math.tanh %892 : vector<8x32xf32>
    %894 = vector.extract_strided_slice %854 {offsets = [0, 96], sizes = [8, 32], strides = [1, 1]} : vector<8x128xf32> to vector<8x32xf32>
    %895 = arith.negf %894 : vector<8x32xf32>
    %896 = math.exp %895 : vector<8x32xf32>
    %cst_204 = arith.constant 1.000000e+00 : f32
    %897 = vector.broadcast %cst_204 : f32 to vector<8x32xf32>
    %898 = arith.addf %897, %896 : vector<8x32xf32>
    %899 = arith.divf %897, %898 : vector<8x32xf32>
    %900 = arith.mulf %891, %844 : vector<8x32xf32>
    %901 = arith.mulf %885, %893 : vector<8x32xf32>
    %902 = arith.addf %900, %901 : vector<8x32xf32>
    %903 = math.tanh %902 : vector<8x32xf32>
    %904 = arith.mulf %899, %903 : vector<8x32xf32>
    %c48_205 = arith.constant 48 : index
    %c0_206 = arith.constant 0 : index
    %905 = vector.load %arg18[%c48_205, %c0_206] : memref<64x32xf32, #tpu.memory_space<vmem>>, vector<8x32xf32>
    tpu.vector_store %arg18[%c48_205, %c0_206], %879 {strides = array<i32>} : memref<64x32xf32, #tpu.memory_space<vmem>>, vector<8x32xf32>,
    %c8_207 = arith.constant 8 : index
    %c0_208 = arith.constant 0 : index
    %906 = vector.load %arg19[%c8_207, %c0_208] : memref<64x32xf32, #tpu.memory_space<vmem>>, vector<8x32xf32>
    tpu.vector_store %arg19[%c8_207, %c0_208], %904 {strides = array<i32>} : memref<64x32xf32, #tpu.memory_space<vmem>>, vector<8x32xf32>,
    %907 = vector.extract_strided_slice %489 {offsets = [56, 0], sizes = [8, 128], strides = [1, 1]} : vector<64x128xf32> to vector<8x128xf32>
    %cst_209 = arith.constant dense<0.000000e+00> : vector<8x128xf32>
    %908 = tpu.matmul %879, %498, %cst_209 {dimension_numbers = #tpu.dot_dimension_numbers<[1], [0], [0], [1], [0, 0, 1, 1], [], []>} : vector<8x32xf32>, vector<32x128xf32>, vector<8x128xf32> -> vector<8x128xf32>
    %909 = arith.addf %907, %908 : vector<8x128xf32>
    %910 = vector.extract_strided_slice %497 {offsets = [0, 0], sizes = [8, 128], strides = [1, 1]} : vector<64x128xf32> to vector<8x128xf32>
    %cst_210 = arith.constant dense<0.000000e+00> : vector<8x128xf32>
    %911 = tpu.matmul %904, %499, %cst_210 {dimension_numbers = #tpu.dot_dimension_numbers<[1], [0], [0], [1], [0, 0, 1, 1], [], []>} : vector<8x32xf32>, vector<32x128xf32>, vector<8x128xf32> -> vector<8x128xf32>
    %912 = arith.addf %910, %911 : vector<8x128xf32>
    %913 = vector.extract_strided_slice %909 {offsets = [0, 0], sizes = [8, 32], strides = [1, 1]} : vector<8x128xf32> to vector<8x32xf32>
    %914 = arith.negf %913 : vector<8x32xf32>
    %915 = math.exp %914 : vector<8x32xf32>
    %cst_211 = arith.constant 1.000000e+00 : f32
    %916 = vector.broadcast %cst_211 : f32 to vector<8x32xf32>
    %917 = arith.addf %916, %915 : vector<8x32xf32>
    %918 = arith.divf %916, %917 : vector<8x32xf32>
    %919 = vector.extract_strided_slice %909 {offsets = [0, 32], sizes = [8, 32], strides = [1, 1]} : vector<8x128xf32> to vector<8x32xf32>
    %920 = arith.negf %919 : vector<8x32xf32>
    %921 = math.exp %920 : vector<8x32xf32>
    %cst_212 = arith.constant 1.000000e+00 : f32
    %922 = vector.broadcast %cst_212 : f32 to vector<8x32xf32>
    %923 = arith.addf %922, %921 : vector<8x32xf32>
    %924 = arith.divf %922, %923 : vector<8x32xf32>
    %925 = vector.extract_strided_slice %909 {offsets = [0, 64], sizes = [8, 32], strides = [1, 1]} : vector<8x128xf32> to vector<8x32xf32>
    %926 = math.tanh %925 : vector<8x32xf32>
    %927 = vector.extract_strided_slice %909 {offsets = [0, 96], sizes = [8, 32], strides = [1, 1]} : vector<8x128xf32> to vector<8x32xf32>
    %928 = arith.negf %927 : vector<8x32xf32>
    %929 = math.exp %928 : vector<8x32xf32>
    %cst_213 = arith.constant 1.000000e+00 : f32
    %930 = vector.broadcast %cst_213 : f32 to vector<8x32xf32>
    %931 = arith.addf %930, %929 : vector<8x32xf32>
    %932 = arith.divf %930, %931 : vector<8x32xf32>
    %933 = arith.mulf %924, %877 : vector<8x32xf32>
    %934 = arith.mulf %918, %926 : vector<8x32xf32>
    %935 = arith.addf %933, %934 : vector<8x32xf32>
    %936 = math.tanh %935 : vector<8x32xf32>
    %937 = arith.mulf %932, %936 : vector<8x32xf32>
    %938 = vector.extract_strided_slice %912 {offsets = [0, 0], sizes = [8, 32], strides = [1, 1]} : vector<8x128xf32> to vector<8x32xf32>
    %939 = arith.negf %938 : vector<8x32xf32>
    %940 = math.exp %939 : vector<8x32xf32>
    %cst_214 = arith.constant 1.000000e+00 : f32
    %941 = vector.broadcast %cst_214 : f32 to vector<8x32xf32>
    %942 = arith.addf %941, %940 : vector<8x32xf32>
    %943 = arith.divf %941, %942 : vector<8x32xf32>
    %944 = vector.extract_strided_slice %912 {offsets = [0, 32], sizes = [8, 32], strides = [1, 1]} : vector<8x128xf32> to vector<8x32xf32>
    %945 = arith.negf %944 : vector<8x32xf32>
    %946 = math.exp %945 : vector<8x32xf32>
    %cst_215 = arith.constant 1.000000e+00 : f32
    %947 = vector.broadcast %cst_215 : f32 to vector<8x32xf32>
    %948 = arith.addf %947, %946 : vector<8x32xf32>
    %949 = arith.divf %947, %948 : vector<8x32xf32>
    %950 = vector.extract_strided_slice %912 {offsets = [0, 64], sizes = [8, 32], strides = [1, 1]} : vector<8x128xf32> to vector<8x32xf32>
    %951 = math.tanh %950 : vector<8x32xf32>
    %952 = vector.extract_strided_slice %912 {offsets = [0, 96], sizes = [8, 32], strides = [1, 1]} : vector<8x128xf32> to vector<8x32xf32>
    %953 = arith.negf %952 : vector<8x32xf32>
    %954 = math.exp %953 : vector<8x32xf32>
    %cst_216 = arith.constant 1.000000e+00 : f32
    %955 = vector.broadcast %cst_216 : f32 to vector<8x32xf32>
    %956 = arith.addf %955, %954 : vector<8x32xf32>
    %957 = arith.divf %955, %956 : vector<8x32xf32>
    %958 = arith.mulf %949, %902 : vector<8x32xf32>
    %959 = arith.mulf %943, %951 : vector<8x32xf32>
    %960 = arith.addf %958, %959 : vector<8x32xf32>
    %961 = math.tanh %960 : vector<8x32xf32>
    %962 = arith.mulf %957, %961 : vector<8x32xf32>
    %c56_217 = arith.constant 56 : index
    %c0_218 = arith.constant 0 : index
    %963 = vector.load %arg18[%c56_217, %c0_218] : memref<64x32xf32, #tpu.memory_space<vmem>>, vector<8x32xf32>
    tpu.vector_store %arg18[%c56_217, %c0_218], %937 {strides = array<i32>} : memref<64x32xf32, #tpu.memory_space<vmem>>, vector<8x32xf32>,
    %c0_219 = arith.constant 0 : index
    %c0_220 = arith.constant 0 : index
    %964 = vector.load %arg19[%c0_219, %c0_220] : memref<64x32xf32, #tpu.memory_space<vmem>>, vector<8x32xf32>
    tpu.vector_store %arg19[%c0_219, %c0_220], %962 {strides = array<i32>} : memref<64x32xf32, #tpu.memory_space<vmem>>, vector<8x32xf32>,
    %c0_221 = arith.constant 0 : index
    %c0_222 = arith.constant 0 : index
    %965 = vector.load %arg13[%c0_221, %c0_222] : memref<64x128xf32, #tpu.memory_space<vmem>>, vector<64x128xf32>
    %c0_223 = arith.constant 0 : index
    %c0_224 = arith.constant 0 : index
    %966 = vector.load %arg18[%c0_223, %c0_224] : memref<64x32xf32, #tpu.memory_space<vmem>>, vector<64x32xf32>
    %967 = vector.extract_strided_slice %965 {offsets = [0, 0], sizes = [32, 128], strides = [1, 1]} : vector<64x128xf32> to vector<32x128xf32>
    %cst_225 = arith.constant dense<0.000000e+00> : vector<64x128xf32>
    %968 = tpu.matmul %966, %967, %cst_225 {dimension_numbers = #tpu.dot_dimension_numbers<[1], [0], [0], [1], [0, 0, 1, 1], [], []>} : vector<64x32xf32>, vector<32x128xf32>, vector<64x128xf32> -> vector<64x128xf32>
    %c0_226 = arith.constant 0 : index
    %c0_227 = arith.constant 0 : index
    %969 = vector.load %arg19[%c0_226, %c0_227] : memref<64x32xf32, #tpu.memory_space<vmem>>, vector<64x32xf32>
    %970 = vector.extract_strided_slice %965 {offsets = [32, 0], sizes = [32, 128], strides = [1, 1]} : vector<64x128xf32> to vector<32x128xf32>
    %cst_228 = arith.constant dense<0.000000e+00> : vector<64x128xf32>
    %971 = tpu.matmul %969, %970, %cst_228 {dimension_numbers = #tpu.dot_dimension_numbers<[1], [0], [0], [1], [0, 0, 1, 1], [], []>} : vector<64x32xf32>, vector<32x128xf32>, vector<64x128xf32> -> vector<64x128xf32>
    %972 = arith.addf %968, %971 : vector<64x128xf32>
    %c0_229 = arith.constant 0 : index
    %c0_230 = arith.constant 0 : index
    %973 = vector.load %arg14[%c0_229, %c0_230] : memref<1x128xf32, #tpu.memory_space<vmem>>, vector<1x128xf32>
    %974 = vector.broadcast %973 : vector<1x128xf32> to vector<64x128xf32>
    %975 = arith.addf %972, %974 : vector<64x128xf32>
    %c0_231 = arith.constant 0 : index
    %c0_232 = arith.constant 0 : index
    %976 = vector.load %arg15[%c0_231, %c0_232] : memref<64x128xf32, #tpu.memory_space<vmem>>, vector<64x128xf32>
    tpu.vector_store %arg15[%c0_231, %c0_232], %975 {strides = array<i32>} : memref<64x128xf32, #tpu.memory_space<vmem>>, vector<64x128xf32>,
    return
  }
}

</mosaic_0001>

<bundles_post_ra>
// kernel: extract_lstm_forward.1
= control target key start
LH: loop header
LB: loop body
LE: loop exit
PB: predicated region body
PF: predicated region fallthrough
CT: control target
= control target key end

     0   :  { %v5867_v2 = vmov 0.0|0.0   ;;  %vm69_vm0 = vcmask 261120   ;;  %vm5868_vm1 = vmmov 0   ;;  %v5869_v4 = vmov 0.0   ;;  %s5871_s16 = smov 32   ;;  %s6707_s1 = inlined_call_operand.vmem [shape: f32[32,128], index: 1, kind: input, shape index: {}]   ;;  %s6708_s2 = inlined_call_operand.vmem [shape: f32[32,128], index: 2, kind: input, shape index: {}]   ;;  %s6709_s0 = inlined_call_operand.vmem [shape: f32[64,32], index: 0, kind: input, shape index: {}]   ;;  %s6710_s4 = inlined_call_operand.vmem [shape: f32[32,128], index: 4, kind: input, shape index: {}]   ;;  %s6711_s5 = inlined_call_operand.vmem [shape: f32[32,128], index: 5, kind: input, shape index: {}]   ;;  %s6712_s3 = inlined_call_operand.vmem [shape: f32[1,128], index: 3, kind: input, shape index: {}]   ;;  %s6713_s6 = inlined_call_operand.vmem [shape: f32[1,128], index: 6, kind: input, shape index: {}]   ;;  %s6714_s7 = inlined_call_operand.vmem [shape: f32[64,128], index: 7, kind: input, shape index: {}]   ;;  %s6715_s10 = inlined_call_operand.vmem [shape: f32[64,128], index: 10, kind: input, shape index: {}]   ;;  %s6716_s11 = inlined_call_operand.vmem [shape: f32[32,128], index: 11, kind: input, shape index: {}]   ;;  %s6717_s8 = inlined_call_operand.vmem [shape: f32[32,128], index: 8, kind: input, shape index: {}]   ;;  %s6718_s9 = inlined_call_operand.vmem [shape: f32[1,128], index: 9, kind: input, shape index: {}]   ;;  %s6719_s12 = inlined_call_operand.vmem [shape: f32[1,128], index: 12, kind: input, shape index: {}]   ;;  %s6720_s13 = inlined_call_operand.vmem [shape: f32[64,128], index: 13, kind: input, shape index: {}]   ;;  %s6721_s14 = inlined_call_operand.vmem [shape: f32[1,128], index: 14, kind: input, shape index: {}]   ;;  %s6722_s15 = inlined_call_operand.vmem [shape: f32[64,128], index: 15, kind: output, shape index: {}]  }
   0x1   :  { %v58_v0 = vld [vmem:[%s6707_s1] sm:$0xff]  ;;  %v59_v1 = vld [vmem:[%s6707_s1 + $0x8] sm:$0xff]  ;;  %5342 = vmatprep.subr.bf16.mxu0 %v5867_v2  ;;  %v60_v3 = vld [vmem:[%s6707_s1 + $0x10] sm:$0xff]  ;;  %4862 = vmatprep.mubr.msk.f32.mxu0 %vm5868_vm1, %v5869_v4 }
   0x2   :  { %v5326_v5 = vpack.c.bf16 %v59_v1, %v58_v0  ;;  %v61_v6 = vld [vmem:[%s6707_s1 + $0x18] sm:$0xff]  ;;  %v315_v7 = vld [vmem:[%s6708_s2] sm:$0xff]  ;;  %v316_v8 = vld [vmem:[%s6708_s2 + $0x8] sm:$0xff] }
   0x3   :  { %v5330_v9 = vpack.c.bf16 %v61_v6, %v60_v3  ;;  %v5973_v10 = vpack.c.bf16 %v316_v8, %v315_v7  ;;  %v50_v11 = vld [vmem:[%s6709_s0] sm:$0xff]  ;;  %v200_v13 = vld [vmem:[%s6710_s4 + $0x8] sm:$0xff]  ;;  %v317_v14 = vld [vmem:[%s6708_s2 + $0x10] sm:$0xff] }
   0x4   :  { %v199_v12 = vld [vmem:[%s6710_s4] sm:$0xff]  ;;  %5327 = vmatprep.subr.bf16.mxu1 %v5326_v5  ;;  %4822 = vmatprep.mubr.msk.f32.mxu1 %vm69_vm0, %v50_v11  ;;  %v318_v15 = vld [vmem:[%s6708_s2 + $0x18] sm:$0xff]  ;;  %v201_v18 = vld [vmem:[%s6710_s4 + $0x10] sm:$0xff] }
   0x5   :  { %5329 = vmatpush3.bf16.msra.mxu1 %v5326_v5  ;;  %5344 = vmatpush3.bf16.msra.mxu0 %v5973_v10  ;;  %v5992_v16 = vpack.c.bf16 %v318_v15, %v317_v14  ;;  %v5334_v17 = vpack.c.bf16 %v200_v13, %v199_v12  ;;  %v202_v19 = vld [vmem:[%s6710_s4 + $0x18] sm:$0xff]  ;;  %v51_v20 = vld [vmem:[%s6709_s0 + $0x8] sm:$0xff]  ;;  %v52_v21 = vld [vmem:[%s6709_s0 + $0x10] sm:$0xff] }
   0x6   :  { %5331 = vmatprep.subr.bf16.mxu1 %v5330_v9  ;;  %5345 = vmatprep.subr.bf16.mxu0 %v5867_v2  ;;  %v5338_v22 = vpack.c.bf16 %v202_v19, %v201_v18  ;;  %v53_v23 = vld [vmem:[%s6709_s0 + $0x18] sm:$0xff]  ;;  %v54_v24 = vld [vmem:[%s6709_s0 + $0x20] sm:$0xff]  ;;  %v55_v25 = vld [vmem:[%s6709_s0 + $0x28] sm:$0xff] }
   0x7   :  { %v56_v26 = vld [vmem:[%s6709_s0 + $0x30] sm:$0xff]  ;;  %v57_v27 = vld [vmem:[%s6709_s0 + $0x38] sm:$0xff]  ;;  %v319_v28 = vld [vmem:[%s6711_s5] sm:$0xff] }
   0x8   :  { %v320_v29 = vld [vmem:[%s6711_s5 + $0x8] sm:$0xff]  ;;  %v321_v31 = vld [vmem:[%s6711_s5 + $0x10] sm:$0xff]  ;;  %v322_v32 = vld [vmem:[%s6711_s5 + $0x18] sm:$0xff] }
   0x9   :  { %5333 = vmatpush3.bf16.msra.mxu1 %v5330_v9  ;;  %5347 = vmatpush3.bf16.msra.mxu0 %v5992_v16  ;;  %v6046_v30 = vpack.c.bf16 %v320_v29, %v319_v28  ;;  %v6057_v33 = vpack.c.bf16 %v322_v32, %v321_v31  ;;  %v4429_v34 = vld [vmem:[%s6712_s3] ss:$0 sm:$0xff] }
   0xa   :  { %5335 = vmatprep.subr.bf16.mxu1 %v5334_v17  ;;  %5354 = vmatprep.subr.bf16.mxu0 %v5867_v2  ;;  %v4438_v54 = vld [vmem:[%s6713_s6] ss:$0 sm:$0xff]  ;;  %s5870_s6 = smov 64  }
   0xc   :  { %4823 = vmatmul.mubr.msk.f32.vlgmr.msra.gmra.mrb[0].mxu1 %vm69_vm0, %v51_v20  ;;  %4863 = vmatmul.mubr.f32.vlgmr.msra.gmra.mrb[0].mxu0 %v5869_v4 }
   0xd   :  { %5337 = vmatpush3.bf16.msra.mxu1 %v5334_v17  ;;  %4825 = vmatprep.mubr.msk.f32.mxu1 %vm69_vm0, %v52_v21 }
   0xe   :  { %5339 = vmatprep.subr.bf16.mxu1 %v5338_v22  ;;  %5356 = vmatpush3.bf16.msra.mxu0 %v5973_v10 }
   0xf   :  { %5357 = vmatprep.subr.bf16.mxu0 %v5867_v2  ;;  %4884 = vmatprep.mubr.msk.f32.mxu0 %vm5868_vm1, %v5869_v4 }
  0x10   :  { %4826 = vmatmul.mubr.msk.f32.gmra.mrb[2].mxu1 %vm69_vm0, %v53_v23 }
  0x11   :  { %4828 = vmatprep.mubr.msk.f32.mxu1 %vm69_vm0, %v54_v24  ;;  %5341 = vmatpush3.bf16.msra.mxu1 %v5338_v22 }
  0x12   :  { %5348 = vmatprep.subr.bf16.mxu1 %v5867_v2  ;;  %5359 = vmatpush3.bf16.msra.mxu0 %v5992_v16 }
  0x13   :  { %5366 = vmatprep.subr.bf16.mxu0 %v5867_v2 }
  0x14   :  { %4829 = vmatmul.mubr.msk.f32.gmra.mrb[4].mxu1 %vm69_vm0, %v55_v25 }
  0x15   :  { %4831 = vmatprep.mubr.msk.f32.mxu1 %vm69_vm0, %v56_v26 }
  0x18   :  { %4832 = vmatmul.mubr.msk.f32.gmra.mrb[6].mxu1 %vm69_vm0, %v57_v27 }
  0x19   :  { %4842 = vmatprep.mubr.msk.f32.mxu1 %vm69_vm0, %v50_v11 }
  0x1c   :  { %4843 = vmatmul.mubr.msk.f32.vlgmr.msra.gmra.mrb[8].mxu1 %vm69_vm0, %v51_v20 }
  0x1d   :  { %5350 = vmatpush3.bf16.msra.mxu1 %v6046_v30  ;;  %4845 = vmatprep.mubr.msk.f32.mxu1 %vm69_vm0, %v52_v21 }
  0x1e   :  { %5351 = vmatprep.subr.bf16.mxu1 %v5867_v2 }
  0x20   :  { %4846 = vmatmul.mubr.msk.f32.gmra.mrb[10].mxu1 %vm69_vm0, %v53_v23 }
  0x21   :  { %4848 = vmatprep.mubr.msk.f32.mxu1 %vm69_vm0, %v54_v24  ;;  %5353 = vmatpush3.bf16.msra.mxu1 %v6057_v33 }
  0x22   :  { %5360 = vmatprep.subr.bf16.mxu1 %v5867_v2 }
  0x24   :  { %4849 = vmatmul.mubr.msk.f32.gmra.mrb[12].mxu1 %vm69_vm0, %v55_v25 }
  0x25   :  { %4851 = vmatprep.mubr.msk.f32.mxu1 %vm69_vm0, %v56_v26 }
  0x28   :  { %4852 = vmatmul.mubr.msk.f32.gmra.mrb[14].mxu1 %vm69_vm0, %v57_v27 }
  0x29   :  { %4873 = vmatprep.mubr.msk.f32.mxu1 %vm5868_vm1, %v5869_v4 }
  0x2c   :  { %4874 = vmatmul.mubr.f32.vlgmr.msra.gmra.mrb[16].mxu1 %v5869_v4 }
  0x2d   :  { %5362 = vmatpush3.bf16.msra.mxu1 %v6046_v30  ;;  %4895 = vmatprep.mubr.msk.f32.mxu1 %vm5868_vm1, %v5869_v4 }
  0x2e   :  { %5363 = vmatprep.subr.bf16.mxu1 %v5867_v2 }
  0x31   :  { %5365 = vmatpush3.bf16.msra.mxu1 %v6057_v33 }
  0x32   :  { %5372 = vmatprep.subr.bf16.mxu1 %v5867_v2 }
  0xdf   :  { %v4824_v35 = vpop.f32.mrb[0].mxu1  ;;  %v392_v36 = vpop.f32.mrb[0].mxu0 }
  0xe0   :  { %v6079_v37 = vadd.f32 %v4824_v35, %v4429_v34  ;;  %v160_v38 = vpop.f32.mrb[1].mxu1  ;;  %v4864_v39 = vpop.f32.mrb[1].mxu0 }
  0xe1   :  { %v161_v40 = vadd.f32 %v4429_v34, %v160_v38 }
  0xe3   :  { %v396_v41 = vadd.f32 %v392_v36, %v161_v40  ;;  %v4827_v42 = vpop.f32.mrb[2].mxu1 }
  0xe4   :  { %v6081_v43 = vadd.f32 %v4827_v42, %v4429_v34  ;;  %v170_v44 = vpop.f32.mrb[3].mxu1 }
  0xe5   :  { %v6083_v45 = vadd.f32 %v4429_v34, %v170_v44  ;;  %v4447_v17 = vmul.f32 -1.442695, %v396_v41 }
  0xe7   :  { %v4830_v46 = vpop.f32.mrb[4].mxu1 }
  0xe8   :  { %v6085_v47 = vadd.f32 %v4830_v46, %v4429_v34  ;;  %v180_v48 = vpop.f32.mrb[5].mxu1 }
  0xe9   :  { %v6087_v49 = vadd.f32 %v4429_v34, %v180_v48 }
  0xeb   :  { %v4833_v50 = vpop.f32.mrb[6].mxu1 }
  0xec   :  { %v6089_v51 = vadd.f32 %v4833_v50, %v4429_v34  ;;  %v190_v52 = vpop.f32.mrb[7].mxu1 }
  0xed   :  { %v6091_v53 = vadd.f32 %v4429_v34, %v190_v52 }
  0xef   :  { %v4844_v55 = vpop.f32.mrb[8].mxu1 }
  0xf0   :  { %v6096_v56 = vadd.f32 %v4844_v55, %v4438_v54  ;;  %v276_v57 = vpop.f32.mrb[9].mxu1 }
  0xf1   :  { %v6098_v58 = vadd.f32 %v4438_v54, %v276_v57 }
  0xf3   :  { %v4847_v59 = vpop.f32.mrb[10].mxu1 }
  0xf4   :  { %v6100_v60 = vadd.f32 %v4847_v59, %v4438_v54  ;;  %v286_v61 = vpop.f32.mrb[11].mxu1 }
  0xf5   :  { %v6102_v62 = vadd.f32 %v4438_v54, %v286_v61 }
  0xf7   :  { %v4850_v63 = vpop.f32.mrb[12].mxu1 }
  0xf8   :  { %v6104_v0 = vadd.f32 %v4850_v63, %v4438_v54  ;;  %v296_v1 = vpop.f32.mrb[13].mxu1 }
  0xf9   :  { %v6106_v3 = vadd.f32 %v4438_v54, %v296_v1 }
  0xfb   :  { %v4853_v5 = vpop.f32.mrb[14].mxu1 }
  0xfc   :  { %v306_v6 = vpop.f32.mrb[15].mxu1  ;;  %v312_v8 = vadd.f32 %v4853_v5, %v4438_v54 }
  0xfd   :  { %v6108_v7 = vadd.f32 %v4438_v54, %v306_v6 }
  0xff   :  { %v463_v9 = vpop.f32.mrb[16].mxu1 }
 0x100   :  { %v467_v11 = vadd.f32 %v463_v9, %v312_v8  ;;  %v4875_v12 = vpop.f32.mrb[17].mxu1 }
 0x102   :  { %5611 = vtanh.f32 %v467_v11  ;;  %v4448_v15 = vmul.f32 -1.442695, %v467_v11 }
 0x103   :  { %5613 = vtanh.f32 %v396_v41 }
 0x104   :  { %5615 = vpow2.f32 %v4448_v15 }
 0x105   :  { %5617 = vpow2.f32 %v4447_v17 }
 0x10c   :  { %v5612_v13 = vpop.eup %5611 }
 0x10d   :  { %501 = vrot.lane.b32.xlu0 %v5612_v13, %s5870_s6  ;;  %v5614_v14 = vpop.eup %5613 }
 0x10e   :  { %v5616_v18 = vpop.eup %5615 }
 0x10f   :  { %v495_v19 = vadd.f32 1.0, %v5616_v18  ;;  %v5618_v20 = vpop.eup %5617 }
 0x110   :  { %v471_v21 = vadd.f32 1.0, %v5618_v20 }
 0x111   :  { %477 = vrot.lane.b32.xlu0 %v5614_v14, %s5870_s6  ;;  %5619 = vrcp.f32 %v495_v19 }
 0x112   :  { %5621 = vrcp.f32 %v471_v21 }
 0x11b   :  { %v5620_v22 = vpop.eup %5619 }
 0x11c   :  { %v5622_v25 = vpop.eup %5621  ;;  %v499_v28 = vmul.f32 0.0, %v5620_v22 }
 0x11d   :  { %v475_v32 = vmul.f32 0.0, %v5622_v25 }
 0x17f   :  { %v502_v23 = vpop.permute.xlu0 %501 }
 0x180   :  { %v504_v24 = vmul.f32 %v5620_v22, %v502_v23 }
 0x182   :  { %506 = vrot.lane.b32.xlu1 %v504_v24, %s5871_s16 }
 0x183   :  { %v478_v26 = vpop.permute.xlu0 %477 }
 0x184   :  { %v480_v27 = vmul.f32 %v5622_v25, %v478_v26 }
 0x186   :  { %482 = vrot.lane.b32.xlu1 %v480_v27, %s5871_s16 }
 0x1f4   :  { %v507_v29 = vpop.permute.xlu1 %506 }
 0x1f5   :  { %v509_v31 = vadd.f32 %v507_v29, %v499_v28 }
 0x1f7   :  { %5623 = vtanh.f32 %v509_v31 }
 0x1f8   :  { %v483_v34 = vpop.permute.xlu1 %482 }
 0x1f9   :  { %v485_v35 = vadd.f32 %v483_v34, %v475_v32 }
 0x1fb   :  { %5625 = vtanh.f32 %v485_v35 }
 0x201   :  { %v5624_v36 = vpop.eup %5623 }
 0x202   :  { %512 = vrot.lane.b32.xlu0 %v5624_v36, %s5870_s6 }
 0x205   :  { %v5626_v38 = vpop.eup %5625 }
 0x206   :  { %488 = vrot.lane.b32.xlu1 %v5626_v38, %s5870_s6 }
 0x274   :  { %v513_v39 = vpop.permute.xlu0 %512 }
 0x275   :  { %v515_v40 = vmul.f32 %v5620_v22, %v513_v39 }
 0x277   :  { %522 = vrot.lane.b32.xlu0 %v515_v40, %s5871_s16 }
 0x278   :  { %v489_v41 = vpop.permute.xlu1 %488 }
 0x279   :  { %v491_v42 = vmul.f32 %v5622_v25, %v489_v41 }
 0x27b   :  { %517 = vrot.lane.b32.xlu1 %v491_v42, %s5871_s16 }
 0x2e9   :  { %v523_v44 = vpop.permute.xlu0 %522 }
 0x2ea   :  { %525 = vst.msk [vmem:[#allocation3 + $0x38] sm:$0xff] %vm69_vm0, %v523_v44  ;;  %4896 = vmatmul.mubr.msk.f32.vlgmr.msra.gmra.mrb[18].mxu1 %vm69_vm0, %v523_v44 }
 0x2eb   :  { %5374 = vmatpush3.bf16.msra.mxu1 %v6046_v30  ;;  %4917 = vmatprep.mubr.msk.f32.mxu1 %vm5868_vm1, %v5869_v4 }
 0x2ec   :  { %5375 = vmatprep.subr.bf16.mxu1 %v5867_v2 }
 0x2ed   :  { %v518_v46 = vpop.permute.xlu1 %517 }
 0x2ee   :  { %520 = vst.msk [vmem:[#allocation2] sm:$0xff] %vm69_vm0, %v518_v46  ;;  %4885 = vmatmul.mubr.msk.f32.vlgmr.msra.gmra.mrb[2].mxu0 %vm69_vm0, %v518_v46 }
 0x2ef   :  { %5368 = vmatpush3.bf16.msra.mxu0 %v5973_v10  ;;  %5377 = vmatpush3.bf16.msra.mxu1 %v6057_v33 }
 0x2f0   :  { %5369 = vmatprep.subr.bf16.mxu0 %v5867_v2  ;;  %4906 = vmatprep.mubr.msk.f32.mxu0 %vm5868_vm1, %v5869_v4 }
 0x2f1   :  { %5384 = vmatprep.subr.bf16.mxu1 %v5867_v2 }
 0x2f3   :  { %5371 = vmatpush3.bf16.msra.mxu0 %v5992_v16 }
 0x2f4   :  { %5378 = vmatprep.subr.bf16.mxu0 %v5867_v2 }
 0x3bd   :  { %v667_v48 = vpop.f32.mrb[18].mxu1 }
 0x3be   :  { %v671_v50 = vadd.f32 %v667_v48, %v6108_v7  ;;  %v4897_v52 = vpop.f32.mrb[19].mxu1 }
 0x3c0   :  { %5627 = vtanh.f32 %v671_v50  ;;  %v4452_v63 = vmul.f32 -1.442695, %v671_v50 }
 0x3c1   :  { %v594_v54 = vpop.f32.mrb[2].mxu0 }
 0x3c2   :  { %v598_v55 = vadd.f32 %v594_v54, %v6079_v37  ;;  %v4886_v57 = vpop.f32.mrb[3].mxu0 }
 0x3c4   :  { %5629 = vtanh.f32 %v598_v55  ;;  %v4451_v1 = vmul.f32 -1.442695, %v598_v55 }
 0x3c5   :  { %5631 = vpow2.f32 %v4452_v63 }
 0x3c6   :  { %5633 = vpow2.f32 %v4451_v1 }
 0x3ca   :  { %v5628_v59 = vpop.eup %5627 }
 0x3cb   :  { %705 = vrot.lane.b32.xlu0 %v5628_v59, %s5870_s6 }
 0x3ce   :  { %v5630_v61 = vpop.eup %5629 }
 0x3cf   :  { %681 = vrot.lane.b32.xlu1 %v5630_v61, %s5870_s6  ;;  %v5632_v5 = vpop.eup %5631 }
 0x3d0   :  { %v699_v6 = vadd.f32 1.0, %v5632_v5  ;;  %v5634_v7 = vpop.eup %5633 }
 0x3d1   :  { %v675_v8 = vadd.f32 1.0, %v5634_v7 }
 0x3d2   :  { %5635 = vrcp.f32 %v699_v6 }
 0x3d3   :  { %5637 = vrcp.f32 %v675_v8 }
 0x3dc   :  { %v5636_v9 = vpop.eup %5635 }
 0x3dd   :  { %v5638_v12 = vpop.eup %5637  ;;  %v703_v15 = vmul.f32 %v5636_v9, %v509_v31 }
 0x3de   :  { %v679_v19 = vmul.f32 %v5638_v12, %v485_v35 }
 0x43d   :  { %v706_v37 = vpop.permute.xlu0 %705 }
 0x43e   :  { %v708_v11 = vmul.f32 %v5636_v9, %v706_v37 }
 0x440   :  { %710 = vrot.lane.b32.xlu0 %v708_v11, %s5871_s16 }
 0x441   :  { %v682_v13 = vpop.permute.xlu1 %681 }
 0x442   :  { %v684_v14 = vmul.f32 %v5638_v12, %v682_v13 }
 0x444   :  { %686 = vrot.lane.b32.xlu1 %v684_v14, %s5871_s16 }
 0x4b2   :  { %v711_v17 = vpop.permute.xlu0 %710 }
 0x4b3   :  { %v713_v18 = vadd.f32 %v711_v17, %v703_v15 }
 0x4b5   :  { %5639 = vtanh.f32 %v713_v18 }
 0x4b6   :  { %v687_v20 = vpop.permute.xlu1 %686 }
 0x4b7   :  { %v689_v21 = vadd.f32 %v687_v20, %v679_v19 }
 0x4b9   :  { %5641 = vtanh.f32 %v689_v21 }
 0x4bf   :  { %v5640_v22 = vpop.eup %5639 }
 0x4c0   :  { %716 = vrot.lane.b32.xlu0 %v5640_v22, %s5870_s6 }
 0x4c3   :  { %v5642_v23 = vpop.eup %5641 }
 0x4c4   :  { %692 = vrot.lane.b32.xlu1 %v5642_v23, %s5870_s6 }
 0x532   :  { %v717_v24 = vpop.permute.xlu0 %716 }
 0x533   :  { %v719_v25 = vmul.f32 %v5636_v9, %v717_v24 }
 0x535   :  { %726 = vrot.lane.b32.xlu0 %v719_v25, %s5871_s16 }
 0x536   :  { %v693_v26 = vpop.permute.xlu1 %692 }
 0x537   :  { %v695_v27 = vmul.f32 %v5638_v12, %v693_v26 }
 0x539   :  { %721 = vrot.lane.b32.xlu1 %v695_v27, %s5871_s16 }
 0x5a7   :  { %v727_v28 = vpop.permute.xlu0 %726 }
 0x5a8   :  { %729 = vst.msk [vmem:[#allocation3 + $0x30] sm:$0xff] %vm69_vm0, %v727_v28  ;;  %4918 = vmatmul.mubr.msk.f32.vlgmr.msra.gmra.mrb[20].mxu1 %vm69_vm0, %v727_v28 }
 0x5a9   :  { %5386 = vmatpush3.bf16.msra.mxu1 %v6046_v30  ;;  %4939 = vmatprep.mubr.msk.f32.mxu1 %vm5868_vm1, %v5869_v4 }
 0x5aa   :  { %5387 = vmatprep.subr.bf16.mxu1 %v5867_v2 }
 0x5ab   :  { %v722_v29 = vpop.permute.xlu1 %721 }
 0x5ac   :  { %724 = vst.msk [vmem:[#allocation2 + $0x8] sm:$0xff] %vm69_vm0, %v722_v29  ;;  %4907 = vmatmul.mubr.msk.f32.vlgmr.msra.gmra.mrb[4].mxu0 %vm69_vm0, %v722_v29 }
 0x5ad   :  { %5380 = vmatpush3.bf16.msra.mxu0 %v5973_v10  ;;  %5389 = vmatpush3.bf16.msra.mxu1 %v6057_v33 }
 0x5ae   :  { %5381 = vmatprep.subr.bf16.mxu0 %v5867_v2  ;;  %4928 = vmatprep.mubr.msk.f32.mxu0 %vm5868_vm1, %v5869_v4 }
 0x5af   :  { %5396 = vmatprep.subr.bf16.mxu1 %v5867_v2 }
 0x5b1   :  { %5383 = vmatpush3.bf16.msra.mxu0 %v5992_v16 }
 0x5b2   :  { %5390 = vmatprep.subr.bf16.mxu0 %v5867_v2 }
 0x67b   :  { %v871_v31 = vpop.f32.mrb[20].mxu1 }
 0x67c   :  { %v875_v32 = vadd.f32 %v871_v31, %v6104_v0  ;;  %v4919_v34 = vpop.f32.mrb[21].mxu1 }
 0x67e   :  { %5643 = vtanh.f32 %v875_v32  ;;  %v4456_v41 = vmul.f32 -1.442695, %v875_v32 }
 0x67f   :  { %v798_v35 = vpop.f32.mrb[4].mxu0 }
 0x680   :  { %v802_v36 = vadd.f32 %v798_v35, %v6083_v45  ;;  %v4908_v38 = vpop.f32.mrb[5].mxu0 }
 0x682   :  { %5645 = vtanh.f32 %v802_v36  ;;  %v4455_v42 = vmul.f32 -1.442695, %v802_v36 }
 0x683   :  { %5647 = vpow2.f32 %v4456_v41 }
 0x684   :  { %5649 = vpow2.f32 %v4455_v42 }
 0x688   :  { %v5644_v39 = vpop.eup %5643 }
 0x689   :  { %909 = vrot.lane.b32.xlu0 %v5644_v39, %s5870_s6 }
 0x68c   :  { %v5646_v40 = vpop.eup %5645 }
 0x68d   :  { %885 = vrot.lane.b32.xlu1 %v5646_v40, %s5870_s6  ;;  %v5648_v44 = vpop.eup %5647 }
 0x68e   :  { %v903_v46 = vadd.f32 1.0, %v5648_v44  ;;  %v5650_v0 = vpop.eup %5649 }
 0x68f   :  { %v879_v48 = vadd.f32 1.0, %v5650_v0 }
 0x690   :  { %5651 = vrcp.f32 %v903_v46 }
 0x691   :  { %5653 = vrcp.f32 %v879_v48 }
 0x69a   :  { %v5652_v50 = vpop.eup %5651 }
 0x69b   :  { %v5654_v54 = vpop.eup %5653  ;;  %v907_v59 = vmul.f32 %v5652_v50, %v713_v18 }
 0x69c   :  { %v883_v1 = vmul.f32 %v5654_v54, %v689_v21 }
 0x6fb   :  { %v910_v45 = vpop.permute.xlu0 %909 }
 0x6fc   :  { %v912_v52 = vmul.f32 %v5652_v50, %v910_v45 }
 0x6fe   :  { %914 = vrot.lane.b32.xlu0 %v912_v52, %s5871_s16 }
 0x6ff   :  { %v886_v55 = vpop.permute.xlu1 %885 }
 0x700   :  { %v888_v57 = vmul.f32 %v5654_v54, %v886_v55 }
 0x702   :  { %890 = vrot.lane.b32.xlu1 %v888_v57, %s5871_s16 }
 0x770   :  { %v915_v61 = vpop.permute.xlu0 %914 }
 0x771   :  { %v917_v63 = vadd.f32 %v915_v61, %v907_v59 }
 0x773   :  { %5655 = vtanh.f32 %v917_v63 }
 0x774   :  { %v891_v5 = vpop.permute.xlu1 %890 }
 0x775   :  { %v893_v6 = vadd.f32 %v891_v5, %v883_v1 }
 0x777   :  { %5657 = vtanh.f32 %v893_v6 }
 0x77d   :  { %v5656_v7 = vpop.eup %5655 }
 0x77e   :  { %920 = vrot.lane.b32.xlu0 %v5656_v7, %s5870_s6 }
 0x781   :  { %v5658_v8 = vpop.eup %5657 }
 0x782   :  { %896 = vrot.lane.b32.xlu1 %v5658_v8, %s5870_s6 }
 0x7f0   :  { %v921_v9 = vpop.permute.xlu0 %920 }
 0x7f1   :  { %v923_v37 = vmul.f32 %v5652_v50, %v921_v9 }
 0x7f3   :  { %930 = vrot.lane.b32.xlu0 %v923_v37, %s5871_s16 }
 0x7f4   :  { %v897_v11 = vpop.permute.xlu1 %896 }
 0x7f5   :  { %v899_v12 = vmul.f32 %v5654_v54, %v897_v11 }
 0x7f7   :  { %925 = vrot.lane.b32.xlu1 %v899_v12, %s5871_s16 }
 0x865   :  { %v931_v13 = vpop.permute.xlu0 %930 }
 0x866   :  { %933 = vst.msk [vmem:[#allocation3 + $0x28] sm:$0xff] %vm69_vm0, %v931_v13  ;;  %4940 = vmatmul.mubr.msk.f32.vlgmr.msra.gmra.mrb[22].mxu1 %vm69_vm0, %v931_v13 }
 0x867   :  { %5398 = vmatpush3.bf16.msra.mxu1 %v6046_v30  ;;  %4961 = vmatprep.mubr.msk.f32.mxu1 %vm5868_vm1, %v5869_v4 }
 0x868   :  { %5399 = vmatprep.subr.bf16.mxu1 %v5867_v2 }
 0x869   :  { %v926_v14 = vpop.permute.xlu1 %925 }
 0x86a   :  { %928 = vst.msk [vmem:[#allocation2 + $0x10] sm:$0xff] %vm69_vm0, %v926_v14  ;;  %4929 = vmatmul.mubr.msk.f32.vlgmr.msra.gmra.mrb[6].mxu0 %vm69_vm0, %v926_v14 }
 0x86b   :  { %5392 = vmatpush3.bf16.msra.mxu0 %v5973_v10  ;;  %5401 = vmatpush3.bf16.msra.mxu1 %v6057_v33 }
 0x86c   :  { %5393 = vmatprep.subr.bf16.mxu0 %v5867_v2  ;;  %4950 = vmatprep.mubr.msk.f32.mxu0 %vm5868_vm1, %v5869_v4 }
 0x86d   :  { %5408 = vmatprep.subr.bf16.mxu1 %v5867_v2 }
 0x86f   :  { %5395 = vmatpush3.bf16.msra.mxu0 %v5992_v16 }
 0x870   :  { %5402 = vmatprep.subr.bf16.mxu0 %v5867_v2 }
 0x939   :  { %v1075_v15 = vpop.f32.mrb[22].mxu1 }
 0x93a   :  { %v1079_v17 = vadd.f32 %v1075_v15, %v6106_v3  ;;  %v4941_v18 = vpop.f32.mrb[23].mxu1 }
 0x93c   :  { %5659 = vtanh.f32 %v1079_v17  ;;  %v4460_v24 = vmul.f32 -1.442695, %v1079_v17 }
 0x93d   :  { %v1002_v19 = vpop.f32.mrb[6].mxu0 }
 0x93e   :  { %v1006_v20 = vadd.f32 %v1002_v19, %v6081_v43  ;;  %v4930_v21 = vpop.f32.mrb[7].mxu0 }
 0x940   :  { %5661 = vtanh.f32 %v1006_v20  ;;  %v4459_v25 = vmul.f32 -1.442695, %v1006_v20 }
 0x941   :  { %5663 = vpow2.f32 %v4460_v24 }
 0x942   :  { %5665 = vpow2.f32 %v4459_v25 }
 0x946   :  { %v5660_v22 = vpop.eup %5659 }
 0x947   :  { %1113 = vrot.lane.b32.xlu0 %v5660_v22, %s5870_s6 }
 0x94a   :  { %v5662_v23 = vpop.eup %5661 }
 0x94b   :  { %1089 = vrot.lane.b32.xlu1 %v5662_v23, %s5870_s6  ;;  %v5664_v26 = vpop.eup %5663 }
 0x94c   :  { %v1107_v27 = vadd.f32 1.0, %v5664_v26  ;;  %v5666_v3 = vpop.eup %5665 }
 0x94d   :  { %v1083_v28 = vadd.f32 1.0, %v5666_v3 }
 0x94e   :  { %5667 = vrcp.f32 %v1107_v27 }
 0x94f   :  { %5669 = vrcp.f32 %v1083_v28 }
 0x958   :  { %v5668_v29 = vpop.eup %5667 }
 0x959   :  { %v5670_v32 = vpop.eup %5669  ;;  %v1111_v36 = vmul.f32 %v5668_v29, %v917_v63 }
 0x95a   :  { %v1087_v40 = vmul.f32 %v5670_v32, %v893_v6 }
 0x9b9   :  { %v1114_v43 = vpop.permute.xlu0 %1113 }
 0x9ba   :  { %v1116_v31 = vmul.f32 %v5668_v29, %v1114_v43 }
 0x9bc   :  { %1118 = vrot.lane.b32.xlu0 %v1116_v31, %s5871_s16 }
 0x9bd   :  { %v1090_v34 = vpop.permute.xlu1 %1089 }
 0x9be   :  { %v1092_v35 = vmul.f32 %v5670_v32, %v1090_v34 }
 0x9c0   :  { %1094 = vrot.lane.b32.xlu1 %v1092_v35, %s5871_s16 }
 0xa2e   :  { %v1119_v38 = vpop.permute.xlu0 %1118 }
 0xa2f   :  { %v1121_v39 = vadd.f32 %v1119_v38, %v1111_v36 }
 0xa31   :  { %5671 = vtanh.f32 %v1121_v39 }
 0xa32   :  { %v1095_v41 = vpop.permute.xlu1 %1094 }
 0xa33   :  { %v1097_v42 = vadd.f32 %v1095_v41, %v1087_v40 }
 0xa35   :  { %5673 = vtanh.f32 %v1097_v42 }
 0xa3b   :  { %v5672_v44 = vpop.eup %5671 }
 0xa3c   :  { %1124 = vrot.lane.b32.xlu0 %v5672_v44, %s5870_s6 }
 0xa3f   :  { %v5674_v46 = vpop.eup %5673 }
 0xa40   :  { %1100 = vrot.lane.b32.xlu1 %v5674_v46, %s5870_s6 }
 0xaae   :  { %v1125_v0 = vpop.permute.xlu0 %1124 }
 0xaaf   :  { %v1127_v48 = vmul.f32 %v5668_v29, %v1125_v0 }
 0xab1   :  { %1134 = vrot.lane.b32.xlu0 %v1127_v48, %s5871_s16 }
 0xab2   :  { %v1101_v50 = vpop.permute.xlu1 %1100 }
 0xab3   :  { %v1103_v45 = vmul.f32 %v5670_v32, %v1101_v50 }
 0xab5   :  { %1129 = vrot.lane.b32.xlu1 %v1103_v45, %s5871_s16 }
 0xb23   :  { %v1135_v52 = vpop.permute.xlu0 %1134 }
 0xb24   :  { %1137 = vst.msk [vmem:[#allocation3 + $0x20] sm:$0xff] %vm69_vm0, %v1135_v52  ;;  %4962 = vmatmul.mubr.msk.f32.vlgmr.msra.gmra.mrb[24].mxu1 %vm69_vm0, %v1135_v52 }
 0xb25   :  { %5410 = vmatpush3.bf16.msra.mxu1 %v6046_v30  ;;  %4983 = vmatprep.mubr.msk.f32.mxu1 %vm5868_vm1, %v5869_v4 }
 0xb26   :  { %5411 = vmatprep.subr.bf16.mxu1 %v5867_v2 }
 0xb27   :  { %v1130_v54 = vpop.permute.xlu1 %1129 }
 0xb28   :  { %1132 = vst.msk [vmem:[#allocation2 + $0x18] sm:$0xff] %vm69_vm0, %v1130_v54  ;;  %4951 = vmatmul.mubr.msk.f32.vlgmr.msra.gmra.mrb[8].mxu0 %vm69_vm0, %v1130_v54 }
 0xb29   :  { %5404 = vmatpush3.bf16.msra.mxu0 %v5973_v10  ;;  %5413 = vmatpush3.bf16.msra.mxu1 %v6057_v33 }
 0xb2a   :  { %5405 = vmatprep.subr.bf16.mxu0 %v5867_v2  ;;  %4972 = vmatprep.mubr.msk.f32.mxu0 %vm5868_vm1, %v5869_v4 }
 0xb2b   :  { %5420 = vmatprep.subr.bf16.mxu1 %v5867_v2 }
 0xb2d   :  { %5407 = vmatpush3.bf16.msra.mxu0 %v5992_v16 }
 0xb2e   :  { %5414 = vmatprep.subr.bf16.mxu0 %v5867_v2 }
 0xbf7   :  { %v1279_v55 = vpop.f32.mrb[24].mxu1 }
 0xbf8   :  { %v1283_v57 = vadd.f32 %v1279_v55, %v6100_v60  ;;  %v4963_v59 = vpop.f32.mrb[25].mxu1 }
 0xbfa   :  { %5675 = vtanh.f32 %v1283_v57  ;;  %v4464_v7 = vmul.f32 -1.442695, %v1283_v57 }
 0xbfb   :  { %v1206_v61 = vpop.f32.mrb[8].mxu0 }
 0xbfc   :  { %v1210_v63 = vadd.f32 %v1206_v61, %v6087_v49  ;;  %v4952_v1 = vpop.f32.mrb[9].mxu0 }
 0xbfe   :  { %5677 = vtanh.f32 %v1210_v63  ;;  %v4463_v8 = vmul.f32 -1.442695, %v1210_v63 }
 0xbff   :  { %5679 = vpow2.f32 %v4464_v7 }
 0xc00   :  { %5681 = vpow2.f32 %v4463_v8 }
 0xc04   :  { %v5676_v5 = vpop.eup %5675 }
 0xc05   :  { %1317 = vrot.lane.b32.xlu0 %v5676_v5, %s5870_s6 }
 0xc08   :  { %v5678_v6 = vpop.eup %5677 }
 0xc09   :  { %1293 = vrot.lane.b32.xlu1 %v5678_v6, %s5870_s6  ;;  %v5680_v9 = vpop.eup %5679 }
 0xc0a   :  { %v1311_v37 = vadd.f32 1.0, %v5680_v9  ;;  %v5682_v60 = vpop.eup %5681 }
 0xc0b   :  { %v1287_v11 = vadd.f32 1.0, %v5682_v60 }
 0xc0c   :  { %5683 = vrcp.f32 %v1311_v37 }
 0xc0d   :  { %5685 = vrcp.f32 %v1287_v11 }
 0xc16   :  { %v5684_v12 = vpop.eup %5683 }
 0xc17   :  { %v5686_v14 = vpop.eup %5685  ;;  %v1315_v18 = vmul.f32 %v5684_v12, %v1121_v39 }
 0xc18   :  { %v1291_v21 = vmul.f32 %v5686_v14, %v1097_v42 }
 0xc77   :  { %v1318_v49 = vpop.permute.xlu0 %1317 }
 0xc78   :  { %v1320_v13 = vmul.f32 %v5684_v12, %v1318_v49 }
 0xc7a   :  { %1322 = vrot.lane.b32.xlu0 %v1320_v13, %s5871_s16 }
 0xc7b   :  { %v1294_v15 = vpop.permute.xlu1 %1293 }
 0xc7c   :  { %v1296_v17 = vmul.f32 %v5686_v14, %v1294_v15 }
 0xc7e   :  { %1298 = vrot.lane.b32.xlu1 %v1296_v17, %s5871_s16 }
 0xcec   :  { %v1323_v19 = vpop.permute.xlu0 %1322 }
 0xced   :  { %v1325_v20 = vadd.f32 %v1323_v19, %v1315_v18 }
 0xcef   :  { %5687 = vtanh.f32 %v1325_v20 }
 0xcf0   :  { %v1299_v22 = vpop.permute.xlu1 %1298 }
 0xcf1   :  { %v1301_v23 = vadd.f32 %v1299_v22, %v1291_v21 }
 0xcf3   :  { %5689 = vtanh.f32 %v1301_v23 }
 0xcf9   :  { %v5688_v24 = vpop.eup %5687 }
 0xcfa   :  { %1328 = vrot.lane.b32.xlu0 %v5688_v24, %s5870_s6 }
 0xcfd   :  { %v5690_v25 = vpop.eup %5689 }
 0xcfe   :  { %1304 = vrot.lane.b32.xlu1 %v5690_v25, %s5870_s6 }
 0xd6c   :  { %v1329_v26 = vpop.permute.xlu0 %1328 }
 0xd6d   :  { %v1331_v27 = vmul.f32 %v5684_v12, %v1329_v26 }
 0xd6f   :  { %1338 = vrot.lane.b32.xlu0 %v1331_v27, %s5871_s16 }
 0xd70   :  { %v1305_v3 = vpop.permute.xlu1 %1304 }
 0xd71   :  { %v1307_v28 = vmul.f32 %v5686_v14, %v1305_v3 }
 0xd73   :  { %1333 = vrot.lane.b32.xlu1 %v1307_v28, %s5871_s16 }
 0xde1   :  { %v1339_v29 = vpop.permute.xlu0 %1338 }
 0xde2   :  { %1341 = vst.msk [vmem:[#allocation3 + $0x18] sm:$0xff] %vm69_vm0, %v1339_v29  ;;  %4984 = vmatmul.mubr.msk.f32.vlgmr.msra.gmra.mrb[26].mxu1 %vm69_vm0, %v1339_v29 }
 0xde3   :  { %5422 = vmatpush3.bf16.msra.mxu1 %v6046_v30  ;;  %5005 = vmatprep.mubr.msk.f32.mxu1 %vm5868_vm1, %v5869_v4 }
 0xde4   :  { %5423 = vmatprep.subr.bf16.mxu1 %v5867_v2 }
 0xde5   :  { %v1334_v43 = vpop.permute.xlu1 %1333 }
 0xde6   :  { %1336 = vst.msk [vmem:[#allocation2 + $0x20] sm:$0xff] %vm69_vm0, %v1334_v43  ;;  %4973 = vmatmul.mubr.msk.f32.vlgmr.msra.gmra.mrb[10].mxu0 %vm69_vm0, %v1334_v43 }
 0xde7   :  { %5416 = vmatpush3.bf16.msra.mxu0 %v5973_v10  ;;  %5425 = vmatpush3.bf16.msra.mxu1 %v6057_v33 }
 0xde8   :  { %5417 = vmatprep.subr.bf16.mxu0 %v5867_v2  ;;  %4994 = vmatprep.mubr.msk.f32.mxu0 %vm5868_vm1, %v5869_v4 }
 0xde9   :  { %5432 = vmatprep.subr.bf16.mxu1 %v5867_v2 }
 0xdeb   :  { %5419 = vmatpush3.bf16.msra.mxu0 %v5992_v16 }
 0xdec   :  { %5426 = vmatprep.subr.bf16.mxu0 %v5867_v2 }
 0xeb5   :  { %v1483_v31 = vpop.f32.mrb[26].mxu1 }
 0xeb6   :  { %v1487_v32 = vadd.f32 %v1483_v31, %v6102_v62  ;;  %v4985_v34 = vpop.f32.mrb[27].mxu1 }
 0xeb8   :  { %5691 = vtanh.f32 %v1487_v32  ;;  %v4468_v41 = vmul.f32 -1.442695, %v1487_v32 }
 0xeb9   :  { %v1410_v35 = vpop.f32.mrb[10].mxu0 }
 0xeba   :  { %v1414_v36 = vadd.f32 %v1410_v35, %v6085_v47  ;;  %v4974_v38 = vpop.f32.mrb[11].mxu0 }
 0xebc   :  { %5693 = vtanh.f32 %v1414_v36  ;;  %v4467_v42 = vmul.f32 -1.442695, %v1414_v36 }
 0xebd   :  { %5695 = vpow2.f32 %v4468_v41 }
 0xebe   :  { %5697 = vpow2.f32 %v4467_v42 }
 0xec2   :  { %v5692_v39 = vpop.eup %5691 }
 0xec3   :  { %1521 = vrot.lane.b32.xlu0 %v5692_v39, %s5870_s6 }
 0xec6   :  { %v5694_v40 = vpop.eup %5693 }
 0xec7   :  { %1497 = vrot.lane.b32.xlu1 %v5694_v40, %s5870_s6  ;;  %v5696_v44 = vpop.eup %5695 }
 0xec8   :  { %v1515_v46 = vadd.f32 1.0, %v5696_v44  ;;  %v5698_v62 = vpop.eup %5697 }
 0xec9   :  { %v1491_v0 = vadd.f32 1.0, %v5698_v62 }
 0xeca   :  { %5699 = vrcp.f32 %v1515_v46 }
 0xecb   :  { %5701 = vrcp.f32 %v1491_v0 }
 0xed4   :  { %v5700_v48 = vpop.eup %5699 }
 0xed5   :  { %v5702_v45 = vpop.eup %5701  ;;  %v1519_v55 = vmul.f32 %v5700_v48, %v1325_v20 }
 0xed6   :  { %v1495_v61 = vmul.f32 %v5702_v45, %v1301_v23 }
 0xf35   :  { %v1522_v47 = vpop.permute.xlu0 %1521 }
 0xf36   :  { %v1524_v50 = vmul.f32 %v5700_v48, %v1522_v47 }
 0xf38   :  { %1526 = vrot.lane.b32.xlu0 %v1524_v50, %s5871_s16 }
 0xf39   :  { %v1498_v52 = vpop.permute.xlu1 %1497 }
 0xf3a   :  { %v1500_v54 = vmul.f32 %v5702_v45, %v1498_v52 }
 0xf3c   :  { %1502 = vrot.lane.b32.xlu1 %v1500_v54, %s5871_s16 }
 0xfaa   :  { %v1527_v57 = vpop.permute.xlu0 %1526 }
 0xfab   :  { %v1529_v59 = vadd.f32 %v1527_v57, %v1519_v55 }
 0xfad   :  { %5703 = vtanh.f32 %v1529_v59 }
 0xfae   :  { %v1503_v63 = vpop.permute.xlu1 %1502 }
 0xfaf   :  { %v1505_v1 = vadd.f32 %v1503_v63, %v1495_v61 }
 0xfb1   :  { %5705 = vtanh.f32 %v1505_v1 }
 0xfb7   :  { %v5704_v5 = vpop.eup %5703 }
 0xfb8   :  { %1532 = vrot.lane.b32.xlu0 %v5704_v5, %s5870_s6 }
 0xfbb   :  { %v5706_v6 = vpop.eup %5705 }
 0xfbc   :  { %1508 = vrot.lane.b32.xlu1 %v5706_v6, %s5870_s6 }
0x102a   :  { %v1533_v7 = vpop.permute.xlu0 %1532 }
0x102b   :  { %v1535_v8 = vmul.f32 %v5700_v48, %v1533_v7 }
0x102d   :  { %1542 = vrot.lane.b32.xlu0 %v1535_v8, %s5871_s16 }
0x102e   :  { %v1509_v9 = vpop.permute.xlu1 %1508 }
0x102f   :  { %v1511_v37 = vmul.f32 %v5702_v45, %v1509_v9 }
0x1031   :  { %1537 = vrot.lane.b32.xlu1 %v1511_v37, %s5871_s16 }
0x109f   :  { %v1543_v60 = vpop.permute.xlu0 %1542 }
0x10a0   :  { %1545 = vst.msk [vmem:[#allocation3 + $0x10] sm:$0xff] %vm69_vm0, %v1543_v60  ;;  %5006 = vmatmul.mubr.msk.f32.vlgmr.msra.gmra.mrb[28].mxu1 %vm69_vm0, %v1543_v60 }
0x10a1   :  { %5434 = vmatpush3.bf16.msra.mxu1 %v6046_v30  ;;  %5027 = vmatprep.mubr.msk.f32.mxu1 %vm5868_vm1, %v5869_v4 }
0x10a2   :  { %5435 = vmatprep.subr.bf16.mxu1 %v5867_v2 }
0x10a3   :  { %v1538_v11 = vpop.permute.xlu1 %1537 }
0x10a4   :  { %1540 = vst.msk [vmem:[#allocation2 + $0x28] sm:$0xff] %vm69_vm0, %v1538_v11  ;;  %4995 = vmatmul.mubr.msk.f32.vlgmr.msra.gmra.mrb[12].mxu0 %vm69_vm0, %v1538_v11 }
0x10a5   :  { %5428 = vmatpush3.bf16.msra.mxu0 %v5973_v10  ;;  %5437 = vmatpush3.bf16.msra.mxu1 %v6057_v33 }
0x10a6   :  { %5429 = vmatprep.subr.bf16.mxu0 %v5867_v2  ;;  %5016 = vmatprep.mubr.msk.f32.mxu0 %vm5868_vm1, %v5869_v4 }
0x10a9   :  { %5431 = vmatpush3.bf16.msra.mxu0 %v5992_v16 }
0x1173   :  { %v1687_v30 = vpop.f32.mrb[28].mxu1 }
0x1174   :  { %v1691_v12 = vadd.f32 %v1687_v30, %v6096_v56  ;;  %v5007_v49 = vpop.f32.mrb[29].mxu1  ;;  %v1974_v30 = vld [vmem:[%s6714_s7 + $0x20] sm:$0xff] }
0x1175   :  { %v1982_v49 = vld [vmem:[%s6715_s10 + $0x20] sm:$0xff] }
0x1176   :  { %5707 = vtanh.f32 %v1691_v12  ;;  %v4472_v17 = vmul.f32 -1.442695, %v1691_v12  ;;  %v1975_v12 = vld [vmem:[%s6714_s7 + $0x28] sm:$0xff] }
0x1177   :  { %v1614_v13 = vpop.f32.mrb[12].mxu0 }
0x1178   :  { %v1618_v14 = vadd.f32 %v1614_v13, %v6091_v53  ;;  %v4996_v15 = vpop.f32.mrb[13].mxu0  ;;  %v5438_v13 = vpack.c.bf16 %v1975_v12, %v1974_v30 }
0x117a   :  { %5709 = vtanh.f32 %v1618_v14  ;;  %v4471_v18 = vmul.f32 -1.442695, %v1618_v14  ;;  %v1983_v14 = vld [vmem:[%s6715_s10 + $0x28] sm:$0xff]  ;;  %5439 = vmatprep.subr.bf16.mxu0 %v5438_v13 }
0x117b   :  { %5711 = vpow2.f32 %v4472_v17  ;;  %v5454_v15 = vpack.c.bf16 %v1983_v14, %v1982_v49  ;;  %v1984_v17 = vld [vmem:[%s6715_s10 + $0x30] sm:$0xff] }
0x117c   :  { %5713 = vpow2.f32 %v4471_v18 }
0x117d   :  { %5455 = vmatprep.subr.bf16.mxu1 %v5454_v15 }
0x1180   :  { %v5708_v10 = vpop.eup %5707 }
0x1181   :  { %1725 = vrot.lane.b32.xlu0 %v5708_v10, %s5870_s6  ;;  %v1976_v10 = vld [vmem:[%s6714_s7 + $0x30] sm:$0xff] }
0x1184   :  { %v5710_v33 = vpop.eup %5709 }
0x1185   :  { %1701 = vrot.lane.b32.xlu1 %v5710_v33, %s5870_s6  ;;  %v5712_v16 = vpop.eup %5711  ;;  %v1977_v33 = vld [vmem:[%s6714_s7 + $0x38] sm:$0xff] }
0x1186   :  { %v1719_v19 = vadd.f32 1.0, %v5712_v16  ;;  %v5714_v56 = vpop.eup %5713  ;;  %v5442_v18 = vpack.c.bf16 %v1977_v33, %v1976_v10  ;;  %v1985_v16 = vld [vmem:[%s6715_s10 + $0x38] sm:$0xff] }
0x1187   :  { %v1695_v20 = vadd.f32 1.0, %v5714_v56  ;;  %v1978_v56 = vld [vmem:[%s6715_s10] sm:$0xff] }
0x1188   :  { %5715 = vrcp.f32 %v1719_v19  ;;  %v5458_v19 = vpack.c.bf16 %v1985_v16, %v1984_v17 }
0x1189   :  { %5717 = vrcp.f32 %v1695_v20  ;;  %v1979_v20 = vld [vmem:[%s6715_s10 + $0x8] sm:$0xff] }
0x1192   :  { %v5716_v21 = vpop.eup %5715 }
0x1193   :  { %v5718_v23 = vpop.eup %5717  ;;  %v1723_v26 = vmul.f32 %v5716_v21, %v1529_v59 }
0x1194   :  { %v1699_v28 = vmul.f32 %v5718_v23, %v1505_v1 }
0x11f3   :  { %v1726_v53 = vpop.permute.xlu0 %1725 }
0x11f4   :  { %v1728_v22 = vmul.f32 %v5716_v21, %v1726_v53  ;;  %v5462_v53 = vpack.c.bf16 %v1979_v20, %v1978_v56 }
0x11f6   :  { %1730 = vrot.lane.b32.xlu0 %v1728_v22, %s5871_s16 }
0x11f7   :  { %v1702_v24 = vpop.permute.xlu1 %1701 }
0x11f8   :  { %v1704_v25 = vmul.f32 %v5718_v23, %v1702_v24  ;;  %v1970_v24 = vld [vmem:[%s6714_s7] sm:$0xff] }
0x11fa   :  { %1706 = vrot.lane.b32.xlu1 %v1704_v25, %s5871_s16  ;;  %v1971_v25 = vld [vmem:[%s6714_s7 + $0x8] sm:$0xff] }
0x1268   :  { %v1731_v27 = vpop.permute.xlu0 %1730 }
0x1269   :  { %v1733_v3 = vadd.f32 %v1731_v27, %v1723_v26  ;;  %v5446_v27 = vpack.c.bf16 %v1971_v25, %v1970_v24 }
0x126b   :  { %5719 = vtanh.f32 %v1733_v3 }
0x126c   :  { %v1707_v29 = vpop.permute.xlu1 %1706 }
0x126d   :  { %v1709_v43 = vadd.f32 %v1707_v29, %v1699_v28  ;;  %v1980_v29 = vld [vmem:[%s6715_s10 + $0x10] sm:$0xff] }
0x126f   :  { %5721 = vtanh.f32 %v1709_v43 }
0x1275   :  { %v5720_v31 = vpop.eup %5719 }
0x1276   :  { %1736 = vrot.lane.b32.xlu0 %v5720_v31, %s5870_s6  ;;  %v1972_v31 = vld [vmem:[%s6714_s7 + $0x10] sm:$0xff] }
0x1279   :  { %v5722_v32 = vpop.eup %5721 }
0x127a   :  { %1712 = vrot.lane.b32.xlu1 %v5722_v32, %s5870_s6  ;;  %v1973_v32 = vld [vmem:[%s6714_s7 + $0x18] sm:$0xff] }
0x12e8   :  { %v1737_v34 = vpop.permute.xlu0 %1736 }
0x12e9   :  { %v1739_v35 = vmul.f32 %v5716_v21, %v1737_v34 }
0x12eb   :  { %1746 = vrot.lane.b32.xlu0 %v1739_v35, %s5871_s16 }
0x12ec   :  { %v1713_v36 = vpop.permute.xlu1 %1712 }
0x12ed   :  { %v1715_v38 = vmul.f32 %v5718_v23, %v1713_v36 }
0x12ef   :  { %1741 = vrot.lane.b32.xlu1 %v1715_v38, %s5871_s16  ;;  %v5450_v38 = vpack.c.bf16 %v1973_v32, %v1972_v31 }
0x135d   :  { %v1747_v39 = vpop.permute.xlu0 %1746 }
0x135e   :  { %1749 = vst.msk [vmem:[#allocation3 + $0x8] sm:$0xff] %vm69_vm0, %v1747_v39  ;;  %5028 = vmatmul.mubr.msk.f32.vlgmr.msra.gmra.mrb[30].mxu1 %vm69_vm0, %v1747_v39  ;;  %v1964_v39 = vld [vmem:[#allocation3 + $0x10] sm:$0xff] }
0x135f   :  { %5457 = vmatpush3.bf16.msra.mxu1 %v5454_v15 }
0x1360   :  { %5459 = vmatprep.subr.bf16.mxu1 %v5458_v19 }
0x1361   :  { %v1742_v40 = vpop.permute.xlu1 %1741 }
0x1362   :  { %1744 = vst.msk [vmem:[#allocation2 + $0x30] sm:$0xff] %vm69_vm0, %v1742_v40  ;;  %5017 = vmatmul.mubr.msk.f32.vlgmr.msra.gmra.mrb[14].mxu0 %vm69_vm0, %v1742_v40  ;;  %v1965_v40 = vld [vmem:[#allocation3 + $0x18] sm:$0xff] }
0x1363   :  { %5441 = vmatpush3.bf16.msra.mxu0 %v5438_v13  ;;  %5461 = vmatpush3.bf16.msra.mxu1 %v5458_v19 }
0x1364   :  { %5443 = vmatprep.subr.bf16.mxu0 %v5442_v18  ;;  %5463 = vmatprep.subr.bf16.mxu1 %v5462_v53 }
0x1365   :  { %v1963_v35 = vld [vmem:[#allocation3 + $0x8] sm:$0xff] }
0x1367   :  { %5445 = vmatpush3.bf16.msra.mxu0 %v5442_v18 }
0x1368   :  { %5447 = vmatprep.subr.bf16.mxu0 %v5446_v27 }
0x1431   :  { %v1891_v41 = vpop.f32.mrb[30].mxu1 }
0x1432   :  { %v1895_v42 = vadd.f32 %v1891_v41, %v6098_v58  ;;  %v5029_v44 = vpop.f32.mrb[31].mxu1  ;;  %v1966_v41 = vld [vmem:[#allocation3 + $0x20] sm:$0xff] }
0x1433   :  { %v1968_v44 = vld [vmem:[#allocation3 + $0x30] sm:$0xff] }
0x1434   :  { %5723 = vtanh.f32 %v1895_v42  ;;  %v4476_v50 = vmul.f32 -1.442695, %v1895_v42  ;;  %v1967_v42 = vld [vmem:[#allocation3 + $0x28] sm:$0xff] }
0x1435   :  { %v1818_v46 = vpop.f32.mrb[14].mxu0 }
0x1436   :  { %v1822_v62 = vadd.f32 %v1818_v46, %v6089_v51  ;;  %v5018_v0 = vpop.f32.mrb[15].mxu0  ;;  %v1969_v46 = vld [vmem:[#allocation3 + $0x38] sm:$0xff] }
0x1437   :  { %v2489_v0 = vld [vmem:[%s6716_s11 + $0x8] sm:$0xff] }
0x1438   :  { %5725 = vtanh.f32 %v1822_v62  ;;  %v4475_v45 = vmul.f32 -1.442695, %v1822_v62  ;;  %v2488_v62 = vld [vmem:[%s6716_s11] sm:$0xff] }
0x1439   :  { %5727 = vpow2.f32 %v4476_v50  ;;  %v1954_v50 = vld [vmem:[#allocation2] sm:$0xff] }
0x143a   :  { %5729 = vpow2.f32 %v4475_v45  ;;  %v1955_v45 = vld [vmem:[#allocation2 + $0x8] sm:$0xff] }
0x143e   :  { %v5724_v48 = vpop.eup %5723 }
0x143f   :  { %1929 = vrot.lane.b32.xlu0 %v5724_v48, %s5870_s6  ;;  %v2484_v48 = vld [vmem:[%s6717_s8] sm:$0xff] }
0x1442   :  { %v5726_v47 = vpop.eup %5725 }
0x1443   :  { %1905 = vrot.lane.b32.xlu1 %v5726_v47, %s5870_s6  ;;  %v5728_v52 = vpop.eup %5727  ;;  %v2485_v47 = vld [vmem:[%s6717_s8 + $0x8] sm:$0xff] }
0x1444   :  { %v1923_v54 = vadd.f32 1.0, %v5728_v52  ;;  %v5730_v58 = vpop.eup %5729  ;;  %v6368_v52 = vpack.c.bf16 %v2489_v0, %v2488_v62 }
0x1445   :  { %v1899_v55 = vadd.f32 1.0, %v5730_v58  ;;  %v2490_v58 = vld [vmem:[%s6716_s11 + $0x10] sm:$0xff] }
0x1446   :  { %5731 = vrcp.f32 %v1923_v54  ;;  %v6370_v54 = vpack.c.bf16 %v2485_v47, %v2484_v48 }
0x1447   :  { %5733 = vrcp.f32 %v1899_v55  ;;  %v2491_v55 = vld [vmem:[%s6716_s11 + $0x18] sm:$0xff] }
0x1450   :  { %v5732_v57 = vpop.eup %5731 }
0x1451   :  { %v5734_v61 = vpop.eup %5733  ;;  %v1927_v5 = vmul.f32 %v5732_v57, %v1733_v3 }
0x1452   :  { %v1903_v8 = vmul.f32 %v5734_v61, %v1709_v43  ;;  %v1981_v43 = vld [vmem:[%s6715_s10 + $0x18] sm:$0xff] }
0x1453   :  { %v5466_v36 = vpack.c.bf16 %v1981_v43, %v1980_v29 }
0x14b1   :  { %v1930_v51 = vpop.permute.xlu0 %1929 }
0x14b2   :  { %v1932_v59 = vmul.f32 %v5732_v57, %v1930_v51  ;;  %v2487_v51 = vld [vmem:[%s6717_s8 + $0x18] sm:$0xff] }
0x14b4   :  { %1934 = vrot.lane.b32.xlu0 %v1932_v59, %s5871_s16  ;;  %v1956_v59 = vld [vmem:[#allocation2 + $0x10] sm:$0xff] }
0x14b5   :  { %v1906_v63 = vpop.permute.xlu1 %1905 }
0x14b6   :  { %v1908_v1 = vmul.f32 %v5734_v61, %v1906_v63 }
0x14b8   :  { %1910 = vrot.lane.b32.xlu1 %v1908_v1, %s5871_s16  ;;  %v1957_v1 = vld [vmem:[#allocation2 + $0x18] sm:$0xff] }
0x1526   :  { %v1935_v6 = vpop.permute.xlu0 %1934 }
0x1527   :  { %v1937_v7 = vadd.f32 %v1935_v6, %v1927_v5  ;;  %v1958_v5 = vld [vmem:[#allocation2 + $0x20] sm:$0xff]  ;;  %v1959_v6 = vld [vmem:[#allocation2 + $0x28] sm:$0xff] }
0x1529   :  { %5735 = vtanh.f32 %v1937_v7  ;;  %v1960_v7 = vld [vmem:[#allocation2 + $0x30] sm:$0xff] }
0x152a   :  { %v1911_v9 = vpop.permute.xlu1 %1910 }
0x152b   :  { %v1913_v37 = vadd.f32 %v1911_v9, %v1903_v8  ;;  %v4493_v9 = vld [vmem:[%s6718_s9] ss:$0 sm:$0xff] }
0x152d   :  { %5737 = vtanh.f32 %v1913_v37  ;;  %v4510_v37 = vld [vmem:[%s6719_s12] ss:$0 sm:$0xff] }
0x1533   :  { %v5736_v60 = vpop.eup %5735 }
0x1534   :  { %1940 = vrot.lane.b32.xlu0 %v5736_v60, %s5870_s6 }
0x1537   :  { %v5738_v11 = vpop.eup %5737 }
0x1538   :  { %1916 = vrot.lane.b32.xlu1 %v5738_v11, %s5870_s6 }
0x15a6   :  { %v1941_v21 = vpop.permute.xlu0 %1940 }
0x15a7   :  { %v1943_v22 = vmul.f32 %v5732_v57, %v1941_v21  ;;  %v2486_v57 = vld [vmem:[%s6717_s8 + $0x10] sm:$0xff] }
0x15a8   :  { %v6392_v63 = vpack.c.bf16 %v2487_v51, %v2486_v57 }
0x15a9   :  { %1950 = vrot.lane.b32.xlu0 %v1943_v22, %s5871_s16 }
0x15aa   :  { %v1917_v23 = vpop.permute.xlu1 %1916 }
0x15ab   :  { %v1919_v26 = vmul.f32 %v5734_v61, %v1917_v23  ;;  %v6390_v61 = vpack.c.bf16 %v2491_v55, %v2490_v58 }
0x15ad   :  { %1945 = vrot.lane.b32.xlu1 %v1919_v26, %s5871_s16 }
0x161b   :  { %v1951_v3 = vpop.permute.xlu0 %1950 }
0x161c   :  { %1953 = vst.msk [vmem:[#allocation3] sm:$0xff] %vm69_vm0, %v1951_v3 }
0x161f   :  { %v1946_v28 = vpop.permute.xlu1 %1945 }
0x1620   :  { %1948 = vst.msk [vmem:[#allocation2 + $0x38] sm:$0xff] %vm69_vm0, %v1946_v28 }
0x1623   :  { %v1962_v34 = vld [vmem:[#allocation3] sm:$0xff] }
0x1624   :  { %5038 = vmatprep.mubr.msk.f32.mxu0 %vm69_vm0, %v1962_v34  ;;  %5078 = vmatprep.mubr.msk.f32.mxu1 %vm69_vm0, %v1962_v34 }
0x1625   :  { %5039 = vmatmul.mubr.msk.f32.vlgmr.msra.gmra.mrb[16].mxu0 %vm69_vm0, %v1963_v35  ;;  %5079 = vmatmul.mubr.msk.f32.vlgmr.msra.gmra.mrb[32].mxu1 %vm69_vm0, %v1963_v35 }
0x1626   :  { %5041 = vmatprep.mubr.msk.f32.mxu0 %vm69_vm0, %v1964_v39  ;;  %5081 = vmatprep.mubr.msk.f32.mxu1 %vm69_vm0, %v1964_v39 }
0x1627   :  { %5465 = vmatpush3.bf16.msra.mxu1 %v5462_v53  ;;  %5449 = vmatpush3.bf16.msra.mxu0 %v5446_v27  ;;  %v1961_v8 = vld [vmem:[#allocation2 + $0x38] sm:$0xff] }
0x1628   :  { %5467 = vmatprep.subr.bf16.mxu1 %v5466_v36  ;;  %5451 = vmatprep.subr.bf16.mxu0 %v5450_v38 }
0x1629   :  { %5042 = vmatmul.mubr.msk.f32.gmra.mrb[18].mxu0 %vm69_vm0, %v1965_v40  ;;  %5082 = vmatmul.mubr.msk.f32.gmra.mrb[34].mxu1 %vm69_vm0, %v1965_v40 }
0x162a   :  { %5044 = vmatprep.mubr.msk.f32.mxu0 %vm69_vm0, %v1966_v41  ;;  %5084 = vmatprep.mubr.msk.f32.mxu1 %vm69_vm0, %v1966_v41 }
0x162b   :  { %5469 = vmatpush3.bf16.msra.mxu1 %v5466_v36  ;;  %5453 = vmatpush3.bf16.msra.mxu0 %v5450_v38 }
0x162c   :  { %5476 = vmatprep.subr.bf16.mxu1 %v5867_v2  ;;  %5470 = vmatprep.subr.bf16.mxu0 %v5867_v2 }
0x162d   :  { %5045 = vmatmul.mubr.msk.f32.gmra.mrb[20].mxu0 %vm69_vm0, %v1967_v42  ;;  %5085 = vmatmul.mubr.msk.f32.gmra.mrb[36].mxu1 %vm69_vm0, %v1967_v42 }
0x162e   :  { %5047 = vmatprep.mubr.msk.f32.mxu0 %vm69_vm0, %v1968_v44  ;;  %5087 = vmatprep.mubr.msk.f32.mxu1 %vm69_vm0, %v1968_v44 }
0x1631   :  { %5048 = vmatmul.mubr.msk.f32.gmra.mrb[22].mxu0 %vm69_vm0, %v1969_v46  ;;  %5088 = vmatmul.mubr.msk.f32.gmra.mrb[38].mxu1 %vm69_vm0, %v1969_v46 }
0x1632   :  { %5058 = vmatprep.mubr.msk.f32.mxu0 %vm69_vm0, %v1954_v50  ;;  %5098 = vmatprep.mubr.msk.f32.mxu1 %vm69_vm0, %v1954_v50 }
0x1635   :  { %5059 = vmatmul.mubr.msk.f32.vlgmr.msra.gmra.mrb[16].mxu0 %vm69_vm0, %v1955_v45  ;;  %5099 = vmatmul.mubr.msk.f32.vlgmr.msra.gmra.mrb[32].mxu1 %vm69_vm0, %v1955_v45 }
0x1636   :  { %5061 = vmatprep.mubr.msk.f32.mxu0 %vm69_vm0, %v1956_v59  ;;  %5101 = vmatprep.mubr.msk.f32.mxu1 %vm69_vm0, %v1956_v59 }
0x1637   :  { %5478 = vmatpush3.bf16.msra.mxu1 %v6368_v52  ;;  %5472 = vmatpush3.bf16.msra.mxu0 %v6370_v54 }
0x1638   :  { %5479 = vmatprep.subr.bf16.mxu1 %v5867_v2  ;;  %5473 = vmatprep.subr.bf16.mxu0 %v5867_v2 }
0x1639   :  { %5062 = vmatmul.mubr.msk.f32.gmra.mrb[18].mxu0 %vm69_vm0, %v1957_v1  ;;  %5102 = vmatmul.mubr.msk.f32.gmra.mrb[34].mxu1 %vm69_vm0, %v1957_v1 }
0x163a   :  { %5064 = vmatprep.mubr.msk.f32.mxu0 %vm69_vm0, %v1958_v5  ;;  %5104 = vmatprep.mubr.msk.f32.mxu1 %vm69_vm0, %v1958_v5 }
0x163b   :  { %5481 = vmatpush3.bf16.msra.mxu1 %v6390_v61  ;;  %5475 = vmatpush3.bf16.msra.mxu0 %v6392_v63 }
0x163c   :  { %5482 = vmatprep.subr.bf16.mxu0 %v5867_v2  ;;  %5488 = vmatprep.subr.bf16.mxu1 %v5867_v2 }
0x163d   :  { %5065 = vmatmul.mubr.msk.f32.gmra.mrb[20].mxu0 %vm69_vm0, %v1959_v6  ;;  %5105 = vmatmul.mubr.msk.f32.gmra.mrb[36].mxu1 %vm69_vm0, %v1959_v6 }
0x163e   :  { %5067 = vmatprep.mubr.msk.f32.mxu0 %vm69_vm0, %v1960_v7  ;;  %5107 = vmatprep.mubr.msk.f32.mxu1 %vm69_vm0, %v1960_v7 }
0x1641   :  { %5068 = vmatmul.mubr.msk.f32.gmra.mrb[22].mxu0 %vm69_vm0, %v1961_v8  ;;  %5108 = vmatmul.mubr.msk.f32.gmra.mrb[38].mxu1 %vm69_vm0, %v1961_v8 }
0x1642   :  { %5118 = vmatprep.mubr.msk.f32.mxu0 %vm5868_vm1, %v5869_v4  ;;  %5129 = vmatprep.mubr.msk.f32.mxu1 %vm5868_vm1, %v5869_v4 }
0x1645   :  { %5119 = vmatmul.mubr.f32.vlgmr.msra.gmra.mrb[24].mxu0 %v5869_v4  ;;  %5130 = vmatmul.mubr.f32.vlgmr.msra.gmra.mrb[40].mxu1 %v5869_v4 }
0x1646   :  { %5484 = vmatpush3.bf16.msra.mxu0 %v6370_v54  ;;  %5490 = vmatpush3.bf16.msra.mxu1 %v6368_v52 }
0x1647   :  { %5485 = vmatprep.subr.bf16.mxu0 %v5867_v2  ;;  %5491 = vmatprep.subr.bf16.mxu1 %v5867_v2 }
0x1648   :  { %5151 = vmatprep.mubr.msk.f32.mxu1 %vm5868_vm1, %v5869_v4  ;;  %5140 = vmatprep.mubr.msk.f32.mxu0 %vm5868_vm1, %v5869_v4 }
0x164a   :  { %5487 = vmatpush3.bf16.msra.mxu0 %v6392_v63  ;;  %5493 = vmatpush3.bf16.msra.mxu1 %v6390_v61 }
0x164b   :  { %5494 = vmatprep.subr.bf16.mxu0 %v5867_v2  ;;  %5500 = vmatprep.subr.bf16.mxu1 %v5867_v2 }
0x1708   :  { %v5060_v60 = vpop.f32.mrb[16].mxu0  ;;  %v5100_v11 = vpop.f32.mrb[32].mxu1 }
0x1709   :  { %v6434_v30 = vadd.f32 %v5060_v60, %v4493_v9  ;;  %v6436_v12 = vadd.f32 %v5100_v11, %v4510_v37  ;;  %v2205_v49 = vpop.f32.mrb[17].mxu0  ;;  %v2430_v13 = vpop.f32.mrb[33].mxu1 }
0x170a   :  { %v6438_v14 = vadd.f32 %v4510_v37, %v2430_v13  ;;  %v2251_v34 = vadd.f32 %v4493_v9, %v2205_v49 }
0x170c   :  { %v5063_v15 = vpop.f32.mrb[18].mxu0  ;;  %v5103_v10 = vpop.f32.mrb[34].mxu1 }
0x170d   :  { %v6440_v33 = vadd.f32 %v5063_v15, %v4493_v9  ;;  %v6442_v17 = vadd.f32 %v5103_v10, %v4510_v37  ;;  %v2215_v18 = vpop.f32.mrb[19].mxu0  ;;  %v2440_v16 = vpop.f32.mrb[35].mxu1 }
0x170e   :  { %v6444_v19 = vadd.f32 %v4493_v9, %v2215_v18  ;;  %v6446_v56 = vadd.f32 %v4510_v37, %v2440_v16 }
0x1710   :  { %v5066_v20 = vpop.f32.mrb[20].mxu0  ;;  %v5106_v21 = vpop.f32.mrb[36].mxu1 }
0x1711   :  { %v6448_v53 = vadd.f32 %v5066_v20, %v4493_v9  ;;  %v6450_v22 = vadd.f32 %v5106_v21, %v4510_v37  ;;  %v2225_v23 = vpop.f32.mrb[21].mxu0  ;;  %v2450_v24 = vpop.f32.mrb[37].mxu1 }
0x1712   :  { %v6452_v25 = vadd.f32 %v4493_v9, %v2225_v23  ;;  %v6454_v26 = vadd.f32 %v4510_v37, %v2450_v24 }
0x1714   :  { %v5069_v27 = vpop.f32.mrb[22].mxu0  ;;  %v5109_v3 = vpop.f32.mrb[38].mxu1 }
0x1715   :  { %v6456_v28 = vadd.f32 %v5069_v27, %v4493_v9  ;;  %v2235_v29 = vpop.f32.mrb[23].mxu0  ;;  %v2460_v43 = vpop.f32.mrb[39].mxu1  ;;  %v2483_v35 = vadd.f32 %v5109_v3, %v4510_v37 }
0x1716   :  { %v6458_v31 = vadd.f32 %v4493_v9, %v2235_v29  ;;  %v6460_v32 = vadd.f32 %v4510_v37, %v2460_v43 }
0x1718   :  { %v2558_v36 = vpop.f32.mrb[24].mxu0  ;;  %v2629_v38 = vpop.f32.mrb[40].mxu1 }
0x1719   :  { %v2562_v39 = vadd.f32 %v2558_v36, %v2251_v34  ;;  %v2633_v40 = vadd.f32 %v2629_v38, %v2483_v35  ;;  %v5131_v41 = vpop.f32.mrb[41].mxu1  ;;  %v5120_v42 = vpop.f32.mrb[25].mxu0 }
0x171b   :  { %5739 = vtanh.f32 %v2562_v39  ;;  %v4511_v62 = vmul.f32 -1.442695, %v2562_v39  ;;  %v4512_v0 = vmul.f32 -1.442695, %v2633_v40 }
0x171c   :  { %5741 = vtanh.f32 %v2633_v40 }
0x171d   :  { %5743 = vpow2.f32 %v4511_v62 }
0x171e   :  { %5745 = vpow2.f32 %v4512_v0 }
0x1725   :  { %v5740_v44 = vpop.eup %5739 }
0x1726   :  { %v5742_v46 = vpop.eup %5741  ;;  %2643 = vrot.lane.b32.xlu1 %v5740_v44, %s5870_s6 }
0x1727   :  { %2667 = vrot.lane.b32.xlu0 %v5742_v46, %s5870_s6  ;;  %v5744_v48 = vpop.eup %5743 }
0x1728   :  { %v5746_v47 = vpop.eup %5745  ;;  %v2637_v50 = vadd.f32 1.0, %v5744_v48 }
0x1729   :  { %v2661_v45 = vadd.f32 1.0, %v5746_v47 }
0x172a   :  { %5747 = vrcp.f32 %v2637_v50 }
0x172b   :  { %5749 = vrcp.f32 %v2661_v45 }
0x1734   :  { %v5748_v58 = vpop.eup %5747 }
0x1735   :  { %v5750_v57 = vpop.eup %5749  ;;  %v2641_v5 = vmul.f32 0.0, %v5748_v58 }
0x1736   :  { %v2665_v6 = vmul.f32 0.0, %v5750_v57 }
0x1798   :  { %v2644_v55 = vpop.permute.xlu1 %2643 }
0x1799   :  { %v2668_v51 = vpop.permute.xlu0 %2667  ;;  %v2646_v59 = vmul.f32 %v5748_v58, %v2644_v55 }
0x179a   :  { %v2670_v1 = vmul.f32 %v5750_v57, %v2668_v51 }
0x179b   :  { %2648 = vrot.lane.b32.xlu1 %v2646_v59, %s5871_s16 }
0x179c   :  { %2672 = vrot.lane.b32.xlu0 %v2670_v1, %s5871_s16 }
0x180d   :  { %v2649_v7 = vpop.permute.xlu1 %2648 }
0x180e   :  { %v2673_v8 = vpop.permute.xlu0 %2672  ;;  %v2651_v9 = vadd.f32 %v2649_v7, %v2641_v5 }
0x180f   :  { %v2675_v37 = vadd.f32 %v2673_v8, %v2665_v6 }
0x1810   :  { %5751 = vtanh.f32 %v2651_v9 }
0x1811   :  { %5753 = vtanh.f32 %v2675_v37 }
0x181a   :  { %v5752_v60 = vpop.eup %5751 }
0x181b   :  { %v5754_v11 = vpop.eup %5753  ;;  %2654 = vrot.lane.b32.xlu1 %v5752_v60, %s5870_s6 }
0x181c   :  { %2678 = vrot.lane.b32.xlu0 %v5754_v11, %s5870_s6 }
0x188d   :  { %v2655_v49 = vpop.permute.xlu1 %2654 }
0x188e   :  { %v2679_v13 = vpop.permute.xlu0 %2678  ;;  %v2657_v15 = vmul.f32 %v5748_v58, %v2655_v49 }
0x188f   :  { %v2681_v10 = vmul.f32 %v5750_v57, %v2679_v13 }
0x1890   :  { %2683 = vrot.lane.b32.xlu1 %v2657_v15, %s5871_s16 }
0x1891   :  { %2688 = vrot.lane.b32.xlu0 %v2681_v10, %s5871_s16 }
0x1902   :  { %v2684_v18 = vpop.permute.xlu1 %2683 }
0x1903   :  { %v2689_v16 = vpop.permute.xlu0 %2688  ;;  %2686 = vst.msk [vmem:[#allocation4] sm:$0xff] %vm69_vm0, %v2684_v18  ;;  %5141 = vmatmul.mubr.msk.f32.vlgmr.msra.gmra.mrb[26].mxu0 %vm69_vm0, %v2684_v18 }
0x1904   :  { %2691 = vst.msk [vmem:[#allocation5 + $0x38] sm:$0xff] %vm69_vm0, %v2689_v16  ;;  %5152 = vmatmul.mubr.msk.f32.vlgmr.msra.gmra.mrb[42].mxu1 %vm69_vm0, %v2689_v16  ;;  %5496 = vmatpush3.bf16.msra.mxu0 %v6370_v54 }
0x1905   :  { %5502 = vmatpush3.bf16.msra.mxu1 %v6368_v52  ;;  %5497 = vmatprep.subr.bf16.mxu0 %v5867_v2 }
0x1906   :  { %5503 = vmatprep.subr.bf16.mxu1 %v5867_v2  ;;  %5173 = vmatprep.mubr.msk.f32.mxu1 %vm5868_vm1, %v5869_v4 }
0x1907   :  { %5162 = vmatprep.mubr.msk.f32.mxu0 %vm5868_vm1, %v5869_v4 }
0x1908   :  { %5499 = vmatpush3.bf16.msra.mxu0 %v6392_v63 }
0x1909   :  { %5505 = vmatpush3.bf16.msra.mxu1 %v6390_v61  ;;  %5506 = vmatprep.subr.bf16.mxu0 %v5867_v2 }
0x190a   :  { %5512 = vmatprep.subr.bf16.mxu1 %v5867_v2 }
0x19d6   :  { %v2760_v20 = vpop.f32.mrb[26].mxu0 }
0x19d7   :  { %v2764_v21 = vadd.f32 %v2760_v20, %v6434_v30  ;;  %v2833_v23 = vpop.f32.mrb[42].mxu1  ;;  %v5142_v24 = vpop.f32.mrb[27].mxu0 }
0x19d8   :  { %v2837_v27 = vadd.f32 %v2833_v23, %v6460_v32  ;;  %v5153_v3 = vpop.f32.mrb[43].mxu1 }
0x19d9   :  { %5755 = vtanh.f32 %v2764_v21  ;;  %v4515_v34 = vmul.f32 -1.442695, %v2764_v21 }
0x19da   :  { %5757 = vtanh.f32 %v2837_v27  ;;  %v4516_v35 = vmul.f32 -1.442695, %v2837_v27 }
0x19db   :  { %5759 = vpow2.f32 %v4515_v34 }
0x19dc   :  { %5761 = vpow2.f32 %v4516_v35 }
0x19e3   :  { %v5756_v29 = vpop.eup %5755 }
0x19e4   :  { %v5758_v43 = vpop.eup %5757  ;;  %2847 = vrot.lane.b32.xlu1 %v5756_v29, %s5870_s6 }
0x19e5   :  { %2871 = vrot.lane.b32.xlu0 %v5758_v43, %s5870_s6  ;;  %v5760_v36 = vpop.eup %5759 }
0x19e6   :  { %v5762_v38 = vpop.eup %5761  ;;  %v2841_v30 = vadd.f32 1.0, %v5760_v36 }
0x19e7   :  { %v2865_v39 = vadd.f32 1.0, %v5762_v38 }
0x19e8   :  { %5763 = vrcp.f32 %v2841_v30 }
0x19e9   :  { %5765 = vrcp.f32 %v2865_v39 }
0x19f2   :  { %v5764_v32 = vpop.eup %5763 }
0x19f3   :  { %v5766_v41 = vpop.eup %5765  ;;  %v2845_v62 = vmul.f32 %v5764_v32, %v2651_v9 }
0x19f4   :  { %v2869_v0 = vmul.f32 %v5766_v41, %v2675_v37 }
0x1a56   :  { %v2848_v40 = vpop.permute.xlu1 %2847 }
0x1a57   :  { %v2872_v42 = vpop.permute.xlu0 %2871  ;;  %v2850_v44 = vmul.f32 %v5764_v32, %v2848_v40 }
0x1a58   :  { %v2874_v46 = vmul.f32 %v5766_v41, %v2872_v42 }
0x1a59   :  { %2852 = vrot.lane.b32.xlu1 %v2850_v44, %s5871_s16 }
0x1a5a   :  { %2876 = vrot.lane.b32.xlu0 %v2874_v46, %s5871_s16 }
0x1acb   :  { %v2853_v48 = vpop.permute.xlu1 %2852 }
0x1acc   :  { %v2877_v47 = vpop.permute.xlu0 %2876  ;;  %v2855_v50 = vadd.f32 %v2853_v48, %v2845_v62 }
0x1acd   :  { %v2879_v45 = vadd.f32 %v2877_v47, %v2869_v0 }
0x1ace   :  { %5767 = vtanh.f32 %v2855_v50 }
0x1acf   :  { %5769 = vtanh.f32 %v2879_v45 }
0x1ad8   :  { %v5768_v58 = vpop.eup %5767 }
0x1ad9   :  { %v5770_v55 = vpop.eup %5769  ;;  %2858 = vrot.lane.b32.xlu1 %v5768_v58, %s5870_s6 }
0x1ada   :  { %2882 = vrot.lane.b32.xlu0 %v5770_v55, %s5870_s6 }
0x1b4b   :  { %v2859_v57 = vpop.permute.xlu1 %2858 }
0x1b4c   :  { %v2883_v51 = vpop.permute.xlu0 %2882  ;;  %v2861_v59 = vmul.f32 %v5764_v32, %v2859_v57 }
0x1b4d   :  { %v2885_v1 = vmul.f32 %v5766_v41, %v2883_v51 }
0x1b4e   :  { %2887 = vrot.lane.b32.xlu1 %v2861_v59, %s5871_s16 }
0x1b4f   :  { %2892 = vrot.lane.b32.xlu0 %v2885_v1, %s5871_s16 }
0x1bc0   :  { %v2888_v5 = vpop.permute.xlu1 %2887 }
0x1bc1   :  { %v2893_v6 = vpop.permute.xlu0 %2892  ;;  %2890 = vst.msk [vmem:[#allocation4 + $0x8] sm:$0xff] %vm69_vm0, %v2888_v5  ;;  %5163 = vmatmul.mubr.msk.f32.vlgmr.msra.gmra.mrb[28].mxu0 %vm69_vm0, %v2888_v5 }
0x1bc2   :  { %2895 = vst.msk [vmem:[#allocation5 + $0x30] sm:$0xff] %vm69_vm0, %v2893_v6  ;;  %5174 = vmatmul.mubr.msk.f32.vlgmr.msra.gmra.mrb[44].mxu1 %vm69_vm0, %v2893_v6  ;;  %5508 = vmatpush3.bf16.msra.mxu0 %v6370_v54 }
0x1bc3   :  { %5514 = vmatpush3.bf16.msra.mxu1 %v6368_v52  ;;  %5509 = vmatprep.subr.bf16.mxu0 %v5867_v2 }
0x1bc4   :  { %5515 = vmatprep.subr.bf16.mxu1 %v5867_v2  ;;  %5195 = vmatprep.mubr.msk.f32.mxu1 %vm5868_vm1, %v5869_v4 }
0x1bc5   :  { %5184 = vmatprep.mubr.msk.f32.mxu0 %vm5868_vm1, %v5869_v4 }
0x1bc6   :  { %5511 = vmatpush3.bf16.msra.mxu0 %v6392_v63 }
0x1bc7   :  { %5517 = vmatpush3.bf16.msra.mxu1 %v6390_v61  ;;  %5518 = vmatprep.subr.bf16.mxu0 %v5867_v2 }
0x1bc8   :  { %5524 = vmatprep.subr.bf16.mxu1 %v5867_v2 }
0x1c94   :  { %v2964_v7 = vpop.f32.mrb[28].mxu0 }
0x1c95   :  { %v2968_v8 = vadd.f32 %v2964_v7, %v6444_v19  ;;  %v3037_v9 = vpop.f32.mrb[44].mxu1  ;;  %v5164_v37 = vpop.f32.mrb[29].mxu0 }
0x1c96   :  { %v3041_v60 = vadd.f32 %v3037_v9, %v6450_v22  ;;  %v5175_v11 = vpop.f32.mrb[45].mxu1 }
0x1c97   :  { %5771 = vtanh.f32 %v2968_v8  ;;  %v4519_v15 = vmul.f32 -1.442695, %v2968_v8 }
0x1c98   :  { %5773 = vtanh.f32 %v3041_v60  ;;  %v4520_v10 = vmul.f32 -1.442695, %v3041_v60 }
0x1c99   :  { %5775 = vpow2.f32 %v4519_v15 }
0x1c9a   :  { %5777 = vpow2.f32 %v4520_v10 }
0x1ca1   :  { %v5772_v49 = vpop.eup %5771 }
0x1ca2   :  { %v5774_v13 = vpop.eup %5773  ;;  %3051 = vrot.lane.b32.xlu1 %v5772_v49, %s5870_s6 }
0x1ca3   :  { %3075 = vrot.lane.b32.xlu0 %v5774_v13, %s5870_s6  ;;  %v5776_v18 = vpop.eup %5775 }
0x1ca4   :  { %v5778_v16 = vpop.eup %5777  ;;  %v3045_v19 = vadd.f32 1.0, %v5776_v18 }
0x1ca5   :  { %v3069_v20 = vadd.f32 1.0, %v5778_v16 }
0x1ca6   :  { %5779 = vrcp.f32 %v3045_v19 }
0x1ca7   :  { %5781 = vrcp.f32 %v3069_v20 }
0x1cb0   :  { %v5780_v22 = vpop.eup %5779 }
0x1cb1   :  { %v5782_v23 = vpop.eup %5781  ;;  %v3049_v29 = vmul.f32 %v5780_v22, %v2855_v50 }
0x1cb2   :  { %v3073_v43 = vmul.f32 %v5782_v23, %v2879_v45 }
0x1d14   :  { %v3052_v21 = vpop.permute.xlu1 %3051 }
0x1d15   :  { %v3076_v24 = vpop.permute.xlu0 %3075  ;;  %v3054_v27 = vmul.f32 %v5780_v22, %v3052_v21 }
0x1d16   :  { %v3078_v3 = vmul.f32 %v5782_v23, %v3076_v24 }
0x1d17   :  { %3056 = vrot.lane.b32.xlu1 %v3054_v27, %s5871_s16 }
0x1d18   :  { %3080 = vrot.lane.b32.xlu0 %v3078_v3, %s5871_s16 }
0x1d89   :  { %v3057_v34 = vpop.permute.xlu1 %3056 }
0x1d8a   :  { %v3081_v35 = vpop.permute.xlu0 %3080  ;;  %v3059_v36 = vadd.f32 %v3057_v34, %v3049_v29 }
0x1d8b   :  { %v3083_v38 = vadd.f32 %v3081_v35, %v3073_v43 }
0x1d8c   :  { %5783 = vtanh.f32 %v3059_v36 }
0x1d8d   :  { %5785 = vtanh.f32 %v3083_v38 }
0x1d96   :  { %v5784_v30 = vpop.eup %5783 }
0x1d97   :  { %v5786_v39 = vpop.eup %5785  ;;  %3062 = vrot.lane.b32.xlu1 %v5784_v30, %s5870_s6 }
0x1d98   :  { %3086 = vrot.lane.b32.xlu0 %v5786_v39, %s5870_s6 }
0x1e09   :  { %v3063_v32 = vpop.permute.xlu1 %3062 }
0x1e0a   :  { %v3087_v40 = vpop.permute.xlu0 %3086  ;;  %v3065_v41 = vmul.f32 %v5780_v22, %v3063_v32 }
0x1e0b   :  { %v3089_v42 = vmul.f32 %v5782_v23, %v3087_v40 }
0x1e0c   :  { %3091 = vrot.lane.b32.xlu1 %v3065_v41, %s5871_s16 }
0x1e0d   :  { %3096 = vrot.lane.b32.xlu0 %v3089_v42, %s5871_s16 }
0x1e7e   :  { %v3092_v44 = vpop.permute.xlu1 %3091 }
0x1e7f   :  { %v3097_v46 = vpop.permute.xlu0 %3096  ;;  %3094 = vst.msk [vmem:[#allocation4 + $0x10] sm:$0xff] %vm69_vm0, %v3092_v44  ;;  %5185 = vmatmul.mubr.msk.f32.vlgmr.msra.gmra.mrb[30].mxu0 %vm69_vm0, %v3092_v44 }
0x1e80   :  { %3099 = vst.msk [vmem:[#allocation5 + $0x28] sm:$0xff] %vm69_vm0, %v3097_v46  ;;  %5196 = vmatmul.mubr.msk.f32.vlgmr.msra.gmra.mrb[46].mxu1 %vm69_vm0, %v3097_v46  ;;  %5520 = vmatpush3.bf16.msra.mxu0 %v6370_v54 }
0x1e81   :  { %5526 = vmatpush3.bf16.msra.mxu1 %v6368_v52  ;;  %5521 = vmatprep.subr.bf16.mxu0 %v5867_v2 }
0x1e82   :  { %5527 = vmatprep.subr.bf16.mxu1 %v5867_v2  ;;  %5217 = vmatprep.mubr.msk.f32.mxu1 %vm5868_vm1, %v5869_v4 }
0x1e83   :  { %5206 = vmatprep.mubr.msk.f32.mxu0 %vm5868_vm1, %v5869_v4 }
0x1e84   :  { %5523 = vmatpush3.bf16.msra.mxu0 %v6392_v63 }
0x1e85   :  { %5529 = vmatpush3.bf16.msra.mxu1 %v6390_v61  ;;  %5530 = vmatprep.subr.bf16.mxu0 %v5867_v2 }
0x1e86   :  { %5536 = vmatprep.subr.bf16.mxu1 %v5867_v2 }
0x1f52   :  { %v3168_v62 = vpop.f32.mrb[30].mxu0 }
0x1f53   :  { %v3172_v0 = vadd.f32 %v3168_v62, %v6440_v33  ;;  %v3241_v48 = vpop.f32.mrb[46].mxu1  ;;  %v5186_v47 = vpop.f32.mrb[31].mxu0 }
0x1f54   :  { %v3245_v50 = vadd.f32 %v3241_v48, %v6454_v26  ;;  %v5197_v45 = vpop.f32.mrb[47].mxu1 }
0x1f55   :  { %5787 = vtanh.f32 %v3172_v0  ;;  %v4523_v57 = vmul.f32 -1.442695, %v3172_v0 }
0x1f56   :  { %5789 = vtanh.f32 %v3245_v50  ;;  %v4524_v51 = vmul.f32 -1.442695, %v3245_v50 }
0x1f57   :  { %5791 = vpow2.f32 %v4523_v57 }
0x1f58   :  { %5793 = vpow2.f32 %v4524_v51 }
0x1f5f   :  { %v5788_v58 = vpop.eup %5787 }
0x1f60   :  { %v5790_v55 = vpop.eup %5789  ;;  %3255 = vrot.lane.b32.xlu1 %v5788_v58, %s5870_s6 }
0x1f61   :  { %3279 = vrot.lane.b32.xlu0 %v5790_v55, %s5870_s6  ;;  %v5792_v59 = vpop.eup %5791 }
0x1f62   :  { %v5794_v1 = vpop.eup %5793  ;;  %v3249_v33 = vadd.f32 1.0, %v5792_v59 }
0x1f63   :  { %v3273_v5 = vadd.f32 1.0, %v5794_v1 }
0x1f64   :  { %5795 = vrcp.f32 %v3249_v33 }
0x1f65   :  { %5797 = vrcp.f32 %v3273_v5 }
0x1f6e   :  { %v5796_v26 = vpop.eup %5795 }
0x1f6f   :  { %v5798_v7 = vpop.eup %5797  ;;  %v3253_v60 = vmul.f32 %v5796_v26, %v3059_v36 }
0x1f70   :  { %v3277_v11 = vmul.f32 %v5798_v7, %v3083_v38 }
0x1fd2   :  { %v3256_v6 = vpop.permute.xlu1 %3255 }
0x1fd3   :  { %v3280_v8 = vpop.permute.xlu0 %3279  ;;  %v3258_v9 = vmul.f32 %v5796_v26, %v3256_v6 }
0x1fd4   :  { %v3282_v37 = vmul.f32 %v5798_v7, %v3280_v8 }
0x1fd5   :  { %3260 = vrot.lane.b32.xlu1 %v3258_v9, %s5871_s16 }
0x1fd6   :  { %3284 = vrot.lane.b32.xlu0 %v3282_v37, %s5871_s16 }
0x2047   :  { %v3261_v49 = vpop.permute.xlu1 %3260 }
0x2048   :  { %v3285_v13 = vpop.permute.xlu0 %3284  ;;  %v3263_v15 = vadd.f32 %v3261_v49, %v3253_v60 }
0x2049   :  { %v3287_v10 = vadd.f32 %v3285_v13, %v3277_v11 }
0x204a   :  { %5799 = vtanh.f32 %v3263_v15 }
0x204b   :  { %5801 = vtanh.f32 %v3287_v10 }
0x2054   :  { %v5800_v18 = vpop.eup %5799 }
0x2055   :  { %v5802_v16 = vpop.eup %5801  ;;  %3266 = vrot.lane.b32.xlu1 %v5800_v18, %s5870_s6 }
0x2056   :  { %3290 = vrot.lane.b32.xlu0 %v5802_v16, %s5870_s6 }
0x20c7   :  { %v3267_v19 = vpop.permute.xlu1 %3266 }
0x20c8   :  { %v3291_v20 = vpop.permute.xlu0 %3290  ;;  %v3269_v22 = vmul.f32 %v5796_v26, %v3267_v19 }
0x20c9   :  { %v3293_v21 = vmul.f32 %v5798_v7, %v3291_v20 }
0x20ca   :  { %3295 = vrot.lane.b32.xlu1 %v3269_v22, %s5871_s16 }
0x20cb   :  { %3300 = vrot.lane.b32.xlu0 %v3293_v21, %s5871_s16 }
0x213c   :  { %v3296_v23 = vpop.permute.xlu1 %3295 }
0x213d   :  { %v3301_v24 = vpop.permute.xlu0 %3300  ;;  %3298 = vst.msk [vmem:[#allocation4 + $0x18] sm:$0xff] %vm69_vm0, %v3296_v23  ;;  %5207 = vmatmul.mubr.msk.f32.vlgmr.msra.gmra.mrb[32].mxu0 %vm69_vm0, %v3296_v23 }
0x213e   :  { %3303 = vst.msk [vmem:[#allocation5 + $0x20] sm:$0xff] %vm69_vm0, %v3301_v24  ;;  %5218 = vmatmul.mubr.msk.f32.vlgmr.msra.gmra.mrb[48].mxu1 %vm69_vm0, %v3301_v24  ;;  %5532 = vmatpush3.bf16.msra.mxu0 %v6370_v54 }
0x213f   :  { %5538 = vmatpush3.bf16.msra.mxu1 %v6368_v52  ;;  %5533 = vmatprep.subr.bf16.mxu0 %v5867_v2 }
0x2140   :  { %5539 = vmatprep.subr.bf16.mxu1 %v5867_v2  ;;  %5239 = vmatprep.mubr.msk.f32.mxu1 %vm5868_vm1, %v5869_v4 }
0x2141   :  { %5228 = vmatprep.mubr.msk.f32.mxu0 %vm5868_vm1, %v5869_v4 }
0x2142   :  { %5535 = vmatpush3.bf16.msra.mxu0 %v6392_v63 }
0x2143   :  { %5541 = vmatpush3.bf16.msra.mxu1 %v6390_v61  ;;  %5542 = vmatprep.subr.bf16.mxu0 %v5867_v2 }
0x2144   :  { %5548 = vmatprep.subr.bf16.mxu1 %v5867_v2 }
0x2210   :  { %v3372_v27 = vpop.f32.mrb[32].mxu0 }
0x2211   :  { %v3376_v3 = vadd.f32 %v3372_v27, %v6452_v25  ;;  %v3445_v29 = vpop.f32.mrb[48].mxu1  ;;  %v5208_v43 = vpop.f32.mrb[33].mxu0 }
0x2212   :  { %v3449_v34 = vadd.f32 %v3445_v29, %v6442_v17  ;;  %v5219_v35 = vpop.f32.mrb[49].mxu1 }
0x2213   :  { %5803 = vtanh.f32 %v3376_v3  ;;  %v4527_v30 = vmul.f32 -1.442695, %v3376_v3 }
0x2214   :  { %5805 = vtanh.f32 %v3449_v34  ;;  %v4528_v39 = vmul.f32 -1.442695, %v3449_v34 }
0x2215   :  { %5807 = vpow2.f32 %v4527_v30 }
0x2216   :  { %5809 = vpow2.f32 %v4528_v39 }
0x221d   :  { %v5804_v36 = vpop.eup %5803 }
0x221e   :  { %v5806_v38 = vpop.eup %5805  ;;  %3459 = vrot.lane.b32.xlu1 %v5804_v36, %s5870_s6 }
0x221f   :  { %3483 = vrot.lane.b32.xlu0 %v5806_v38, %s5870_s6  ;;  %v5808_v32 = vpop.eup %5807 }
0x2220   :  { %v5810_v40 = vpop.eup %5809  ;;  %v3453_v25 = vadd.f32 1.0, %v5808_v32 }
0x2221   :  { %v3477_v41 = vadd.f32 1.0, %v5810_v40 }
0x2222   :  { %5811 = vrcp.f32 %v3453_v25 }
0x2223   :  { %5813 = vrcp.f32 %v3477_v41 }
0x222c   :  { %v5812_v17 = vpop.eup %5811 }
0x222d   :  { %v5814_v44 = vpop.eup %5813  ;;  %v3457_v48 = vmul.f32 %v5812_v17, %v3263_v15 }
0x222e   :  { %v3481_v47 = vmul.f32 %v5814_v44, %v3287_v10 }
0x2290   :  { %v3460_v42 = vpop.permute.xlu1 %3459 }
0x2291   :  { %v3484_v46 = vpop.permute.xlu0 %3483  ;;  %v3462_v62 = vmul.f32 %v5812_v17, %v3460_v42 }
0x2292   :  { %v3486_v0 = vmul.f32 %v5814_v44, %v3484_v46 }
0x2293   :  { %3464 = vrot.lane.b32.xlu1 %v3462_v62, %s5871_s16 }
0x2294   :  { %3488 = vrot.lane.b32.xlu0 %v3486_v0, %s5871_s16 }
0x2305   :  { %v3465_v50 = vpop.permute.xlu1 %3464 }
0x2306   :  { %v3489_v45 = vpop.permute.xlu0 %3488  ;;  %v3467_v58 = vadd.f32 %v3465_v50, %v3457_v48 }
0x2307   :  { %v3491_v55 = vadd.f32 %v3489_v45, %v3481_v47 }
0x2308   :  { %5815 = vtanh.f32 %v3467_v58 }
0x2309   :  { %5817 = vtanh.f32 %v3491_v55 }
0x2312   :  { %v5816_v57 = vpop.eup %5815 }
0x2313   :  { %v5818_v51 = vpop.eup %5817  ;;  %3470 = vrot.lane.b32.xlu1 %v5816_v57, %s5870_s6 }
0x2314   :  { %3494 = vrot.lane.b32.xlu0 %v5818_v51, %s5870_s6 }
0x2385   :  { %v3471_v59 = vpop.permute.xlu1 %3470 }
0x2386   :  { %v3495_v1 = vpop.permute.xlu0 %3494  ;;  %v3473_v33 = vmul.f32 %v5812_v17, %v3471_v59 }
0x2387   :  { %v3497_v5 = vmul.f32 %v5814_v44, %v3495_v1 }
0x2388   :  { %3499 = vrot.lane.b32.xlu1 %v3473_v33, %s5871_s16 }
0x2389   :  { %3504 = vrot.lane.b32.xlu0 %v3497_v5, %s5871_s16 }
0x23fa   :  { %v3500_v26 = vpop.permute.xlu1 %3499 }
0x23fb   :  { %v3505_v6 = vpop.permute.xlu0 %3504  ;;  %3502 = vst.msk [vmem:[#allocation4 + $0x20] sm:$0xff] %vm69_vm0, %v3500_v26  ;;  %5229 = vmatmul.mubr.msk.f32.vlgmr.msra.gmra.mrb[34].mxu0 %vm69_vm0, %v3500_v26 }
0x23fc   :  { %3507 = vst.msk [vmem:[#allocation5 + $0x18] sm:$0xff] %vm69_vm0, %v3505_v6  ;;  %5240 = vmatmul.mubr.msk.f32.vlgmr.msra.gmra.mrb[50].mxu1 %vm69_vm0, %v3505_v6  ;;  %5544 = vmatpush3.bf16.msra.mxu0 %v6370_v54 }
0x23fd   :  { %5550 = vmatpush3.bf16.msra.mxu1 %v6368_v52  ;;  %5545 = vmatprep.subr.bf16.mxu0 %v5867_v2 }
0x23fe   :  { %5551 = vmatprep.subr.bf16.mxu1 %v5867_v2  ;;  %5261 = vmatprep.mubr.msk.f32.mxu1 %vm5868_vm1, %v5869_v4 }
0x23ff   :  { %5250 = vmatprep.mubr.msk.f32.mxu0 %vm5868_vm1, %v5869_v4 }
0x2400   :  { %5547 = vmatpush3.bf16.msra.mxu0 %v6392_v63 }
0x2401   :  { %5553 = vmatpush3.bf16.msra.mxu1 %v6390_v61  ;;  %5554 = vmatprep.subr.bf16.mxu0 %v5867_v2 }
0x2402   :  { %5560 = vmatprep.subr.bf16.mxu1 %v5867_v2 }
0x24ce   :  { %v3576_v7 = vpop.f32.mrb[34].mxu0 }
0x24cf   :  { %v3580_v8 = vadd.f32 %v3576_v7, %v6448_v53  ;;  %v3649_v9 = vpop.f32.mrb[50].mxu1  ;;  %v5230_v37 = vpop.f32.mrb[35].mxu0 }
0x24d0   :  { %v3653_v60 = vadd.f32 %v3649_v9, %v6446_v56  ;;  %v5241_v11 = vpop.f32.mrb[51].mxu1 }
0x24d1   :  { %5819 = vtanh.f32 %v3580_v8  ;;  %v4531_v15 = vmul.f32 -1.442695, %v3580_v8 }
0x24d2   :  { %5821 = vtanh.f32 %v3653_v60  ;;  %v4532_v10 = vmul.f32 -1.442695, %v3653_v60 }
0x24d3   :  { %5823 = vpow2.f32 %v4531_v15 }
0x24d4   :  { %5825 = vpow2.f32 %v4532_v10 }
0x24db   :  { %v5820_v49 = vpop.eup %5819 }
0x24dc   :  { %v5822_v13 = vpop.eup %5821  ;;  %3663 = vrot.lane.b32.xlu1 %v5820_v49, %s5870_s6 }
0x24dd   :  { %3687 = vrot.lane.b32.xlu0 %v5822_v13, %s5870_s6  ;;  %v5824_v18 = vpop.eup %5823 }
0x24de   :  { %v5826_v16 = vpop.eup %5825  ;;  %v3657_v53 = vadd.f32 1.0, %v5824_v18 }
0x24df   :  { %v3681_v19 = vadd.f32 1.0, %v5826_v16 }
0x24e0   :  { %5827 = vrcp.f32 %v3657_v53 }
0x24e1   :  { %5829 = vrcp.f32 %v3681_v19 }
0x24ea   :  { %v5828_v56 = vpop.eup %5827 }
0x24eb   :  { %v5830_v22 = vpop.eup %5829  ;;  %v3661_v27 = vmul.f32 %v5828_v56, %v3467_v58 }
0x24ec   :  { %v3685_v3 = vmul.f32 %v5830_v22, %v3491_v55 }
0x254e   :  { %v3664_v20 = vpop.permute.xlu1 %3663 }
0x254f   :  { %v3688_v21 = vpop.permute.xlu0 %3687  ;;  %v3666_v23 = vmul.f32 %v5828_v56, %v3664_v20 }
0x2550   :  { %v3690_v24 = vmul.f32 %v5830_v22, %v3688_v21 }
0x2551   :  { %3668 = vrot.lane.b32.xlu1 %v3666_v23, %s5871_s16 }
0x2552   :  { %3692 = vrot.lane.b32.xlu0 %v3690_v24, %s5871_s16 }
0x25c3   :  { %v3669_v29 = vpop.permute.xlu1 %3668 }
0x25c4   :  { %v3693_v43 = vpop.permute.xlu0 %3692  ;;  %v3671_v34 = vadd.f32 %v3669_v29, %v3661_v27 }
0x25c5   :  { %v3695_v35 = vadd.f32 %v3693_v43, %v3685_v3 }
0x25c6   :  { %5831 = vtanh.f32 %v3671_v34 }
0x25c7   :  { %5833 = vtanh.f32 %v3695_v35 }
0x25d0   :  { %v5832_v36 = vpop.eup %5831 }
0x25d1   :  { %v5834_v38 = vpop.eup %5833  ;;  %3674 = vrot.lane.b32.xlu1 %v5832_v36, %s5870_s6 }
0x25d2   :  { %3698 = vrot.lane.b32.xlu0 %v5834_v38, %s5870_s6 }
0x2643   :  { %v3675_v30 = vpop.permute.xlu1 %3674 }
0x2644   :  { %v3699_v39 = vpop.permute.xlu0 %3698  ;;  %v3677_v32 = vmul.f32 %v5828_v56, %v3675_v30 }
0x2645   :  { %v3701_v40 = vmul.f32 %v5830_v22, %v3699_v39 }
0x2646   :  { %3703 = vrot.lane.b32.xlu1 %v3677_v32, %s5871_s16 }
0x2647   :  { %3708 = vrot.lane.b32.xlu0 %v3701_v40, %s5871_s16 }
0x26b8   :  { %v3704_v25 = vpop.permute.xlu1 %3703 }
0x26b9   :  { %v3709_v41 = vpop.permute.xlu0 %3708  ;;  %3706 = vst.msk [vmem:[#allocation4 + $0x28] sm:$0xff] %vm69_vm0, %v3704_v25  ;;  %5251 = vmatmul.mubr.msk.f32.vlgmr.msra.gmra.mrb[36].mxu0 %vm69_vm0, %v3704_v25  ;;  %v4124_v25 = vld [vmem:[%s6720_s13 + $0x20] sm:$0xff] }
0x26ba   :  { %3711 = vst.msk [vmem:[#allocation5 + $0x10] sm:$0xff] %vm69_vm0, %v3709_v41  ;;  %5262 = vmatmul.mubr.msk.f32.vlgmr.msra.gmra.mrb[52].mxu1 %vm69_vm0, %v3709_v41  ;;  %5556 = vmatpush3.bf16.msra.mxu0 %v6370_v54  ;;  %v4125_v41 = vld [vmem:[%s6720_s13 + $0x28] sm:$0xff] }
0x26bb   :  { %5562 = vmatpush3.bf16.msra.mxu1 %v6368_v52  ;;  %5557 = vmatprep.subr.bf16.mxu0 %v5867_v2 }
0x26bc   :  { %5563 = vmatprep.subr.bf16.mxu1 %v5867_v2  ;;  %5283 = vmatprep.mubr.msk.f32.mxu1 %vm5868_vm1, %v5869_v4 }
0x26bd   :  { %5272 = vmatprep.mubr.msk.f32.mxu0 %vm5868_vm1, %v5869_v4 }
0x26be   :  { %5559 = vmatpush3.bf16.msra.mxu0 %v6392_v63 }
0x26bf   :  { %5565 = vmatpush3.bf16.msra.mxu1 %v6390_v61 }
0x278c   :  { %v3780_v17 = vpop.f32.mrb[36].mxu0 }
0x278d   :  { %v3784_v42 = vadd.f32 %v3780_v17, %v6458_v31  ;;  %v3853_v54 = vpop.f32.mrb[52].mxu1  ;;  %v5252_v44 = vpop.f32.mrb[37].mxu0  ;;  %v5566_v17 = vpack.c.bf16 %v4125_v41, %v4124_v25 }
0x278e   :  { %v3857_v52 = vadd.f32 %v3853_v54, %v6436_v12  ;;  %v5263_v46 = vpop.f32.mrb[53].mxu1  ;;  %v4127_v54 = vld [vmem:[%s6720_s13 + $0x38] sm:$0xff] }
0x278f   :  { %5835 = vtanh.f32 %v3784_v42  ;;  %v4535_v4 = vmul.f32 -1.442695, %v3784_v42  ;;  %v4126_v42 = vld [vmem:[%s6720_s13 + $0x30] sm:$0xff]  ;;  %5567 = vmatprep.subr.bf16.mxu0 %v5566_v17  ;;  %v4120_v46 = vld [vmem:[%s6720_s13] sm:$0xff] }
0x2790   :  { %5837 = vtanh.f32 %v3857_v52  ;;  %v4536_v63 = vmul.f32 -1.442695, %v3857_v52  ;;  %v5570_v44 = vpack.c.bf16 %v4127_v54, %v4126_v42 }
0x2791   :  { %5839 = vpow2.f32 %v4535_v4 }
0x2792   :  { %5841 = vpow2.f32 %v4536_v63 }
0x2799   :  { %v5836_v2 = vpop.eup %5835 }
0x279a   :  { %v5838_v62 = vpop.eup %5837  ;;  %3867 = vrot.lane.b32.xlu1 %v5836_v2, %s5870_s6  ;;  %v4121_v2 = vld [vmem:[%s6720_s13 + $0x8] sm:$0xff] }
0x279b   :  { %3891 = vrot.lane.b32.xlu0 %v5838_v62, %s5870_s6  ;;  %v5840_v61 = vpop.eup %5839  ;;  %v5574_v63 = vpack.c.bf16 %v4121_v2, %v4120_v46 }
0x279c   :  { %v5842_v0 = vpop.eup %5841  ;;  %v3861_v31 = vadd.f32 1.0, %v5840_v61 }
0x279d   :  { %v3885_v48 = vadd.f32 1.0, %v5842_v0 }
0x279e   :  { %5843 = vrcp.f32 %v3861_v31 }
0x279f   :  { %5845 = vrcp.f32 %v3885_v48  ;;  %v4122_v48 = vld [vmem:[%s6720_s13 + $0x10] sm:$0xff] }
0x27a8   :  { %v5844_v12 = vpop.eup %5843 }
0x27a9   :  { %v5846_v50 = vpop.eup %5845  ;;  %v3865_v57 = vmul.f32 %v5844_v12, %v3671_v34 }
0x27aa   :  { %v3889_v51 = vmul.f32 %v5846_v50, %v3695_v35 }
0x280c   :  { %v3868_v47 = vpop.permute.xlu1 %3867 }
0x280d   :  { %v3892_v45 = vpop.permute.xlu0 %3891  ;;  %v3870_v58 = vmul.f32 %v5844_v12, %v3868_v47 }
0x280e   :  { %v3894_v55 = vmul.f32 %v5846_v50, %v3892_v45 }
0x280f   :  { %3872 = vrot.lane.b32.xlu1 %v3870_v58, %s5871_s16  ;;  %v4138_v58 = vld [vmem:[#allocation5 + $0x10] sm:$0xff] }
0x2810   :  { %3896 = vrot.lane.b32.xlu0 %v3894_v55, %s5871_s16  ;;  %v4139_v55 = vld [vmem:[#allocation5 + $0x18] sm:$0xff] }
0x2881   :  { %v3873_v59 = vpop.permute.xlu1 %3872 }
0x2882   :  { %v3897_v1 = vpop.permute.xlu0 %3896  ;;  %v3875_v33 = vadd.f32 %v3873_v59, %v3865_v57  ;;  %v4140_v57 = vld [vmem:[#allocation5 + $0x20] sm:$0xff]  ;;  %v4142_v59 = vld [vmem:[#allocation5 + $0x30] sm:$0xff] }
0x2883   :  { %v3899_v5 = vadd.f32 %v3897_v1, %v3889_v51  ;;  %v4141_v51 = vld [vmem:[#allocation5 + $0x28] sm:$0xff]  ;;  %v4143_v1 = vld [vmem:[#allocation5 + $0x38] sm:$0xff] }
0x2884   :  { %5847 = vtanh.f32 %v3875_v33 }
0x2885   :  { %5849 = vtanh.f32 %v3899_v5 }
0x288e   :  { %v5848_v26 = vpop.eup %5847 }
0x288f   :  { %v5850_v6 = vpop.eup %5849  ;;  %3878 = vrot.lane.b32.xlu1 %v5848_v26, %s5870_s6  ;;  %v4130_v26 = vld [vmem:[#allocation4 + $0x10] sm:$0xff] }
0x2890   :  { %3902 = vrot.lane.b32.xlu0 %v5850_v6, %s5870_s6  ;;  %v4131_v6 = vld [vmem:[#allocation4 + $0x18] sm:$0xff] }
0x2901   :  { %v3879_v7 = vpop.permute.xlu1 %3878 }
0x2902   :  { %v3903_v8 = vpop.permute.xlu0 %3902  ;;  %v3881_v9 = vmul.f32 %v5844_v12, %v3879_v7  ;;  %v4123_v12 = vld [vmem:[%s6720_s13 + $0x18] sm:$0xff]  ;;  %v4132_v7 = vld [vmem:[#allocation4 + $0x20] sm:$0xff] }
0x2903   :  { %v3905_v37 = vmul.f32 %v5846_v50, %v3903_v8  ;;  %v5578_v50 = vpack.c.bf16 %v4123_v12, %v4122_v48  ;;  %v4133_v8 = vld [vmem:[#allocation4 + $0x28] sm:$0xff] }
0x2904   :  { %3907 = vrot.lane.b32.xlu1 %v3881_v9, %s5871_s16 }
0x2905   :  { %3912 = vrot.lane.b32.xlu0 %v3905_v37, %s5871_s16 }
0x2976   :  { %v3908_v60 = vpop.permute.xlu1 %3907 }
0x2977   :  { %v3913_v11 = vpop.permute.xlu0 %3912  ;;  %3910 = vst.msk [vmem:[#allocation4 + $0x30] sm:$0xff] %vm69_vm0, %v3908_v60  ;;  %5273 = vmatmul.mubr.msk.f32.vlgmr.msra.gmra.mrb[38].mxu0 %vm69_vm0, %v3908_v60  ;;  %v4557_v60 = vld [vmem:[%s6721_s14] ss:$0 sm:$0xff] }
0x2978   :  { %3915 = vst.msk [vmem:[#allocation5 + $0x8] sm:$0xff] %vm69_vm0, %v3913_v11  ;;  %5284 = vmatmul.mubr.msk.f32.vlgmr.msra.gmra.mrb[54].mxu1 %vm69_vm0, %v3913_v11  ;;  %5569 = vmatpush3.bf16.msra.mxu0 %v5566_v17 }
0x2979   :  { %5571 = vmatprep.subr.bf16.mxu0 %v5570_v44 }
0x297c   :  { %5573 = vmatpush3.bf16.msra.mxu0 %v5570_v44 }
0x297d   :  { %5575 = vmatprep.subr.bf16.mxu0 %v5574_v63 }
0x297e   :  { %v4134_v9 = vld [vmem:[#allocation4 + $0x30] sm:$0xff] }
0x297f   :  { %v4137_v45 = vld [vmem:[#allocation5 + $0x8] sm:$0xff] }
0x2a4a   :  { %v3984_v49 = vpop.f32.mrb[38].mxu0 }
0x2a4b   :  { %v3988_v13 = vadd.f32 %v3984_v49, %v6456_v28  ;;  %v4057_v15 = vpop.f32.mrb[54].mxu1  ;;  %v5274_v10 = vpop.f32.mrb[39].mxu0 }
0x2a4c   :  { %v4061_v18 = vadd.f32 %v4057_v15, %v6438_v14  ;;  %v5285_v16 = vpop.f32.mrb[55].mxu1 }
0x2a4d   :  { %5851 = vtanh.f32 %v3988_v13  ;;  %v4539_v56 = vmul.f32 -1.442695, %v3988_v13 }
0x2a4e   :  { %5853 = vtanh.f32 %v4061_v18  ;;  %v4540_v20 = vmul.f32 -1.442695, %v4061_v18 }
0x2a4f   :  { %5855 = vpow2.f32 %v4539_v56 }
0x2a50   :  { %5857 = vpow2.f32 %v4540_v20 }
0x2a57   :  { %v5852_v53 = vpop.eup %5851 }
0x2a58   :  { %v5854_v19 = vpop.eup %5853  ;;  %4071 = vrot.lane.b32.xlu1 %v5852_v53, %s5870_s6 }
0x2a59   :  { %4095 = vrot.lane.b32.xlu0 %v5854_v19, %s5870_s6  ;;  %v5856_v22 = vpop.eup %5855 }
0x2a5a   :  { %v5858_v21 = vpop.eup %5857  ;;  %v4065_v28 = vadd.f32 1.0, %v5856_v22 }
0x2a5b   :  { %v4089_v23 = vadd.f32 1.0, %v5858_v21 }
0x2a5c   :  { %5859 = vrcp.f32 %v4065_v28 }
0x2a5d   :  { %5861 = vrcp.f32 %v4089_v23 }
0x2a66   :  { %v5860_v14 = vpop.eup %5859 }
0x2a67   :  { %v5862_v27 = vpop.eup %5861  ;;  %v4069_v34 = vmul.f32 %v5860_v14, %v3875_v33  ;;  %v4128_v33 = vld [vmem:[#allocation4] sm:$0xff] }
0x2a68   :  { %v4093_v35 = vmul.f32 %v5862_v27, %v3899_v5  ;;  %v4129_v5 = vld [vmem:[#allocation4 + $0x8] sm:$0xff] }
0x2aca   :  { %v4072_v24 = vpop.permute.xlu1 %4071 }
0x2acb   :  { %v4096_v3 = vpop.permute.xlu0 %4095  ;;  %v4074_v29 = vmul.f32 %v5860_v14, %v4072_v24 }
0x2acc   :  { %v4098_v43 = vmul.f32 %v5862_v27, %v4096_v3 }
0x2acd   :  { %4076 = vrot.lane.b32.xlu1 %v4074_v29, %s5871_s16 }
0x2ace   :  { %4100 = vrot.lane.b32.xlu0 %v4098_v43, %s5871_s16 }
0x2b3f   :  { %v4077_v36 = vpop.permute.xlu1 %4076 }
0x2b40   :  { %v4101_v38 = vpop.permute.xlu0 %4100  ;;  %v4079_v30 = vadd.f32 %v4077_v36, %v4069_v34 }
0x2b41   :  { %v4103_v39 = vadd.f32 %v4101_v38, %v4093_v35 }
0x2b42   :  { %5863 = vtanh.f32 %v4079_v30 }
0x2b43   :  { %5865 = vtanh.f32 %v4103_v39 }
0x2b4c   :  { %v5864_v32 = vpop.eup %5863 }
0x2b4d   :  { %v5866_v40 = vpop.eup %5865  ;;  %4082 = vrot.lane.b32.xlu1 %v5864_v32, %s5870_s6 }
0x2b4e   :  { %4106 = vrot.lane.b32.xlu0 %v5866_v40, %s5870_s6 }
0x2bbf   :  { %v4083_v52 = vpop.permute.xlu1 %4082 }
0x2bc0   :  { %v4107_v62 = vpop.permute.xlu0 %4106  ;;  %v4085_v4 = vmul.f32 %v5860_v14, %v4083_v52 }
0x2bc1   :  { %v4109_v61 = vmul.f32 %v5862_v27, %v4107_v62 }
0x2bc2   :  { %4111 = vrot.lane.b32.xlu1 %v4085_v4, %s5871_s16 }
0x2bc3   :  { %4116 = vrot.lane.b32.xlu0 %v4109_v61, %s5871_s16 }
0x2c34   :  { %v4112_v0 = vpop.permute.xlu1 %4111 }
0x2c35   :  { %v4117_v31 = vpop.permute.xlu0 %4116  ;;  %4114 = vst.msk [vmem:[#allocation4 + $0x38] sm:$0xff] %vm69_vm0, %v4112_v0 }
0x2c36   :  { %4119 = vst.msk [vmem:[#allocation5] sm:$0xff] %vm69_vm0, %v4117_v31 }
0x2c3c   :  { %v4135_v37 = vld [vmem:[#allocation4 + $0x38] sm:$0xff] }
0x2c3d   :  { %v4136_v47 = vld [vmem:[#allocation5] sm:$0xff] }
0x2c3e   :  { %5294 = vmatprep.mubr.msk.f32.mxu0 %vm69_vm0, %v4136_v47 }
0x2c3f   :  { %5295 = vmatmul.mubr.msk.f32.vlgmr.msra.gmra.mrb[40].mxu0 %vm69_vm0, %v4137_v45 }
0x2c40   :  { %5297 = vmatprep.mubr.msk.f32.mxu0 %vm69_vm0, %v4138_v58  ;;  %5577 = vmatpush3.bf16.msra.mxu0 %v5574_v63 }
0x2c41   :  { %5579 = vmatprep.subr.bf16.mxu0 %v5578_v50 }
0x2c43   :  { %5298 = vmatmul.mubr.msk.f32.gmra.mrb[42].mxu0 %vm69_vm0, %v4139_v55 }
0x2c44   :  { %5300 = vmatprep.mubr.msk.f32.mxu0 %vm69_vm0, %v4140_v57  ;;  %5581 = vmatpush3.bf16.msra.mxu0 %v5578_v50 }
0x2c47   :  { %5301 = vmatmul.mubr.msk.f32.gmra.mrb[44].mxu0 %vm69_vm0, %v4141_v51 }
0x2c48   :  { %5303 = vmatprep.mubr.msk.f32.mxu0 %vm69_vm0, %v4142_v59 }
0x2c4b   :  { %5304 = vmatmul.mubr.msk.f32.gmra.mrb[46].mxu0 %vm69_vm0, %v4143_v1 }
0x2c4c   :  { %5314 = vmatprep.mubr.msk.f32.mxu0 %vm69_vm0, %v4128_v33 }
0x2c4f   :  { %5315 = vmatmul.mubr.msk.f32.vlgmr.msra.gmra.mrb[40].mxu0 %vm69_vm0, %v4129_v5 }
0x2c50   :  { %5317 = vmatprep.mubr.msk.f32.mxu0 %vm69_vm0, %v4130_v26 }
0x2c53   :  { %5318 = vmatmul.mubr.msk.f32.gmra.mrb[42].mxu0 %vm69_vm0, %v4131_v6 }
0x2c54   :  { %5320 = vmatprep.mubr.msk.f32.mxu0 %vm69_vm0, %v4132_v7 }
0x2c57   :  { %5321 = vmatmul.mubr.msk.f32.gmra.mrb[44].mxu0 %vm69_vm0, %v4133_v8 }
0x2c58   :  { %5323 = vmatprep.mubr.msk.f32.mxu0 %vm69_vm0, %v4134_v9 }
0x2c5b   :  { %5324 = vmatmul.mubr.msk.f32.gmra.mrb[46].mxu0 %vm69_vm0, %v4135_v37 }
0x2d22   :  { %v5316_v11 = vpop.f32.mrb[40].mxu0 }
0x2d23   :  { %v4410_v49 = vadd.f32 %v5316_v11, %v4557_v60  ;;  %v4363_v13 = vpop.f32.mrb[41].mxu0 }
0x2d24   :  { %v4409_v15 = vadd.f32 %v4557_v60, %v4363_v13 }
0x2d25   :  { %4418 = vst [vmem:[%s6722_s15 + $0x8] sm:$0xff] %v4410_v49 }
0x2d26   :  { %4417 = vst [vmem:[%s6722_s15] sm:$0xff] %v4409_v15  ;;  %v5319_v10 = vpop.f32.mrb[42].mxu0 }
0x2d27   :  { %v4412_v18 = vadd.f32 %v5319_v10, %v4557_v60  ;;  %v4373_v16 = vpop.f32.mrb[43].mxu0 }
0x2d28   :  { %v4411_v53 = vadd.f32 %v4557_v60, %v4373_v16 }
0x2d29   :  { %4420 = vst [vmem:[%s6722_s15 + $0x18] sm:$0xff] %v4412_v18 }
0x2d2a   :  { %4419 = vst [vmem:[%s6722_s15 + $0x10] sm:$0xff] %v4411_v53  ;;  %v5322_v19 = vpop.f32.mrb[44].mxu0 }
0x2d2b   :  { %v4414_v56 = vadd.f32 %v5322_v19, %v4557_v60  ;;  %v4383_v20 = vpop.f32.mrb[45].mxu0 }
0x2d2c   :  { %v4413_v22 = vadd.f32 %v4557_v60, %v4383_v20 }
0x2d2d   :  { %4422 = vst [vmem:[%s6722_s15 + $0x28] sm:$0xff] %v4414_v56 }
0x2d2e   :  { %4421 = vst [vmem:[%s6722_s15 + $0x20] sm:$0xff] %v4413_v22  ;;  %v5325_v21 = vpop.f32.mrb[46].mxu0 }
0x2d2f   :  { %v4416_v28 = vadd.f32 %v5325_v21, %v4557_v60  ;;  %v4393_v23 = vpop.f32.mrb[47].mxu0 }
0x2d30   :  { %v4415_v14 = vadd.f32 %v4557_v60, %v4393_v23 }
0x2d31   :  { %4424 = vst [vmem:[%s6722_s15 + $0x38] sm:$0xff] %v4416_v28 }
0x2d32   :  { %4423 = vst [vmem:[%s6722_s15 + $0x30] sm:$0xff] %v4415_v14 }

</bundles_post_ra>
